<compile_context>
chip_gen: v6e
topology: v6e:2x2x1
jax: 0.10.0
libtpu: 0.0.40
codegen_flags: <defaults>
</compile_context>

<pallas_src>
import jax
import jax.numpy as jnp
from jax.experimental import pallas as pl
from jax.experimental.pallas import tpu as pltpu

LANE = 128  # TPU lane width; gates / vocab are padded to this


# ----------------------------------------------------------------------------
# Kernel factory: one invocation runs all T decode steps.
# ----------------------------------------------------------------------------
def _make_decoder_kernel(T, k256):
    def kernel(tok_ref, emb_ref, w_gru_ref, b_gru_ref, w_out_ref, b_out_ref,
               h0_ref, logp_ref, h_out_ref, lhs_ref):
        T_pad = logp_ref.shape[0]

        # Loop-invariant loads (weights stay VMEM/vreg resident for all steps).
        w_gru = w_gru_ref[...]
        b_gru = b_gru_ref[...]
        w_out = w_out_ref[...]
        b_out = b_out_ref[...]
        row_ids = jax.lax.broadcasted_iota(jnp.int32, (T_pad, 1), 0)

        h0 = h0_ref[...]                              # (1, 128) f32
        # Seed the persistent bf16 LHS scratch with the initial hidden state.
        if k256:
            lhs_ref[:, LANE:2 * LANE] = h0.astype(jnp.bfloat16)
        else:
            lhs_ref[1:2, :] = h0.astype(jnp.bfloat16)

        def step(t, carry):
            h, acc = carry                            # h: (1,128) f32 carry

            # Embedding gather (VMEM-resident table, dynamic major-dim index)
            # + ReLU, then write the x half of the persistent bf16 LHS.
            tok = tok_ref[t]
            x_bf = jnp.maximum(emb_ref[tok], 0.0).astype(jnp.bfloat16)  # (1,128)

            if k256:
                lhs_ref[:, 0:LANE] = x_bf
                # (1,256) @ (256,512): MXU pre-sums the r/z gates.
                g = jnp.dot(lhs_ref[...], w_gru,
                            preferred_element_type=jnp.float32) + b_gru
                r = jax.nn.sigmoid(g[:, 0:LANE])
                z = jax.nn.sigmoid(g[:, LANE:2 * LANE])
                n = jnp.tanh(g[:, 2 * LANE:3 * LANE] + r * g[:, 3 * LANE:4 * LANE])
            else:
                lhs_ref[0:1, :] = x_bf
                # (2,128) @ (128,768): gi = row 0 / lanes 0:384, gh = row 1 / 384:768.
                g = jnp.dot(lhs_ref[...], w_gru,
                            preferred_element_type=jnp.float32)
                gi = g[0:1, 0:3 * LANE] + b_gru[0:1, :]
                gh = g[1:2, 3 * LANE:6 * LANE] + b_gru[1:2, :]
                r = jax.nn.sigmoid(gi[:, 0:LANE] + gh[:, 0:LANE])
                z = jax.nn.sigmoid(gi[:, LANE:2 * LANE] + gh[:, LANE:2 * LANE])
                n = jnp.tanh(gi[:, 2 * LANE:3 * LANE] + r * gh[:, 2 * LANE:3 * LANE])

            h_new = (1.0 - z) * n + z * h             # f32 carry (padding stays 0)

            # Single bf16 cast of h_new: reused for next-step LHS and out-proj.
            h_bf = h_new.astype(jnp.bfloat16)
            if k256:
                lhs_ref[:, LANE:2 * LANE] = h_bf
            else:
                lhs_ref[1:2, :] = h_bf

            # Output projection + log-softmax over the lane-dense padded vocab.
            logits = jnp.dot(h_bf, w_out,
                             preferred_element_type=jnp.float32) + b_out
            m = jnp.max(logits, axis=-1, keepdims=True)
            shifted = logits - m
            lse = jnp.log(jnp.sum(jnp.exp(shifted), axis=-1, keepdims=True))

            # Accumulate this step's row into the register-resident output tile.
            acc = jnp.where(row_ids == t, shifted - lse, acc)
            return h_new, acc

        h_final, logp = jax.lax.fori_loop(
            0, T, step, (h0, jnp.zeros((T_pad, LANE), jnp.float32)), unroll=True)

        # One dense (T_pad,128) writeback + the final hidden state.
        logp_ref[...] = logp
        h_out_ref[...] = h_final

    return kernel


# ----------------------------------------------------------------------------
# Wrappers
# ----------------------------------------------------------------------------
def decoder_decode_sequence(packed, tokens, hidden):
    """Run T decode steps fused in one pallas_call (single kernel invocation).

    tokens: (T,) int32; hidden: (1, 1, H) f32.
    Returns (log_probs (T, V), new_hidden (1, 1, H)).
    """
    H = packed["hidden_size"]
    V = packed["output_size"]
    k256 = packed["k256"]
    T = int(tokens.shape[0])
    T_pad = max(8, ((T + 7) // 8) * 8)       # sublane-dense output tile
    tokens = tokens.astype(jnp.int32)

    h0 = jnp.zeros((1, LANE), jnp.float32).at[:, :H].set(hidden.reshape(1, H))
    lhs_shape = (1, 2 * LANE) if k256 else (2, LANE)

    logp_pad, h_pad = pl.pallas_call(
        _make_decoder_kernel(T=T, k256=k256),
        out_shape=(
            jax.ShapeDtypeStruct((T_pad, LANE), jnp.float32),
            jax.ShapeDtypeStruct((1, LANE), jnp.float32),
        ),
        in_specs=[
            pl.BlockSpec(memory_space=pltpu.MemorySpace.SMEM),   # token ids
            pl.BlockSpec(memory_space=pltpu.MemorySpace.VMEM),   # embedding table
            pl.BlockSpec(memory_space=pltpu.MemorySpace.VMEM),   # fused GRU weights
            pl.BlockSpec(memory_space=pltpu.MemorySpace.VMEM),   # GRU biases
            pl.BlockSpec(memory_space=pltpu.MemorySpace.VMEM),   # W_out
            pl.BlockSpec(memory_space=pltpu.MemorySpace.VMEM),   # b_out (-1e30 padded)
            pl.BlockSpec(memory_space=pltpu.MemorySpace.VMEM),   # initial hidden
        ],
        out_specs=(
            pl.BlockSpec(memory_space=pltpu.MemorySpace.VMEM),   # log-probs (T_pad,128)
            pl.BlockSpec(memory_space=pltpu.MemorySpace.VMEM),   # final hidden
        ),
        scratch_shapes=[pltpu.VMEM(lhs_shape, jnp.bfloat16)],    # persistent LHS
        compiler_params=pltpu.CompilerParams(vmem_limit_bytes=32 * 1024 * 1024),
    )(tokens, packed["emb"], packed["w_gru"], packed["b_gru"],
      packed["w_out"], packed["b_out"], h0)

    return logp_pad[:T, :V], h_pad[:, :H].reshape(1, 1, H)


def decoder_forward(packed, token_id, hidden):
    """Single-step forward matching the PyTorch module signature."""
    tokens = jnp.reshape(token_id, (1,)).astype(jnp.int32)
    logp, h_new = decoder_decode_sequence(packed, tokens, hidden)
    return logp, h_new            # (1, V), (1, 1, H)


# ----------------------------------------------------------------------------
# Parameters: raw torch-like params + packing into the padded kernel layout
# ----------------------------------------------------------------------------
def init_raw_params(key, hidden_size, output_size):
    ks = jax.random.split(key, 7)
    s = 1.0 / jnp.sqrt(jnp.float32(hidden_size))
    return {
        "hidden_size": hidden_size,
        "output_size": output_size,
        "embedding": jax.random.normal(ks[0], (output_size, hidden_size), jnp.float32),
        # torch.nn.GRU layout: (3H, H) with gates stacked [r; z; n]
        "w_ih": jax.random.uniform(ks[1], (3 * hidden_size, hidden_size), jnp.float32, -s, s),
        "w_hh": jax.random.uniform(ks[2], (3 * hidden_size, hidden_size), jnp.float32, -s, s),
        "b_ih": jax.random.uniform(ks[3], (3 * hidden_size,), jnp.float32, -s, s),
        "b_hh": jax.random.uniform(ks[4], (3 * hidden_size,), jnp.float32, -s, s),
        # torch.nn.Linear layout: (V, H), (V,)
        "w_out": jax.random.uniform(ks[5], (output_size, hidden_size), jnp.float32, -s, s),
        "b_out": jax.random.uniform(ks[6], (output_size,), jnp.float32, -s, s),
    }


def _default_k256():
    """K=256 fused-MXU packing on 256-deep-MXU generations (v6e/v7x); K=128 on v2-v5."""
    try:
        kind = jax.devices()[0].device_kind.lower()
    except Exception:
        return True
    return not any(s in kind for s in ("v2", "v3", "v4", "v5"))


def pack_decoder_params(raw, k256=None):
    """Pad weights to lane-aligned gate blocks / lane-dense vocab (bf16 weights)."""
    if k256 is None:
        k256 = _default_k256()
    H = raw["hidden_size"]
    V = raw["output_size"]

    w_ih_t = raw["w_ih"].T            # (H, 3H), column groups [r | z | n]
    w_hh_t = raw["w_hh"].T

    def gate_cols(w_t, g):            # (H, H) block for gate g
        return w_t[:, g * H:(g + 1) * H]

    if k256:
        # RHS (256, 512): rows 0:128 = input path, rows 128:256 = hidden path.
        # Columns: [r_sum | z_sum | gi_n | gh_n], each a 128-lane block.
        w = jnp.zeros((2 * LANE, 4 * LANE), jnp.float32)
        for g in range(2):            # r, z: MXU pre-sums the two paths
            w = w.at[:H, g * LANE:g * LANE + H].set(gate_cols(w_ih_t, g))
            w = w.at[LANE:LANE + H, g * LANE:g * LANE + H].set(gate_cols(w_hh_t, g))
        w = w.at[:H, 2 * LANE:2 * LANE + H].set(gate_cols(w_ih_t, 2))            # gi_n
        w = w.at[LANE:LANE + H, 3 * LANE:3 * LANE + H].set(gate_cols(w_hh_t, 2))  # gh_n
        w_gru = w.astype(jnp.bfloat16)

        b = jnp.zeros((1, 4 * LANE), jnp.float32)
        b = b.at[0, 0:H].set(raw["b_ih"][0:H] + raw["b_hh"][0:H])
        b = b.at[0, LANE:LANE + H].set(raw["b_ih"][H:2 * H] + raw["b_hh"][H:2 * H])
        b = b.at[0, 2 * LANE:2 * LANE + H].set(raw["b_ih"][2 * H:3 * H])
        b = b.at[0, 3 * LANE:3 * LANE + H].set(raw["b_hh"][2 * H:3 * H])
        b_gru = b
    else:
        # RHS (128, 768): [W_ih_t gate blocks | W_hh_t gate blocks].
        w = jnp.zeros((LANE, 6 * LANE), jnp.float32)
        for g in range(3):
            w = w.at[:H, g * LANE:g * LANE + H].set(gate_cols(w_ih_t, g))
            w = w.at[:H, (3 + g) * LANE:(3 + g) * LANE + H].set(gate_cols(w_hh_t, g))
        w_gru = w.astype(jnp.bfloat16)

        b = jnp.zeros((2, 3 * LANE), jnp.float32)
        for g in range(3):
            b = b.at[0, g * LANE:g * LANE + H].set(raw["b_ih"][g * H:(g + 1) * H])
            b = b.at[1, g * LANE:g * LANE + H].set(raw["b_hh"][g * H:(g + 1) * H])
        b_gru = b

    w_out = (jnp.zeros((LANE, LANE), jnp.float32)
             .at[:H, :V].set(raw["w_out"].T)).astype(jnp.bfloat16)
    # Large negative finite (not -inf) on padded vocab columns.
    b_out = jnp.full((1, LANE), -1e30, jnp.float32).at[0, :V].set(raw["b_out"])

    # Embedding table, VMEM-resident, indexed on the (untiled) major dim.
    emb = jnp.zeros((V, 1, LANE), jnp.float32).at[:, 0, :H].set(raw["embedding"])

    return {
        "hidden_size": H, "output_size": V, "k256": k256,
        "emb": emb, "w_gru": w_gru, "b_gru": b_gru,
        "w_out": w_out, "b_out": b_out,
    }


# ----------------------------------------------------------------------------
# Pure-JAX reference (mirrors the kernel numerics: bf16 weights, f32 gate math)
# ----------------------------------------------------------------------------
def reference_decoder(raw, tokens, hidden):
    H = raw["hidden_size"]
    bf = lambda a: a.astype(jnp.bfloat16).astype(jnp.float32)
    w_ih, w_hh, w_out = bf(raw["w_ih"]), bf(raw["w_hh"]), bf(raw["w_out"])
    b_ih, b_hh, b_out = raw["b_ih"], raw["b_hh"], raw["b_out"]
    emb = raw["embedding"]

    h = hidden.reshape(1, H)
    outs = []
    for t in range(int(tokens.shape[0])):
        x = jnp.maximum(emb[tokens[t]].reshape(1, H), 0.0)
        gi = bf(x) @ w_ih.T + b_ih
        gh = bf(h) @ w_hh.T + b_hh
        r = jax.nn.sigmoid(gi[:, :H] + gh[:, :H])
        z = jax.nn.sigmoid(gi[:, H:2 * H] + gh[:, H:2 * H])
        n = jnp.tanh(gi[:, 2 * H:] + r * gh[:, 2 * H:])
        h = (1.0 - z) * n + z * h
        logits = bf(h) @ w_out.T + b_out
        outs.append(jax.nn.log_softmax(logits, axis=-1))
    return jnp.concatenate(outs, axis=0), h.reshape(1, 1, H)


# ----------------------------------------------------------------------------
if __name__ == "__main__":
    hidden_size = 32     # H
    output_size = 40     # vocab V
    seq_len = 8          # T decode steps fused in one kernel invocation

    key = jax.random.PRNGKey(0)
    k_param, k_tok = jax.random.split(key)
    raw = init_raw_params(k_param, hidden_size, output_size)

    tokens = jax.random.randint(k_tok, (seq_len,), 0, output_size, dtype=jnp.int32)
    hidden0 = jnp.zeros((1, 1, hidden_size), jnp.float32)   # initHidden

    ref_logp, ref_h = reference_decoder(raw, tokens, hidden0)

    # Test the generation-appropriate packing AND the alternate layout so both
    # the 256-deep-MXU (v6e/v7x) and 128-deep-MXU (v5e) code paths are verified.
    default_layout = _default_k256()
    for k256 in (default_layout, not default_layout):
        packed = pack_decoder_params(raw, k256=k256)
        run_seq = jax.jit(lambda tok, h, p=packed: decoder_decode_sequence(p, tok, h))
        logp_seq, h_seq = run_seq(tokens, hidden0)
        jax.block_until_ready((logp_seq, h_seq))

        assert logp_seq.shape == (seq_len, output_size)
        assert h_seq.shape == (1, 1, hidden_size)
        err_logp = float(jnp.max(jnp.abs(logp_seq - ref_logp)))
        err_h = float(jnp.max(jnp.abs(h_seq - ref_h)))
        assert err_logp < 2e-2 and err_h < 2e-2, (k256, err_logp, err_h)
        assert bool(jnp.all(jnp.isfinite(logp_seq)))

    # Single-step call matching the PyTorch forward(input, hidden) contract.
    packed = pack_decoder_params(raw)
    run_step = jax.jit(lambda tok, h, p=packed: decoder_forward(p, tok, h))
    logp_1, h_1 = run_step(tokens[0], hidden0)
    jax.block_until_ready((logp_1, h_1))
    assert logp_1.shape == (1, output_size)
    assert h_1.shape == (1, 1, hidden_size)
    err_step = float(jnp.max(jnp.abs(logp_1[0] - ref_logp[0])))
    assert err_step < 2e-2, err_step

    print("KERNEL_OK")
</pallas_src>

<mosaic_0001>
module attributes {stable_mosaic.version = 11 : i64} {
  func.func @kernel(%arg0: memref<8xi32, #tpu.memory_space<smem>>, %arg1: memref<40x1x128xf32, #tpu.memory_space<vmem>>, %arg2: memref<256x512xbf16, #tpu.memory_space<vmem>>, %arg3: memref<1x512xf32, #tpu.memory_space<vmem>>, %arg4: memref<128x128xbf16, #tpu.memory_space<vmem>>, %arg5: memref<1x128xf32, #tpu.memory_space<vmem>>, %arg6: memref<1x128xf32, #tpu.memory_space<vmem>>, %arg7: memref<8x128xf32, #tpu.memory_space<vmem>>, %arg8: memref<1x128xf32, #tpu.memory_space<vmem>>, %arg9: memref<1x256xbf16, #tpu.memory_space<vmem>>) attributes {dimension_semantics = [], scalar_prefetch = 0 : i64, scratch_operands = 1 : i64, tpu.core_type = #tpu.core_type<tc>} {
    %c0 = arith.constant 0 : index
    %c0_0 = arith.constant 0 : index
    %0 = vector.load %arg2[%c0, %c0_0] : memref<256x512xbf16, #tpu.memory_space<vmem>>, vector<256x512xbf16>
    %c0_1 = arith.constant 0 : index
    %c0_2 = arith.constant 0 : index
    %1 = vector.load %arg3[%c0_1, %c0_2] : memref<1x512xf32, #tpu.memory_space<vmem>>, vector<1x512xf32>
    %c0_3 = arith.constant 0 : index
    %c0_4 = arith.constant 0 : index
    %2 = vector.load %arg4[%c0_3, %c0_4] : memref<128x128xbf16, #tpu.memory_space<vmem>>, vector<128x128xbf16>
    %c0_5 = arith.constant 0 : index
    %c0_6 = arith.constant 0 : index
    %3 = vector.load %arg5[%c0_5, %c0_6] : memref<1x128xf32, #tpu.memory_space<vmem>>, vector<1x128xf32>
    %4 = tpu.iota {dimensions = array<i32: 0>} : vector<8x1xi32>
    %c0_7 = arith.constant 0 : index
    %c0_8 = arith.constant 0 : index
    %5 = vector.load %arg6[%c0_7, %c0_8] : memref<1x128xf32, #tpu.memory_space<vmem>>, vector<1x128xf32>
    %6 = arith.truncf %5 : vector<1x128xf32> to vector<1x128xbf16>
    %c0_9 = arith.constant 0 : index
    %c128 = arith.constant 128 : index
    %7 = vector.load %arg9[%c0_9, %c128] : memref<1x256xbf16, #tpu.memory_space<vmem>>, vector<1x128xbf16>
    tpu.vector_store %arg9[%c0_9, %c128], %6 {strides = array<i32>} : memref<1x256xbf16, #tpu.memory_space<vmem>>, vector<1x128xbf16>,
    %cst = arith.constant 0.000000e+00 : f32
    %8 = vector.broadcast %cst : f32 to vector<8x128xf32>
    %c0_i32 = arith.constant 0 : i32
    %9 = arith.index_cast %c0_i32 : i32 to index
    %10 = memref.load %arg0[%9] : memref<8xi32, #tpu.memory_space<smem>>
    %11 = arith.index_cast %10 : i32 to index
    %c0_10 = arith.constant 0 : index
    %c0_11 = arith.constant 0 : index
    %12 = vector.load %arg1[%11, %c0_10, %c0_11] : memref<40x1x128xf32, #tpu.memory_space<vmem>>, vector<1x1x128xf32>
    %13 = vector.shape_cast %12 : vector<1x1x128xf32> to vector<1x128xf32>
    %cst_12 = arith.constant 0.000000e+00 : f32
    %14 = vector.broadcast %cst_12 : f32 to vector<1x128xf32>
    %15 = arith.maximumf %13, %14 : vector<1x128xf32>
    %16 = arith.truncf %15 : vector<1x128xf32> to vector<1x128xbf16>
    %c0_13 = arith.constant 0 : index
    %c0_14 = arith.constant 0 : index
    %17 = vector.load %arg9[%c0_13, %c0_14] : memref<1x256xbf16, #tpu.memory_space<vmem>>, vector<1x128xbf16>
    tpu.vector_store %arg9[%c0_13, %c0_14], %16 {strides = array<i32>} : memref<1x256xbf16, #tpu.memory_space<vmem>>, vector<1x128xbf16>,
    %c0_15 = arith.constant 0 : index
    %c0_16 = arith.constant 0 : index
    %18 = vector.load %arg9[%c0_15, %c0_16] : memref<1x256xbf16, #tpu.memory_space<vmem>>, vector<1x256xbf16>
    %cst_17 = arith.constant dense<0.000000e+00> : vector<1x512xf32>
    %19 = tpu.matmul %18, %0, %cst_17 {dimension_numbers = #tpu.dot_dimension_numbers<[1], [0], [0], [1], [0, 0, 1, 1], [], []>} : vector<1x256xbf16>, vector<256x512xbf16>, vector<1x512xf32> -> vector<1x512xf32>
    %20 = arith.addf %19, %1 : vector<1x512xf32>
    %21 = vector.extract_strided_slice %20 {offsets = [0, 0], sizes = [1, 128], strides = [1, 1]} : vector<1x512xf32> to vector<1x128xf32>
    %22 = arith.negf %21 : vector<1x128xf32>
    %23 = math.exp %22 : vector<1x128xf32>
    %cst_18 = arith.constant 1.000000e+00 : f32
    %24 = vector.broadcast %cst_18 : f32 to vector<1x128xf32>
    %25 = arith.addf %24, %23 : vector<1x128xf32>
    %26 = arith.divf %24, %25 : vector<1x128xf32>
    %27 = vector.extract_strided_slice %20 {offsets = [0, 128], sizes = [1, 128], strides = [1, 1]} : vector<1x512xf32> to vector<1x128xf32>
    %28 = arith.negf %27 : vector<1x128xf32>
    %29 = math.exp %28 : vector<1x128xf32>
    %cst_19 = arith.constant 1.000000e+00 : f32
    %30 = vector.broadcast %cst_19 : f32 to vector<1x128xf32>
    %31 = arith.addf %30, %29 : vector<1x128xf32>
    %32 = arith.divf %30, %31 : vector<1x128xf32>
    %33 = vector.extract_strided_slice %20 {offsets = [0, 256], sizes = [1, 128], strides = [1, 1]} : vector<1x512xf32> to vector<1x128xf32>
    %34 = vector.extract_strided_slice %20 {offsets = [0, 384], sizes = [1, 128], strides = [1, 1]} : vector<1x512xf32> to vector<1x128xf32>
    %35 = arith.mulf %26, %34 : vector<1x128xf32>
    %36 = arith.addf %33, %35 : vector<1x128xf32>
    %37 = math.tanh %36 : vector<1x128xf32>
    %cst_20 = arith.constant 1.000000e+00 : f32
    %38 = vector.broadcast %cst_20 : f32 to vector<1x128xf32>
    %39 = arith.subf %38, %32 : vector<1x128xf32>
    %40 = arith.mulf %39, %37 : vector<1x128xf32>
    %41 = arith.mulf %32, %5 : vector<1x128xf32>
    %42 = arith.addf %40, %41 : vector<1x128xf32>
    %43 = arith.truncf %42 : vector<1x128xf32> to vector<1x128xbf16>
    %c0_21 = arith.constant 0 : index
    %c128_22 = arith.constant 128 : index
    %44 = vector.load %arg9[%c0_21, %c128_22] : memref<1x256xbf16, #tpu.memory_space<vmem>>, vector<1x128xbf16>
    tpu.vector_store %arg9[%c0_21, %c128_22], %43 {strides = array<i32>} : memref<1x256xbf16, #tpu.memory_space<vmem>>, vector<1x128xbf16>,
    %cst_23 = arith.constant dense<0.000000e+00> : vector<1x128xf32>
    %45 = tpu.matmul %43, %2, %cst_23 {dimension_numbers = #tpu.dot_dimension_numbers<[1], [0], [0], [1], [0, 0, 1, 1], [], []>} : vector<1x128xbf16>, vector<128x128xbf16>, vector<1x128xf32> -> vector<1x128xf32>
    %46 = arith.addf %45, %3 : vector<1x128xf32>
    %cst_24 = arith.constant dense<0xFF800000> : vector<1xf32>
    %47 = vector.multi_reduction <maximumf>, %46, %cst_24 [1] : vector<1x128xf32> to vector<1xf32>
    %48 = vector.shape_cast %47 : vector<1xf32> to vector<1x1xf32>
    %49 = vector.broadcast %48 : vector<1x1xf32> to vector<1x128xf32>
    %50 = arith.subf %46, %49 : vector<1x128xf32>
    %51 = math.exp %50 : vector<1x128xf32>
    %cst_25 = arith.constant dense<0.000000e+00> : vector<1xf32>
    %52 = vector.multi_reduction <add>, %51, %cst_25 [1] : vector<1x128xf32> to vector<1xf32>
    %53 = vector.shape_cast %52 : vector<1xf32> to vector<1x1xf32>
    %54 = math.log %53 : vector<1x1xf32>
    %55 = vector.broadcast %c0_i32 : i32 to vector<8x1xi32>
    %56 = arith.cmpi eq, %4, %55 : vector<8x1xi32>
    %57 = vector.broadcast %54 : vector<1x1xf32> to vector<1x128xf32>
    %58 = arith.subf %50, %57 : vector<1x128xf32>
    %59 = vector.shape_cast %56 : vector<8x1xi1> to vector<8x1xi1>
    %60 = vector.broadcast %59 : vector<8x1xi1> to vector<8x128xi1>
    %61 = vector.shape_cast %58 : vector<1x128xf32> to vector<1x128xf32>
    %62 = vector.broadcast %61 : vector<1x128xf32> to vector<8x128xf32>
    %63 = arith.select %60, %62, %8 : vector<8x128xi1>, vector<8x128xf32>
    %c1_i32 = arith.constant 1 : i32
    %64 = arith.index_cast %c1_i32 : i32 to index
    %65 = memref.load %arg0[%64] : memref<8xi32, #tpu.memory_space<smem>>
    %66 = arith.index_cast %65 : i32 to index
    %c0_26 = arith.constant 0 : index
    %c0_27 = arith.constant 0 : index
    %67 = vector.load %arg1[%66, %c0_26, %c0_27] : memref<40x1x128xf32, #tpu.memory_space<vmem>>, vector<1x1x128xf32>
    %68 = vector.shape_cast %67 : vector<1x1x128xf32> to vector<1x128xf32>
    %cst_28 = arith.constant 0.000000e+00 : f32
    %69 = vector.broadcast %cst_28 : f32 to vector<1x128xf32>
    %70 = arith.maximumf %68, %69 : vector<1x128xf32>
    %71 = arith.truncf %70 : vector<1x128xf32> to vector<1x128xbf16>
    %c0_29 = arith.constant 0 : index
    %c0_30 = arith.constant 0 : index
    %72 = vector.load %arg9[%c0_29, %c0_30] : memref<1x256xbf16, #tpu.memory_space<vmem>>, vector<1x128xbf16>
    tpu.vector_store %arg9[%c0_29, %c0_30], %71 {strides = array<i32>} : memref<1x256xbf16, #tpu.memory_space<vmem>>, vector<1x128xbf16>,
    %c0_31 = arith.constant 0 : index
    %c0_32 = arith.constant 0 : index
    %73 = vector.load %arg9[%c0_31, %c0_32] : memref<1x256xbf16, #tpu.memory_space<vmem>>, vector<1x256xbf16>
    %cst_33 = arith.constant dense<0.000000e+00> : vector<1x512xf32>
    %74 = tpu.matmul %73, %0, %cst_33 {dimension_numbers = #tpu.dot_dimension_numbers<[1], [0], [0], [1], [0, 0, 1, 1], [], []>} : vector<1x256xbf16>, vector<256x512xbf16>, vector<1x512xf32> -> vector<1x512xf32>
    %75 = arith.addf %74, %1 : vector<1x512xf32>
    %76 = vector.extract_strided_slice %75 {offsets = [0, 0], sizes = [1, 128], strides = [1, 1]} : vector<1x512xf32> to vector<1x128xf32>
    %77 = arith.negf %76 : vector<1x128xf32>
    %78 = math.exp %77 : vector<1x128xf32>
    %cst_34 = arith.constant 1.000000e+00 : f32
    %79 = vector.broadcast %cst_34 : f32 to vector<1x128xf32>
    %80 = arith.addf %79, %78 : vector<1x128xf32>
    %81 = arith.divf %79, %80 : vector<1x128xf32>
    %82 = vector.extract_strided_slice %75 {offsets = [0, 128], sizes = [1, 128], strides = [1, 1]} : vector<1x512xf32> to vector<1x128xf32>
    %83 = arith.negf %82 : vector<1x128xf32>
    %84 = math.exp %83 : vector<1x128xf32>
    %cst_35 = arith.constant 1.000000e+00 : f32
    %85 = vector.broadcast %cst_35 : f32 to vector<1x128xf32>
    %86 = arith.addf %85, %84 : vector<1x128xf32>
    %87 = arith.divf %85, %86 : vector<1x128xf32>
    %88 = vector.extract_strided_slice %75 {offsets = [0, 256], sizes = [1, 128], strides = [1, 1]} : vector<1x512xf32> to vector<1x128xf32>
    %89 = vector.extract_strided_slice %75 {offsets = [0, 384], sizes = [1, 128], strides = [1, 1]} : vector<1x512xf32> to vector<1x128xf32>
    %90 = arith.mulf %81, %89 : vector<1x128xf32>
    %91 = arith.addf %88, %90 : vector<1x128xf32>
    %92 = math.tanh %91 : vector<1x128xf32>
    %cst_36 = arith.constant 1.000000e+00 : f32
    %93 = vector.broadcast %cst_36 : f32 to vector<1x128xf32>
    %94 = arith.subf %93, %87 : vector<1x128xf32>
    %95 = arith.mulf %94, %92 : vector<1x128xf32>
    %96 = arith.mulf %87, %42 : vector<1x128xf32>
    %97 = arith.addf %95, %96 : vector<1x128xf32>
    %98 = arith.truncf %97 : vector<1x128xf32> to vector<1x128xbf16>
    %c0_37 = arith.constant 0 : index
    %c128_38 = arith.constant 128 : index
    %99 = vector.load %arg9[%c0_37, %c128_38] : memref<1x256xbf16, #tpu.memory_space<vmem>>, vector<1x128xbf16>
    tpu.vector_store %arg9[%c0_37, %c128_38], %98 {strides = array<i32>} : memref<1x256xbf16, #tpu.memory_space<vmem>>, vector<1x128xbf16>,
    %cst_39 = arith.constant dense<0.000000e+00> : vector<1x128xf32>
    %100 = tpu.matmul %98, %2, %cst_39 {dimension_numbers = #tpu.dot_dimension_numbers<[1], [0], [0], [1], [0, 0, 1, 1], [], []>} : vector<1x128xbf16>, vector<128x128xbf16>, vector<1x128xf32> -> vector<1x128xf32>
    %101 = arith.addf %100, %3 : vector<1x128xf32>
    %cst_40 = arith.constant dense<0xFF800000> : vector<1xf32>
    %102 = vector.multi_reduction <maximumf>, %101, %cst_40 [1] : vector<1x128xf32> to vector<1xf32>
    %103 = vector.shape_cast %102 : vector<1xf32> to vector<1x1xf32>
    %104 = vector.broadcast %103 : vector<1x1xf32> to vector<1x128xf32>
    %105 = arith.subf %101, %104 : vector<1x128xf32>
    %106 = math.exp %105 : vector<1x128xf32>
    %cst_41 = arith.constant dense<0.000000e+00> : vector<1xf32>
    %107 = vector.multi_reduction <add>, %106, %cst_41 [1] : vector<1x128xf32> to vector<1xf32>
    %108 = vector.shape_cast %107 : vector<1xf32> to vector<1x1xf32>
    %109 = math.log %108 : vector<1x1xf32>
    %110 = vector.broadcast %c1_i32 : i32 to vector<8x1xi32>
    %111 = arith.cmpi eq, %4, %110 : vector<8x1xi32>
    %112 = vector.broadcast %109 : vector<1x1xf32> to vector<1x128xf32>
    %113 = arith.subf %105, %112 : vector<1x128xf32>
    %114 = vector.shape_cast %111 : vector<8x1xi1> to vector<8x1xi1>
    %115 = vector.broadcast %114 : vector<8x1xi1> to vector<8x128xi1>
    %116 = vector.shape_cast %113 : vector<1x128xf32> to vector<1x128xf32>
    %117 = vector.broadcast %116 : vector<1x128xf32> to vector<8x128xf32>
    %118 = arith.select %115, %117, %63 : vector<8x128xi1>, vector<8x128xf32>
    %c2_i32 = arith.constant 2 : i32
    %119 = arith.index_cast %c2_i32 : i32 to index
    %120 = memref.load %arg0[%119] : memref<8xi32, #tpu.memory_space<smem>>
    %121 = arith.index_cast %120 : i32 to index
    %c0_42 = arith.constant 0 : index
    %c0_43 = arith.constant 0 : index
    %122 = vector.load %arg1[%121, %c0_42, %c0_43] : memref<40x1x128xf32, #tpu.memory_space<vmem>>, vector<1x1x128xf32>
    %123 = vector.shape_cast %122 : vector<1x1x128xf32> to vector<1x128xf32>
    %cst_44 = arith.constant 0.000000e+00 : f32
    %124 = vector.broadcast %cst_44 : f32 to vector<1x128xf32>
    %125 = arith.maximumf %123, %124 : vector<1x128xf32>
    %126 = arith.truncf %125 : vector<1x128xf32> to vector<1x128xbf16>
    %c0_45 = arith.constant 0 : index
    %c0_46 = arith.constant 0 : index
    %127 = vector.load %arg9[%c0_45, %c0_46] : memref<1x256xbf16, #tpu.memory_space<vmem>>, vector<1x128xbf16>
    tpu.vector_store %arg9[%c0_45, %c0_46], %126 {strides = array<i32>} : memref<1x256xbf16, #tpu.memory_space<vmem>>, vector<1x128xbf16>,
    %c0_47 = arith.constant 0 : index
    %c0_48 = arith.constant 0 : index
    %128 = vector.load %arg9[%c0_47, %c0_48] : memref<1x256xbf16, #tpu.memory_space<vmem>>, vector<1x256xbf16>
    %cst_49 = arith.constant dense<0.000000e+00> : vector<1x512xf32>
    %129 = tpu.matmul %128, %0, %cst_49 {dimension_numbers = #tpu.dot_dimension_numbers<[1], [0], [0], [1], [0, 0, 1, 1], [], []>} : vector<1x256xbf16>, vector<256x512xbf16>, vector<1x512xf32> -> vector<1x512xf32>
    %130 = arith.addf %129, %1 : vector<1x512xf32>
    %131 = vector.extract_strided_slice %130 {offsets = [0, 0], sizes = [1, 128], strides = [1, 1]} : vector<1x512xf32> to vector<1x128xf32>
    %132 = arith.negf %131 : vector<1x128xf32>
    %133 = math.exp %132 : vector<1x128xf32>
    %cst_50 = arith.constant 1.000000e+00 : f32
    %134 = vector.broadcast %cst_50 : f32 to vector<1x128xf32>
    %135 = arith.addf %134, %133 : vector<1x128xf32>
    %136 = arith.divf %134, %135 : vector<1x128xf32>
    %137 = vector.extract_strided_slice %130 {offsets = [0, 128], sizes = [1, 128], strides = [1, 1]} : vector<1x512xf32> to vector<1x128xf32>
    %138 = arith.negf %137 : vector<1x128xf32>
    %139 = math.exp %138 : vector<1x128xf32>
    %cst_51 = arith.constant 1.000000e+00 : f32
    %140 = vector.broadcast %cst_51 : f32 to vector<1x128xf32>
    %141 = arith.addf %140, %139 : vector<1x128xf32>
    %142 = arith.divf %140, %141 : vector<1x128xf32>
    %143 = vector.extract_strided_slice %130 {offsets = [0, 256], sizes = [1, 128], strides = [1, 1]} : vector<1x512xf32> to vector<1x128xf32>
    %144 = vector.extract_strided_slice %130 {offsets = [0, 384], sizes = [1, 128], strides = [1, 1]} : vector<1x512xf32> to vector<1x128xf32>
    %145 = arith.mulf %136, %144 : vector<1x128xf32>
    %146 = arith.addf %143, %145 : vector<1x128xf32>
    %147 = math.tanh %146 : vector<1x128xf32>
    %cst_52 = arith.constant 1.000000e+00 : f32
    %148 = vector.broadcast %cst_52 : f32 to vector<1x128xf32>
    %149 = arith.subf %148, %142 : vector<1x128xf32>
    %150 = arith.mulf %149, %147 : vector<1x128xf32>
    %151 = arith.mulf %142, %97 : vector<1x128xf32>
    %152 = arith.addf %150, %151 : vector<1x128xf32>
    %153 = arith.truncf %152 : vector<1x128xf32> to vector<1x128xbf16>
    %c0_53 = arith.constant 0 : index
    %c128_54 = arith.constant 128 : index
    %154 = vector.load %arg9[%c0_53, %c128_54] : memref<1x256xbf16, #tpu.memory_space<vmem>>, vector<1x128xbf16>
    tpu.vector_store %arg9[%c0_53, %c128_54], %153 {strides = array<i32>} : memref<1x256xbf16, #tpu.memory_space<vmem>>, vector<1x128xbf16>,
    %cst_55 = arith.constant dense<0.000000e+00> : vector<1x128xf32>
    %155 = tpu.matmul %153, %2, %cst_55 {dimension_numbers = #tpu.dot_dimension_numbers<[1], [0], [0], [1], [0, 0, 1, 1], [], []>} : vector<1x128xbf16>, vector<128x128xbf16>, vector<1x128xf32> -> vector<1x128xf32>
    %156 = arith.addf %155, %3 : vector<1x128xf32>
    %cst_56 = arith.constant dense<0xFF800000> : vector<1xf32>
    %157 = vector.multi_reduction <maximumf>, %156, %cst_56 [1] : vector<1x128xf32> to vector<1xf32>
    %158 = vector.shape_cast %157 : vector<1xf32> to vector<1x1xf32>
    %159 = vector.broadcast %158 : vector<1x1xf32> to vector<1x128xf32>
    %160 = arith.subf %156, %159 : vector<1x128xf32>
    %161 = math.exp %160 : vector<1x128xf32>
    %cst_57 = arith.constant dense<0.000000e+00> : vector<1xf32>
    %162 = vector.multi_reduction <add>, %161, %cst_57 [1] : vector<1x128xf32> to vector<1xf32>
    %163 = vector.shape_cast %162 : vector<1xf32> to vector<1x1xf32>
    %164 = math.log %163 : vector<1x1xf32>
    %165 = vector.broadcast %c2_i32 : i32 to vector<8x1xi32>
    %166 = arith.cmpi eq, %4, %165 : vector<8x1xi32>
    %167 = vector.broadcast %164 : vector<1x1xf32> to vector<1x128xf32>
    %168 = arith.subf %160, %167 : vector<1x128xf32>
    %169 = vector.shape_cast %166 : vector<8x1xi1> to vector<8x1xi1>
    %170 = vector.broadcast %169 : vector<8x1xi1> to vector<8x128xi1>
    %171 = vector.shape_cast %168 : vector<1x128xf32> to vector<1x128xf32>
    %172 = vector.broadcast %171 : vector<1x128xf32> to vector<8x128xf32>
    %173 = arith.select %170, %172, %118 : vector<8x128xi1>, vector<8x128xf32>
    %c3_i32 = arith.constant 3 : i32
    %174 = arith.index_cast %c3_i32 : i32 to index
    %175 = memref.load %arg0[%174] : memref<8xi32, #tpu.memory_space<smem>>
    %176 = arith.index_cast %175 : i32 to index
    %c0_58 = arith.constant 0 : index
    %c0_59 = arith.constant 0 : index
    %177 = vector.load %arg1[%176, %c0_58, %c0_59] : memref<40x1x128xf32, #tpu.memory_space<vmem>>, vector<1x1x128xf32>
    %178 = vector.shape_cast %177 : vector<1x1x128xf32> to vector<1x128xf32>
    %cst_60 = arith.constant 0.000000e+00 : f32
    %179 = vector.broadcast %cst_60 : f32 to vector<1x128xf32>
    %180 = arith.maximumf %178, %179 : vector<1x128xf32>
    %181 = arith.truncf %180 : vector<1x128xf32> to vector<1x128xbf16>
    %c0_61 = arith.constant 0 : index
    %c0_62 = arith.constant 0 : index
    %182 = vector.load %arg9[%c0_61, %c0_62] : memref<1x256xbf16, #tpu.memory_space<vmem>>, vector<1x128xbf16>
    tpu.vector_store %arg9[%c0_61, %c0_62], %181 {strides = array<i32>} : memref<1x256xbf16, #tpu.memory_space<vmem>>, vector<1x128xbf16>,
    %c0_63 = arith.constant 0 : index
    %c0_64 = arith.constant 0 : index
    %183 = vector.load %arg9[%c0_63, %c0_64] : memref<1x256xbf16, #tpu.memory_space<vmem>>, vector<1x256xbf16>
    %cst_65 = arith.constant dense<0.000000e+00> : vector<1x512xf32>
    %184 = tpu.matmul %183, %0, %cst_65 {dimension_numbers = #tpu.dot_dimension_numbers<[1], [0], [0], [1], [0, 0, 1, 1], [], []>} : vector<1x256xbf16>, vector<256x512xbf16>, vector<1x512xf32> -> vector<1x512xf32>
    %185 = arith.addf %184, %1 : vector<1x512xf32>
    %186 = vector.extract_strided_slice %185 {offsets = [0, 0], sizes = [1, 128], strides = [1, 1]} : vector<1x512xf32> to vector<1x128xf32>
    %187 = arith.negf %186 : vector<1x128xf32>
    %188 = math.exp %187 : vector<1x128xf32>
    %cst_66 = arith.constant 1.000000e+00 : f32
    %189 = vector.broadcast %cst_66 : f32 to vector<1x128xf32>
    %190 = arith.addf %189, %188 : vector<1x128xf32>
    %191 = arith.divf %189, %190 : vector<1x128xf32>
    %192 = vector.extract_strided_slice %185 {offsets = [0, 128], sizes = [1, 128], strides = [1, 1]} : vector<1x512xf32> to vector<1x128xf32>
    %193 = arith.negf %192 : vector<1x128xf32>
    %194 = math.exp %193 : vector<1x128xf32>
    %cst_67 = arith.constant 1.000000e+00 : f32
    %195 = vector.broadcast %cst_67 : f32 to vector<1x128xf32>
    %196 = arith.addf %195, %194 : vector<1x128xf32>
    %197 = arith.divf %195, %196 : vector<1x128xf32>
    %198 = vector.extract_strided_slice %185 {offsets = [0, 256], sizes = [1, 128], strides = [1, 1]} : vector<1x512xf32> to vector<1x128xf32>
    %199 = vector.extract_strided_slice %185 {offsets = [0, 384], sizes = [1, 128], strides = [1, 1]} : vector<1x512xf32> to vector<1x128xf32>
    %200 = arith.mulf %191, %199 : vector<1x128xf32>
    %201 = arith.addf %198, %200 : vector<1x128xf32>
    %202 = math.tanh %201 : vector<1x128xf32>
    %cst_68 = arith.constant 1.000000e+00 : f32
    %203 = vector.broadcast %cst_68 : f32 to vector<1x128xf32>
    %204 = arith.subf %203, %197 : vector<1x128xf32>
    %205 = arith.mulf %204, %202 : vector<1x128xf32>
    %206 = arith.mulf %197, %152 : vector<1x128xf32>
    %207 = arith.addf %205, %206 : vector<1x128xf32>
    %208 = arith.truncf %207 : vector<1x128xf32> to vector<1x128xbf16>
    %c0_69 = arith.constant 0 : index
    %c128_70 = arith.constant 128 : index
    %209 = vector.load %arg9[%c0_69, %c128_70] : memref<1x256xbf16, #tpu.memory_space<vmem>>, vector<1x128xbf16>
    tpu.vector_store %arg9[%c0_69, %c128_70], %208 {strides = array<i32>} : memref<1x256xbf16, #tpu.memory_space<vmem>>, vector<1x128xbf16>,
    %cst_71 = arith.constant dense<0.000000e+00> : vector<1x128xf32>
    %210 = tpu.matmul %208, %2, %cst_71 {dimension_numbers = #tpu.dot_dimension_numbers<[1], [0], [0], [1], [0, 0, 1, 1], [], []>} : vector<1x128xbf16>, vector<128x128xbf16>, vector<1x128xf32> -> vector<1x128xf32>
    %211 = arith.addf %210, %3 : vector<1x128xf32>
    %cst_72 = arith.constant dense<0xFF800000> : vector<1xf32>
    %212 = vector.multi_reduction <maximumf>, %211, %cst_72 [1] : vector<1x128xf32> to vector<1xf32>
    %213 = vector.shape_cast %212 : vector<1xf32> to vector<1x1xf32>
    %214 = vector.broadcast %213 : vector<1x1xf32> to vector<1x128xf32>
    %215 = arith.subf %211, %214 : vector<1x128xf32>
    %216 = math.exp %215 : vector<1x128xf32>
    %cst_73 = arith.constant dense<0.000000e+00> : vector<1xf32>
    %217 = vector.multi_reduction <add>, %216, %cst_73 [1] : vector<1x128xf32> to vector<1xf32>
    %218 = vector.shape_cast %217 : vector<1xf32> to vector<1x1xf32>
    %219 = math.log %218 : vector<1x1xf32>
    %220 = vector.broadcast %c3_i32 : i32 to vector<8x1xi32>
    %221 = arith.cmpi eq, %4, %220 : vector<8x1xi32>
    %222 = vector.broadcast %219 : vector<1x1xf32> to vector<1x128xf32>
    %223 = arith.subf %215, %222 : vector<1x128xf32>
    %224 = vector.shape_cast %221 : vector<8x1xi1> to vector<8x1xi1>
    %225 = vector.broadcast %224 : vector<8x1xi1> to vector<8x128xi1>
    %226 = vector.shape_cast %223 : vector<1x128xf32> to vector<1x128xf32>
    %227 = vector.broadcast %226 : vector<1x128xf32> to vector<8x128xf32>
    %228 = arith.select %225, %227, %173 : vector<8x128xi1>, vector<8x128xf32>
    %c4_i32 = arith.constant 4 : i32
    %229 = arith.index_cast %c4_i32 : i32 to index
    %230 = memref.load %arg0[%229] : memref<8xi32, #tpu.memory_space<smem>>
    %231 = arith.index_cast %230 : i32 to index
    %c0_74 = arith.constant 0 : index
    %c0_75 = arith.constant 0 : index
    %232 = vector.load %arg1[%231, %c0_74, %c0_75] : memref<40x1x128xf32, #tpu.memory_space<vmem>>, vector<1x1x128xf32>
    %233 = vector.shape_cast %232 : vector<1x1x128xf32> to vector<1x128xf32>
    %cst_76 = arith.constant 0.000000e+00 : f32
    %234 = vector.broadcast %cst_76 : f32 to vector<1x128xf32>
    %235 = arith.maximumf %233, %234 : vector<1x128xf32>
    %236 = arith.truncf %235 : vector<1x128xf32> to vector<1x128xbf16>
    %c0_77 = arith.constant 0 : index
    %c0_78 = arith.constant 0 : index
    %237 = vector.load %arg9[%c0_77, %c0_78] : memref<1x256xbf16, #tpu.memory_space<vmem>>, vector<1x128xbf16>
    tpu.vector_store %arg9[%c0_77, %c0_78], %236 {strides = array<i32>} : memref<1x256xbf16, #tpu.memory_space<vmem>>, vector<1x128xbf16>,
    %c0_79 = arith.constant 0 : index
    %c0_80 = arith.constant 0 : index
    %238 = vector.load %arg9[%c0_79, %c0_80] : memref<1x256xbf16, #tpu.memory_space<vmem>>, vector<1x256xbf16>
    %cst_81 = arith.constant dense<0.000000e+00> : vector<1x512xf32>
    %239 = tpu.matmul %238, %0, %cst_81 {dimension_numbers = #tpu.dot_dimension_numbers<[1], [0], [0], [1], [0, 0, 1, 1], [], []>} : vector<1x256xbf16>, vector<256x512xbf16>, vector<1x512xf32> -> vector<1x512xf32>
    %240 = arith.addf %239, %1 : vector<1x512xf32>
    %241 = vector.extract_strided_slice %240 {offsets = [0, 0], sizes = [1, 128], strides = [1, 1]} : vector<1x512xf32> to vector<1x128xf32>
    %242 = arith.negf %241 : vector<1x128xf32>
    %243 = math.exp %242 : vector<1x128xf32>
    %cst_82 = arith.constant 1.000000e+00 : f32
    %244 = vector.broadcast %cst_82 : f32 to vector<1x128xf32>
    %245 = arith.addf %244, %243 : vector<1x128xf32>
    %246 = arith.divf %244, %245 : vector<1x128xf32>
    %247 = vector.extract_strided_slice %240 {offsets = [0, 128], sizes = [1, 128], strides = [1, 1]} : vector<1x512xf32> to vector<1x128xf32>
    %248 = arith.negf %247 : vector<1x128xf32>
    %249 = math.exp %248 : vector<1x128xf32>
    %cst_83 = arith.constant 1.000000e+00 : f32
    %250 = vector.broadcast %cst_83 : f32 to vector<1x128xf32>
    %251 = arith.addf %250, %249 : vector<1x128xf32>
    %252 = arith.divf %250, %251 : vector<1x128xf32>
    %253 = vector.extract_strided_slice %240 {offsets = [0, 256], sizes = [1, 128], strides = [1, 1]} : vector<1x512xf32> to vector<1x128xf32>
    %254 = vector.extract_strided_slice %240 {offsets = [0, 384], sizes = [1, 128], strides = [1, 1]} : vector<1x512xf32> to vector<1x128xf32>
    %255 = arith.mulf %246, %254 : vector<1x128xf32>
    %256 = arith.addf %253, %255 : vector<1x128xf32>
    %257 = math.tanh %256 : vector<1x128xf32>
    %cst_84 = arith.constant 1.000000e+00 : f32
    %258 = vector.broadcast %cst_84 : f32 to vector<1x128xf32>
    %259 = arith.subf %258, %252 : vector<1x128xf32>
    %260 = arith.mulf %259, %257 : vector<1x128xf32>
    %261 = arith.mulf %252, %207 : vector<1x128xf32>
    %262 = arith.addf %260, %261 : vector<1x128xf32>
    %263 = arith.truncf %262 : vector<1x128xf32> to vector<1x128xbf16>
    %c0_85 = arith.constant 0 : index
    %c128_86 = arith.constant 128 : index
    %264 = vector.load %arg9[%c0_85, %c128_86] : memref<1x256xbf16, #tpu.memory_space<vmem>>, vector<1x128xbf16>
    tpu.vector_store %arg9[%c0_85, %c128_86], %263 {strides = array<i32>} : memref<1x256xbf16, #tpu.memory_space<vmem>>, vector<1x128xbf16>,
    %cst_87 = arith.constant dense<0.000000e+00> : vector<1x128xf32>
    %265 = tpu.matmul %263, %2, %cst_87 {dimension_numbers = #tpu.dot_dimension_numbers<[1], [0], [0], [1], [0, 0, 1, 1], [], []>} : vector<1x128xbf16>, vector<128x128xbf16>, vector<1x128xf32> -> vector<1x128xf32>
    %266 = arith.addf %265, %3 : vector<1x128xf32>
    %cst_88 = arith.constant dense<0xFF800000> : vector<1xf32>
    %267 = vector.multi_reduction <maximumf>, %266, %cst_88 [1] : vector<1x128xf32> to vector<1xf32>
    %268 = vector.shape_cast %267 : vector<1xf32> to vector<1x1xf32>
    %269 = vector.broadcast %268 : vector<1x1xf32> to vector<1x128xf32>
    %270 = arith.subf %266, %269 : vector<1x128xf32>
    %271 = math.exp %270 : vector<1x128xf32>
    %cst_89 = arith.constant dense<0.000000e+00> : vector<1xf32>
    %272 = vector.multi_reduction <add>, %271, %cst_89 [1] : vector<1x128xf32> to vector<1xf32>
    %273 = vector.shape_cast %272 : vector<1xf32> to vector<1x1xf32>
    %274 = math.log %273 : vector<1x1xf32>
    %275 = vector.broadcast %c4_i32 : i32 to vector<8x1xi32>
    %276 = arith.cmpi eq, %4, %275 : vector<8x1xi32>
    %277 = vector.broadcast %274 : vector<1x1xf32> to vector<1x128xf32>
    %278 = arith.subf %270, %277 : vector<1x128xf32>
    %279 = vector.shape_cast %276 : vector<8x1xi1> to vector<8x1xi1>
    %280 = vector.broadcast %279 : vector<8x1xi1> to vector<8x128xi1>
    %281 = vector.shape_cast %278 : vector<1x128xf32> to vector<1x128xf32>
    %282 = vector.broadcast %281 : vector<1x128xf32> to vector<8x128xf32>
    %283 = arith.select %280, %282, %228 : vector<8x128xi1>, vector<8x128xf32>
    %c5_i32 = arith.constant 5 : i32
    %284 = arith.index_cast %c5_i32 : i32 to index
    %285 = memref.load %arg0[%284] : memref<8xi32, #tpu.memory_space<smem>>
    %286 = arith.index_cast %285 : i32 to index
    %c0_90 = arith.constant 0 : index
    %c0_91 = arith.constant 0 : index
    %287 = vector.load %arg1[%286, %c0_90, %c0_91] : memref<40x1x128xf32, #tpu.memory_space<vmem>>, vector<1x1x128xf32>
    %288 = vector.shape_cast %287 : vector<1x1x128xf32> to vector<1x128xf32>
    %cst_92 = arith.constant 0.000000e+00 : f32
    %289 = vector.broadcast %cst_92 : f32 to vector<1x128xf32>
    %290 = arith.maximumf %288, %289 : vector<1x128xf32>
    %291 = arith.truncf %290 : vector<1x128xf32> to vector<1x128xbf16>
    %c0_93 = arith.constant 0 : index
    %c0_94 = arith.constant 0 : index
    %292 = vector.load %arg9[%c0_93, %c0_94] : memref<1x256xbf16, #tpu.memory_space<vmem>>, vector<1x128xbf16>
    tpu.vector_store %arg9[%c0_93, %c0_94], %291 {strides = array<i32>} : memref<1x256xbf16, #tpu.memory_space<vmem>>, vector<1x128xbf16>,
    %c0_95 = arith.constant 0 : index
    %c0_96 = arith.constant 0 : index
    %293 = vector.load %arg9[%c0_95, %c0_96] : memref<1x256xbf16, #tpu.memory_space<vmem>>, vector<1x256xbf16>
    %cst_97 = arith.constant dense<0.000000e+00> : vector<1x512xf32>
    %294 = tpu.matmul %293, %0, %cst_97 {dimension_numbers = #tpu.dot_dimension_numbers<[1], [0], [0], [1], [0, 0, 1, 1], [], []>} : vector<1x256xbf16>, vector<256x512xbf16>, vector<1x512xf32> -> vector<1x512xf32>
    %295 = arith.addf %294, %1 : vector<1x512xf32>
    %296 = vector.extract_strided_slice %295 {offsets = [0, 0], sizes = [1, 128], strides = [1, 1]} : vector<1x512xf32> to vector<1x128xf32>
    %297 = arith.negf %296 : vector<1x128xf32>
    %298 = math.exp %297 : vector<1x128xf32>
    %cst_98 = arith.constant 1.000000e+00 : f32
    %299 = vector.broadcast %cst_98 : f32 to vector<1x128xf32>
    %300 = arith.addf %299, %298 : vector<1x128xf32>
    %301 = arith.divf %299, %300 : vector<1x128xf32>
    %302 = vector.extract_strided_slice %295 {offsets = [0, 128], sizes = [1, 128], strides = [1, 1]} : vector<1x512xf32> to vector<1x128xf32>
    %303 = arith.negf %302 : vector<1x128xf32>
    %304 = math.exp %303 : vector<1x128xf32>
    %cst_99 = arith.constant 1.000000e+00 : f32
    %305 = vector.broadcast %cst_99 : f32 to vector<1x128xf32>
    %306 = arith.addf %305, %304 : vector<1x128xf32>
    %307 = arith.divf %305, %306 : vector<1x128xf32>
    %308 = vector.extract_strided_slice %295 {offsets = [0, 256], sizes = [1, 128], strides = [1, 1]} : vector<1x512xf32> to vector<1x128xf32>
    %309 = vector.extract_strided_slice %295 {offsets = [0, 384], sizes = [1, 128], strides = [1, 1]} : vector<1x512xf32> to vector<1x128xf32>
    %310 = arith.mulf %301, %309 : vector<1x128xf32>
    %311 = arith.addf %308, %310 : vector<1x128xf32>
    %312 = math.tanh %311 : vector<1x128xf32>
    %cst_100 = arith.constant 1.000000e+00 : f32
    %313 = vector.broadcast %cst_100 : f32 to vector<1x128xf32>
    %314 = arith.subf %313, %307 : vector<1x128xf32>
    %315 = arith.mulf %314, %312 : vector<1x128xf32>
    %316 = arith.mulf %307, %262 : vector<1x128xf32>
    %317 = arith.addf %315, %316 : vector<1x128xf32>
    %318 = arith.truncf %317 : vector<1x128xf32> to vector<1x128xbf16>
    %c0_101 = arith.constant 0 : index
    %c128_102 = arith.constant 128 : index
    %319 = vector.load %arg9[%c0_101, %c128_102] : memref<1x256xbf16, #tpu.memory_space<vmem>>, vector<1x128xbf16>
    tpu.vector_store %arg9[%c0_101, %c128_102], %318 {strides = array<i32>} : memref<1x256xbf16, #tpu.memory_space<vmem>>, vector<1x128xbf16>,
    %cst_103 = arith.constant dense<0.000000e+00> : vector<1x128xf32>
    %320 = tpu.matmul %318, %2, %cst_103 {dimension_numbers = #tpu.dot_dimension_numbers<[1], [0], [0], [1], [0, 0, 1, 1], [], []>} : vector<1x128xbf16>, vector<128x128xbf16>, vector<1x128xf32> -> vector<1x128xf32>
    %321 = arith.addf %320, %3 : vector<1x128xf32>
    %cst_104 = arith.constant dense<0xFF800000> : vector<1xf32>
    %322 = vector.multi_reduction <maximumf>, %321, %cst_104 [1] : vector<1x128xf32> to vector<1xf32>
    %323 = vector.shape_cast %322 : vector<1xf32> to vector<1x1xf32>
    %324 = vector.broadcast %323 : vector<1x1xf32> to vector<1x128xf32>
    %325 = arith.subf %321, %324 : vector<1x128xf32>
    %326 = math.exp %325 : vector<1x128xf32>
    %cst_105 = arith.constant dense<0.000000e+00> : vector<1xf32>
    %327 = vector.multi_reduction <add>, %326, %cst_105 [1] : vector<1x128xf32> to vector<1xf32>
    %328 = vector.shape_cast %327 : vector<1xf32> to vector<1x1xf32>
    %329 = math.log %328 : vector<1x1xf32>
    %330 = vector.broadcast %c5_i32 : i32 to vector<8x1xi32>
    %331 = arith.cmpi eq, %4, %330 : vector<8x1xi32>
    %332 = vector.broadcast %329 : vector<1x1xf32> to vector<1x128xf32>
    %333 = arith.subf %325, %332 : vector<1x128xf32>
    %334 = vector.shape_cast %331 : vector<8x1xi1> to vector<8x1xi1>
    %335 = vector.broadcast %334 : vector<8x1xi1> to vector<8x128xi1>
    %336 = vector.shape_cast %333 : vector<1x128xf32> to vector<1x128xf32>
    %337 = vector.broadcast %336 : vector<1x128xf32> to vector<8x128xf32>
    %338 = arith.select %335, %337, %283 : vector<8x128xi1>, vector<8x128xf32>
    %c6_i32 = arith.constant 6 : i32
    %339 = arith.index_cast %c6_i32 : i32 to index
    %340 = memref.load %arg0[%339] : memref<8xi32, #tpu.memory_space<smem>>
    %341 = arith.index_cast %340 : i32 to index
    %c0_106 = arith.constant 0 : index
    %c0_107 = arith.constant 0 : index
    %342 = vector.load %arg1[%341, %c0_106, %c0_107] : memref<40x1x128xf32, #tpu.memory_space<vmem>>, vector<1x1x128xf32>
    %343 = vector.shape_cast %342 : vector<1x1x128xf32> to vector<1x128xf32>
    %cst_108 = arith.constant 0.000000e+00 : f32
    %344 = vector.broadcast %cst_108 : f32 to vector<1x128xf32>
    %345 = arith.maximumf %343, %344 : vector<1x128xf32>
    %346 = arith.truncf %345 : vector<1x128xf32> to vector<1x128xbf16>
    %c0_109 = arith.constant 0 : index
    %c0_110 = arith.constant 0 : index
    %347 = vector.load %arg9[%c0_109, %c0_110] : memref<1x256xbf16, #tpu.memory_space<vmem>>, vector<1x128xbf16>
    tpu.vector_store %arg9[%c0_109, %c0_110], %346 {strides = array<i32>} : memref<1x256xbf16, #tpu.memory_space<vmem>>, vector<1x128xbf16>,
    %c0_111 = arith.constant 0 : index
    %c0_112 = arith.constant 0 : index
    %348 = vector.load %arg9[%c0_111, %c0_112] : memref<1x256xbf16, #tpu.memory_space<vmem>>, vector<1x256xbf16>
    %cst_113 = arith.constant dense<0.000000e+00> : vector<1x512xf32>
    %349 = tpu.matmul %348, %0, %cst_113 {dimension_numbers = #tpu.dot_dimension_numbers<[1], [0], [0], [1], [0, 0, 1, 1], [], []>} : vector<1x256xbf16>, vector<256x512xbf16>, vector<1x512xf32> -> vector<1x512xf32>
    %350 = arith.addf %349, %1 : vector<1x512xf32>
    %351 = vector.extract_strided_slice %350 {offsets = [0, 0], sizes = [1, 128], strides = [1, 1]} : vector<1x512xf32> to vector<1x128xf32>
    %352 = arith.negf %351 : vector<1x128xf32>
    %353 = math.exp %352 : vector<1x128xf32>
    %cst_114 = arith.constant 1.000000e+00 : f32
    %354 = vector.broadcast %cst_114 : f32 to vector<1x128xf32>
    %355 = arith.addf %354, %353 : vector<1x128xf32>
    %356 = arith.divf %354, %355 : vector<1x128xf32>
    %357 = vector.extract_strided_slice %350 {offsets = [0, 128], sizes = [1, 128], strides = [1, 1]} : vector<1x512xf32> to vector<1x128xf32>
    %358 = arith.negf %357 : vector<1x128xf32>
    %359 = math.exp %358 : vector<1x128xf32>
    %cst_115 = arith.constant 1.000000e+00 : f32
    %360 = vector.broadcast %cst_115 : f32 to vector<1x128xf32>
    %361 = arith.addf %360, %359 : vector<1x128xf32>
    %362 = arith.divf %360, %361 : vector<1x128xf32>
    %363 = vector.extract_strided_slice %350 {offsets = [0, 256], sizes = [1, 128], strides = [1, 1]} : vector<1x512xf32> to vector<1x128xf32>
    %364 = vector.extract_strided_slice %350 {offsets = [0, 384], sizes = [1, 128], strides = [1, 1]} : vector<1x512xf32> to vector<1x128xf32>
    %365 = arith.mulf %356, %364 : vector<1x128xf32>
    %366 = arith.addf %363, %365 : vector<1x128xf32>
    %367 = math.tanh %366 : vector<1x128xf32>
    %cst_116 = arith.constant 1.000000e+00 : f32
    %368 = vector.broadcast %cst_116 : f32 to vector<1x128xf32>
    %369 = arith.subf %368, %362 : vector<1x128xf32>
    %370 = arith.mulf %369, %367 : vector<1x128xf32>
    %371 = arith.mulf %362, %317 : vector<1x128xf32>
    %372 = arith.addf %370, %371 : vector<1x128xf32>
    %373 = arith.truncf %372 : vector<1x128xf32> to vector<1x128xbf16>
    %c0_117 = arith.constant 0 : index
    %c128_118 = arith.constant 128 : index
    %374 = vector.load %arg9[%c0_117, %c128_118] : memref<1x256xbf16, #tpu.memory_space<vmem>>, vector<1x128xbf16>
    tpu.vector_store %arg9[%c0_117, %c128_118], %373 {strides = array<i32>} : memref<1x256xbf16, #tpu.memory_space<vmem>>, vector<1x128xbf16>,
    %cst_119 = arith.constant dense<0.000000e+00> : vector<1x128xf32>
    %375 = tpu.matmul %373, %2, %cst_119 {dimension_numbers = #tpu.dot_dimension_numbers<[1], [0], [0], [1], [0, 0, 1, 1], [], []>} : vector<1x128xbf16>, vector<128x128xbf16>, vector<1x128xf32> -> vector<1x128xf32>
    %376 = arith.addf %375, %3 : vector<1x128xf32>
    %cst_120 = arith.constant dense<0xFF800000> : vector<1xf32>
    %377 = vector.multi_reduction <maximumf>, %376, %cst_120 [1] : vector<1x128xf32> to vector<1xf32>
    %378 = vector.shape_cast %377 : vector<1xf32> to vector<1x1xf32>
    %379 = vector.broadcast %378 : vector<1x1xf32> to vector<1x128xf32>
    %380 = arith.subf %376, %379 : vector<1x128xf32>
    %381 = math.exp %380 : vector<1x128xf32>
    %cst_121 = arith.constant dense<0.000000e+00> : vector<1xf32>
    %382 = vector.multi_reduction <add>, %381, %cst_121 [1] : vector<1x128xf32> to vector<1xf32>
    %383 = vector.shape_cast %382 : vector<1xf32> to vector<1x1xf32>
    %384 = math.log %383 : vector<1x1xf32>
    %385 = vector.broadcast %c6_i32 : i32 to vector<8x1xi32>
    %386 = arith.cmpi eq, %4, %385 : vector<8x1xi32>
    %387 = vector.broadcast %384 : vector<1x1xf32> to vector<1x128xf32>
    %388 = arith.subf %380, %387 : vector<1x128xf32>
    %389 = vector.shape_cast %386 : vector<8x1xi1> to vector<8x1xi1>
    %390 = vector.broadcast %389 : vector<8x1xi1> to vector<8x128xi1>
    %391 = vector.shape_cast %388 : vector<1x128xf32> to vector<1x128xf32>
    %392 = vector.broadcast %391 : vector<1x128xf32> to vector<8x128xf32>
    %393 = arith.select %390, %392, %338 : vector<8x128xi1>, vector<8x128xf32>
    %c7_i32 = arith.constant 7 : i32
    %394 = arith.index_cast %c7_i32 : i32 to index
    %395 = memref.load %arg0[%394] : memref<8xi32, #tpu.memory_space<smem>>
    %396 = arith.index_cast %395 : i32 to index
    %c0_122 = arith.constant 0 : index
    %c0_123 = arith.constant 0 : index
    %397 = vector.load %arg1[%396, %c0_122, %c0_123] : memref<40x1x128xf32, #tpu.memory_space<vmem>>, vector<1x1x128xf32>
    %398 = vector.shape_cast %397 : vector<1x1x128xf32> to vector<1x128xf32>
    %cst_124 = arith.constant 0.000000e+00 : f32
    %399 = vector.broadcast %cst_124 : f32 to vector<1x128xf32>
    %400 = arith.maximumf %398, %399 : vector<1x128xf32>
    %401 = arith.truncf %400 : vector<1x128xf32> to vector<1x128xbf16>
    %c0_125 = arith.constant 0 : index
    %c0_126 = arith.constant 0 : index
    %402 = vector.load %arg9[%c0_125, %c0_126] : memref<1x256xbf16, #tpu.memory_space<vmem>>, vector<1x128xbf16>
    tpu.vector_store %arg9[%c0_125, %c0_126], %401 {strides = array<i32>} : memref<1x256xbf16, #tpu.memory_space<vmem>>, vector<1x128xbf16>,
    %c0_127 = arith.constant 0 : index
    %c0_128 = arith.constant 0 : index
    %403 = vector.load %arg9[%c0_127, %c0_128] : memref<1x256xbf16, #tpu.memory_space<vmem>>, vector<1x256xbf16>
    %cst_129 = arith.constant dense<0.000000e+00> : vector<1x512xf32>
    %404 = tpu.matmul %403, %0, %cst_129 {dimension_numbers = #tpu.dot_dimension_numbers<[1], [0], [0], [1], [0, 0, 1, 1], [], []>} : vector<1x256xbf16>, vector<256x512xbf16>, vector<1x512xf32> -> vector<1x512xf32>
    %405 = arith.addf %404, %1 : vector<1x512xf32>
    %406 = vector.extract_strided_slice %405 {offsets = [0, 0], sizes = [1, 128], strides = [1, 1]} : vector<1x512xf32> to vector<1x128xf32>
    %407 = arith.negf %406 : vector<1x128xf32>
    %408 = math.exp %407 : vector<1x128xf32>
    %cst_130 = arith.constant 1.000000e+00 : f32
    %409 = vector.broadcast %cst_130 : f32 to vector<1x128xf32>
    %410 = arith.addf %409, %408 : vector<1x128xf32>
    %411 = arith.divf %409, %410 : vector<1x128xf32>
    %412 = vector.extract_strided_slice %405 {offsets = [0, 128], sizes = [1, 128], strides = [1, 1]} : vector<1x512xf32> to vector<1x128xf32>
    %413 = arith.negf %412 : vector<1x128xf32>
    %414 = math.exp %413 : vector<1x128xf32>
    %cst_131 = arith.constant 1.000000e+00 : f32
    %415 = vector.broadcast %cst_131 : f32 to vector<1x128xf32>
    %416 = arith.addf %415, %414 : vector<1x128xf32>
    %417 = arith.divf %415, %416 : vector<1x128xf32>
    %418 = vector.extract_strided_slice %405 {offsets = [0, 256], sizes = [1, 128], strides = [1, 1]} : vector<1x512xf32> to vector<1x128xf32>
    %419 = vector.extract_strided_slice %405 {offsets = [0, 384], sizes = [1, 128], strides = [1, 1]} : vector<1x512xf32> to vector<1x128xf32>
    %420 = arith.mulf %411, %419 : vector<1x128xf32>
    %421 = arith.addf %418, %420 : vector<1x128xf32>
    %422 = math.tanh %421 : vector<1x128xf32>
    %cst_132 = arith.constant 1.000000e+00 : f32
    %423 = vector.broadcast %cst_132 : f32 to vector<1x128xf32>
    %424 = arith.subf %423, %417 : vector<1x128xf32>
    %425 = arith.mulf %424, %422 : vector<1x128xf32>
    %426 = arith.mulf %417, %372 : vector<1x128xf32>
    %427 = arith.addf %425, %426 : vector<1x128xf32>
    %428 = arith.truncf %427 : vector<1x128xf32> to vector<1x128xbf16>
    %c0_133 = arith.constant 0 : index
    %c128_134 = arith.constant 128 : index
    %429 = vector.load %arg9[%c0_133, %c128_134] : memref<1x256xbf16, #tpu.memory_space<vmem>>, vector<1x128xbf16>
    tpu.vector_store %arg9[%c0_133, %c128_134], %428 {strides = array<i32>} : memref<1x256xbf16, #tpu.memory_space<vmem>>, vector<1x128xbf16>,
    %cst_135 = arith.constant dense<0.000000e+00> : vector<1x128xf32>
    %430 = tpu.matmul %428, %2, %cst_135 {dimension_numbers = #tpu.dot_dimension_numbers<[1], [0], [0], [1], [0, 0, 1, 1], [], []>} : vector<1x128xbf16>, vector<128x128xbf16>, vector<1x128xf32> -> vector<1x128xf32>
    %431 = arith.addf %430, %3 : vector<1x128xf32>
    %cst_136 = arith.constant dense<0xFF800000> : vector<1xf32>
    %432 = vector.multi_reduction <maximumf>, %431, %cst_136 [1] : vector<1x128xf32> to vector<1xf32>
    %433 = vector.shape_cast %432 : vector<1xf32> to vector<1x1xf32>
    %434 = vector.broadcast %433 : vector<1x1xf32> to vector<1x128xf32>
    %435 = arith.subf %431, %434 : vector<1x128xf32>
    %436 = math.exp %435 : vector<1x128xf32>
    %cst_137 = arith.constant dense<0.000000e+00> : vector<1xf32>
    %437 = vector.multi_reduction <add>, %436, %cst_137 [1] : vector<1x128xf32> to vector<1xf32>
    %438 = vector.shape_cast %437 : vector<1xf32> to vector<1x1xf32>
    %439 = math.log %438 : vector<1x1xf32>
    %440 = vector.broadcast %c7_i32 : i32 to vector<8x1xi32>
    %441 = arith.cmpi eq, %4, %440 : vector<8x1xi32>
    %442 = vector.broadcast %439 : vector<1x1xf32> to vector<1x128xf32>
    %443 = arith.subf %435, %442 : vector<1x128xf32>
    %444 = vector.shape_cast %441 : vector<8x1xi1> to vector<8x1xi1>
    %445 = vector.broadcast %444 : vector<8x1xi1> to vector<8x128xi1>
    %446 = vector.shape_cast %443 : vector<1x128xf32> to vector<1x128xf32>
    %447 = vector.broadcast %446 : vector<1x128xf32> to vector<8x128xf32>
    %448 = arith.select %445, %447, %393 : vector<8x128xi1>, vector<8x128xf32>
    %c8_i32 = arith.constant 8 : i32
    %c0_138 = arith.constant 0 : index
    %c0_139 = arith.constant 0 : index
    %449 = vector.load %arg7[%c0_138, %c0_139] : memref<8x128xf32, #tpu.memory_space<vmem>>, vector<8x128xf32>
    tpu.vector_store %arg7[%c0_138, %c0_139], %448 {strides = array<i32>} : memref<8x128xf32, #tpu.memory_space<vmem>>, vector<8x128xf32>,
    %c0_140 = arith.constant 0 : index
    %c0_141 = arith.constant 0 : index
    %450 = vector.load %arg8[%c0_140, %c0_141] : memref<1x128xf32, #tpu.memory_space<vmem>>, vector<1x128xf32>
    tpu.vector_store %arg8[%c0_140, %c0_141], %427 {strides = array<i32>} : memref<1x128xf32, #tpu.memory_space<vmem>>, vector<1x128xf32>,
    return
  }
}

</mosaic_0001>

<bundles_post_ra>
// kernel: _lambda_.1
= control target key start
LH: loop header
LB: loop body
LE: loop exit
PB: predicated region body
PF: predicated region fallthrough
CT: control target
= control target key end

     0   :  { %14 = vsyncpa [#allocation6], 0  ;;  %s4215_s0 = inlined_call_operand.vmem [shape: s32[8], index: 0, kind: input, shape index: {}]   ;;  %s4216_s1 = inlined_call_operand.hbm [shape: f32[40,1,128], index: 1, kind: input, shape index: {}]   ;;  %s4217_s2 = inlined_call_operand.hbm [shape: bf16[256,512], index: 2, kind: input, shape index: {}]   ;;  %s4218_s3 = inlined_call_operand.vmem [shape: f32[1,512], index: 3, kind: input, shape index: {}]   ;;  %s4219_s4 = inlined_call_operand.hbm [shape: bf16[128,128], index: 4, kind: input, shape index: {}]   ;;  %s4220_s5 = inlined_call_operand.vmem [shape: f32[1,128], index: 5, kind: input, shape index: {}]   ;;  %s4221_s6 = inlined_call_operand.vmem [shape: f32[1,128], index: 6, kind: input, shape index: {}]   ;;  %s4222_s7 = inlined_call_operand.hbm [shape: f32[8,128], index: 7, kind: output, shape index: {0}]   ;;  %s4223_s8 = inlined_call_operand.vmem [shape: f32[1,128], index: 8, kind: output, shape index: {1}]  }
   0x1   :  { %15 = vsyncpa [#allocation4], 0 }
   0x2   :  { %16 = vsyncpa [#allocation9], 0 }
   0x3   :  { %17 = vsyncpa [#allocation5], 0  ;;  %s2956_s27 = smov [#allocation8]   ;;  %s24_s9 = sshll.u32 %s4215_s0, 4  ;;  %s25_s9 = int_to_ptr.vmem [resolvable:$true] %s24_s9 }
   0x4   :  { %s45_s28 = sshll.u32 %s2956_s27, 4  ;;  %s46_s28 = int_to_ptr.vmem [resolvable:$true] %s45_s28 }
   0x5   :  { %s2864_s10 = scalar_lea.vmem %s46_s28, 8192  ;;  %p2869_p1 = scmp.lt.s32.totalorder %s46_s28, %s46_s28 }
   0x6   :  { %p2865_p0 = scmp.ne.s32.totalorder %s46_s28, %s2864_s10  ;;  %p2870_p2 = scmp.lt.s32.totalorder %s2864_s10, %s2864_s10 }
   0x8   :  { %p2871_p3 = por %p2870_p2, %p2869_p1 }
   0xa   :  { %p2872_p4 = pnand %p2871_p3, %p2865_p0 }
   0xc   :  { %2875 = shalt.err (!%p2872_p4)
}
   0xd   :  { %s2957_s11 = smov 256   ;;  %s2958_s12 = smov 16  }
   0xe   :  { %51 = dma.hbm_to_vmem [thread:$0]  %s4217_s2, 8192, %s46_s28, [#allocation9], %s2957_s11, %s2957_s11, %s2958_s12  }
   0xf   :  { %s2876_s15 = scalar_lea.vmem %s25_s9, 16  ;;  %p2881_p6 = scmp.lt.s32.totalorder %s25_s9, %s25_s9 }
  0x10   :  { %p2877_p5 = scmp.ne.s32.totalorder %s25_s9, %s2876_s15  ;;  %p2882_p7 = scmp.lt.s32.totalorder %s2876_s15, %s2876_s15 }
  0x12   :  { %p2883_p8 = por %p2882_p7, %p2881_p6 }
  0x14   :  { %p2884_p9 = pnand %p2883_p8, %p2877_p5 }
  0x16   :  { %2887 = shalt.err (!%p2884_p9)
}
  0x17   :  { %s2959_s0 = smov [#allocation3]   ;;  %s2960_s16 = smov [#allocation7]  }
  0x18   :  { %27 = dma.vmem_to_smem %s25_s9, 16, %s2959_s0, [#allocation6]  }
  0x19   :  { %s33_s17 = sshll.u32 %s2960_s16, 4  ;;  %s2961_s18 = smov [#allocation10]   ;;  %s34_s17 = int_to_ptr.vmem [resolvable:$true] %s33_s17 }
  0x1a   :  { %s59_s19 = sshll.u32 %s2961_s18, 4  ;;  %s2896_s20 = scalar_lea.vmem %s34_s17, 640  ;;  %s60_s19 = int_to_ptr.vmem [resolvable:$true] %s59_s19 }
  0x1b   :  { %p2897_p10 = scmp.ne.s32.totalorder %s34_s17, %s2896_s20  ;;  %p2901_p11 = scmp.lt.s32.totalorder %s34_s17, %s34_s17 }
  0x1c   :  { %p2902_p12 = scmp.lt.s32.totalorder %s2896_s20, %s2896_s20 }
  0x1e   :  { %p2903_p13 = por %p2902_p12, %p2901_p11 }
  0x20   :  { %p2904_p0 = pnand %p2903_p13, %p2897_p10 }
  0x22   :  { %2907 = shalt.err (!%p2904_p0)
}
  0x23   :  { %s2962_s2 = smov 1   ;;  %s2916_s23 = scalar_lea.vmem %s60_s19, 1024 }
  0x24   :  { %39 = dma.hbm_to_vmem [thread:$0]  %s4216_s1, 640, %s34_s17, [#allocation4], %s2958_s12, %s2958_s12, %s2962_s2  }
  0x25   :  { %p2917_p1 = scmp.ne.s32.totalorder %s60_s19, %s2916_s23  ;;  %p2921_p2 = scmp.lt.s32.totalorder %s60_s19, %s60_s19 }
  0x26   :  { %p2922_p3 = scmp.lt.s32.totalorder %s2916_s23, %s2916_s23 }
  0x28   :  { %p2923_p4 = por %p2922_p3, %p2921_p2 }
  0x2a   :  { %p2924_p5 = pnand %p2923_p4, %p2917_p1 }
  0x2c   :  { %2927 = shalt.err (!%p2924_p5)
}
  0x2d   :  { %s2963_s24 = smov 64   ;;  %s2964_s25 = smov 4  }
  0x2e   :  { %65 = dma.hbm_to_vmem [thread:$0]  %s4219_s4, 1024, %s60_s19, [#allocation9], %s2963_s24, %s2963_s24, %s2964_s25  }
  0x2f   :  { %2948 = dma.done.wait [#allocation6], 16  }
  0x30   :  { %2949 = vsyncadd [#allocation6], 4294967280 }
  0x31   :  { %2950 = dma.done.wait [#allocation4], 640  }
  0x32   :  { %2951 = vsyncadd [#allocation4], 4294966656 }
  0x33   :  { %2952 = dma.done.wait [#allocation9], 9216  }
  0x34   :  { %2953 = vsyncadd [#allocation9], 4294958080 }
  0x35   :  { %82 = sfence }
  0x36   :  { %v3026_v0 = vld [vmem:[#allocation8 + $0xe4] ss:$16 sps:$4 sm:$0xff]   ;;  %v3028_v1 = vld [vmem:[#allocation8 + $0xe0] ss:$16 sps:$4 sm:$0xff]   ;;  %v3045_v7 = vld [vmem:[#allocation8 + $0xec] ss:$16 sps:$4 sm:$0xff]   ;;  %v166_v49 = vlaneseq }
  0x37   :  { %551 = vmatprep.subr.bf16.mxu0 %v3026_v0  ;;  %v3031_v2 = vld [vmem:[#allocation8 + $0xc4] ss:$16 sps:$4 sm:$0xff]   ;;  %v3034_v3 = vld [vmem:[#allocation8 + $0xc0] ss:$16 sps:$4 sm:$0xff]   ;;  %v3047_v8 = vld [vmem:[#allocation8 + $0xe8] ss:$16 sps:$4 sm:$0xff]   ;;  %592 = vmatprep.subr.bf16.mxu1 %v3045_v7 }
  0x38   :  { %552 = vmatpush1.bf16.msra.mxu0 %v3028_v1  ;;  %v3037_v4 = vld [vmem:[#allocation8 + $0xa4] ss:$16 sps:$4 sm:$0xff]   ;;  %v3040_v5 = vld [vmem:[#allocation8 + $0xa0] ss:$16 sps:$4 sm:$0xff]   ;;  %593 = vmatpush1.bf16.msra.mxu1 %v3047_v8  ;;  %v3057_v11 = vld [vmem:[#allocation8 + $0xcc] ss:$16 sps:$4 sm:$0xff]  }
  0x39   :  { %553 = vmatprep.subr.bf16.mxu0 %v3031_v2  ;;  %v3043_v6 = vld [vmem:[#allocation8 + $0x84] ss:$16 sps:$4 sm:$0xff]   ;;  %v3050_v9 = vld [vmem:[#allocation8 + $0x80] ss:$16 sps:$4 sm:$0xff]   ;;  %v3059_v12 = vld [vmem:[#allocation8 + $0xc8] ss:$16 sps:$4 sm:$0xff]   ;;  %594 = vmatprep.subr.bf16.mxu1 %v3057_v11 }
  0x3a   :  { %v3054_v10 = vld [vmem:[#allocation8 + $0x64] ss:$16 sps:$4 sm:$0xff]   ;;  %v3063_v13 = vld [vmem:[#allocation8 + $0x60] ss:$16 sps:$4 sm:$0xff]   ;;  %v3067_v15 = vld [vmem:[#allocation8 + $0xac] ss:$16 sps:$4 sm:$0xff]  }
  0x3b   :  { %4359 = vst [vmem:[#allocation16_spill] sm:$0xff] %v3054_v10  ;;  %4360 = vst [vmem:[#allocation17_spill] sm:$0xff] %v3063_v13  ;;  %v3065_v14 = vld [vmem:[#allocation8 + $0x44] ss:$16 sps:$4 sm:$0xff]   ;;  %v3071_v16 = vld [vmem:[#allocation8 + $0xa8] ss:$16 sps:$4 sm:$0xff]  }
  0x3c   :  { %554 = vmatpush1.bf16.msra.mxu0 %v3034_v3  ;;  %4361 = vst [vmem:[#allocation18_spill] sm:$0xff] %v3065_v14  ;;  %595 = vmatpush1.bf16.msra.mxu1 %v3059_v12  ;;  %v3074_v17 = vld [vmem:[#allocation8 + $0x8c] ss:$16 sps:$4 sm:$0xff]   ;;  %v3077_v18 = vld [vmem:[#allocation8 + $0x40] ss:$16 sps:$4 sm:$0xff]   ;;  %s3097_s1 = sld [smem:[#allocation3]] }
  0x3d   :  { %555 = vmatprep.subr.bf16.mxu0 %v3037_v4  ;;  %596 = vmatprep.subr.bf16.mxu1 %v3067_v15  ;;  %4362 = vst [vmem:[#allocation19_spill] sm:$0xff] %v3077_v18  ;;  %v3080_v19 = vld [vmem:[#allocation8 + $0x24] ss:$16 sps:$4 sm:$0xff]   ;;  %v3083_v20 = vld [vmem:[#allocation8 + $0x88] ss:$16 sps:$4 sm:$0xff]   ;;  %vm170_vm1 = vcmask 1040384  }
  0x3e   :  { %4363 = vst [vmem:[#allocation20_spill] sm:$0xff] %v3080_v19  ;;  %v3086_v21 = vld [vmem:[#allocation8 + $0x6c] ss:$16 sps:$4 sm:$0xff]   ;;  %v3089_v22 = vld [vmem:[#allocation8 + $0x20] ss:$16 sps:$4 sm:$0xff]   ;;  %v3172_v57 = vshrl.u32 %v166_v49, 7 }
  0x3f   :  { %4364 = vst [vmem:[#allocation21_spill] sm:$0xff] %v3089_v22  ;;  %v3091_v23 = vld [vmem:[#allocation8 + $0x4] ss:$16 sps:$4 sm:$0xff]   ;;  %v3095_v24 = vld [vmem:[#allocation8 + $0x68] ss:$16 sps:$4 sm:$0xff]   ;;  %vm2967_vm3 = vmmov 0  }
  0x40   :  { %556 = vmatpush1.bf16.msra.mxu0 %v3040_v5  ;;  %597 = vmatpush1.bf16.msra.mxu1 %v3071_v16  ;;  %4365 = vst [vmem:[#allocation22_spill] sm:$0xff] %v3091_v23  ;;  %v3100_v25 = vld [vmem:[#allocation8 + $0x4c] ss:$16 sps:$4 sm:$0xff]   ;;  %v3103_v26 = vld [vmem:[#allocation8] ss:$16 sps:$4 sm:$0xff]   ;;  %4378 = vst [vmem:[#allocation33_spill] sm:$0xff] %v3172_v57 }
  0x41   :  { %557 = vmatprep.subr.bf16.mxu0 %v3043_v6  ;;  %598 = vmatprep.subr.bf16.mxu1 %v3074_v17  ;;  %4366 = vst [vmem:[#allocation23_spill] sm:$0xff] %v3103_v26  ;;  %v3106_v27 = vld [vmem:[#allocation8 + $0x1e4] ss:$16 sps:$4 sm:$0xff]   ;;  %v3109_v28 = vld [vmem:[#allocation8 + $0x48] ss:$16 sps:$4 sm:$0xff]   ;;  %s2272_s14 = sld [smem:[#allocation3 + $0x3]] }
  0x42   :  { %4367 = vst [vmem:[#allocation24_spill] sm:$0xff] %v3106_v27  ;;  %v3112_v29 = vld [vmem:[#allocation8 + $0x2c] ss:$16 sps:$4 sm:$0xff]   ;;  %v3115_v30 = vld [vmem:[#allocation8 + $0x1e0] ss:$16 sps:$4 sm:$0xff]   ;;  %s177_s29 = scalar_lea.vmem [#allocation7], %s3097_s1 }
  0x43   :  { %4368 = vst [vmem:[#allocation25_spill] sm:$0xff] %v3115_v30  ;;  %v3117_v31 = vld [vmem:[#allocation8 + $0x1c4] ss:$16 sps:$4 sm:$0xff]   ;;  %vm171_vm0 = vsmask.f32 256  ;;  %s2276_s0 = sld [smem:[#allocation3 + $0x4]] }
  0x44   :  { %558 = vmatpush1.bf16.msra.mxu0 %v3050_v9  ;;  %599 = vmatpush1.bf16.msra.mxu1 %v3083_v20  ;;  %4369 = vst [vmem:[#allocation26_spill] sm:$0xff] %v3117_v31  ;;  %v3121_v32 = vld [vmem:[#allocation8 + $0x28] ss:$16 sps:$4 sm:$0xff]   ;;  %v3124_v33 = vld [vmem:[#allocation8 + $0xc] ss:$16 sps:$4 sm:$0xff]   ;;  %vm3139_vm2 = vmand %vm170_vm1, %vm171_vm0  ;;  %s2280_s17 = sld [smem:[#allocation3 + $0x5]] }
  0x45   :  { %559 = vmatprep.subr.bf16.mxu0 %v3054_v10  ;;  %600 = vmatprep.subr.bf16.mxu1 %v3086_v21  ;;  %v3126_v34 = vld [vmem:[#allocation8 + $0x1c0] ss:$16 sps:$4 sm:$0xff]   ;;  %v3128_v35 = vld [vmem:[#allocation8 + $0x1a4] ss:$16 sps:$4 sm:$0xff]   ;;  %v3146_v41 = vld [vmem:[#allocation8 + $0x8] ss:$16 sps:$4 sm:$0xff]  }
  0x46   :  { %4370 = vst [vmem:[#allocation27_spill] sm:$0xff] %v3126_v34  ;;  %4371 = vst [vmem:[#allocation28_spill] sm:$0xff] %v3128_v35  ;;  %v3133_v36 = vld [vmem:[%s4221_s6] sm:$0x1]  ;;  %v173_v39 = vld [vmem:[#allocation2 + $0x1] sm:$0x1] }
  0x47   :  { %v169_v37 = vpack.c.bf16 %v3133_v36, %v3133_v36  ;;  %v178_v40 = vld [vmem:[%s177_s29] sm:$0x1]  ;;  %v3149_v43 = vld [vmem:[#allocation8 + $0x1ec] ss:$16 sps:$4 sm:$0xff]   ;;  %v3153_v46 = vld [vmem:[#allocation8 + $0x1a0] ss:$16 sps:$4 sm:$0xff]  }
  0x48   :  { %560 = vmatpush1.bf16.msra.mxu0 %v3063_v13  ;;  %601 = vmatpush1.bf16.msra.mxu1 %v3095_v24  ;;  %v179_v42 = vmax.f32 %v178_v40, 0.0  ;;  %v181_v45 = vld [vmem:[#allocation2] sm:$0x1]  ;;  %4374 = vst [vmem:[#allocation29_spill] sm:$0xff] %v3153_v46  ;;  %v2965_v50 = vmov 1966171168  }
  0x49   :  { %561 = vmatprep.subr.bf16.mxu0 %v3065_v14  ;;  %602 = vmatprep.subr.bf16.mxu1 %v3100_v25  ;;  %v174_v44 = vsel %vm3139_vm2, %v169_v37, %v173_v39  ;;  %v3156_v48 = vld [vmem:[#allocation8 + $0x184] ss:$16 sps:$4 sm:$0xff]   ;;  %v195_v51 = vunpack.c.l.s4 %v2965_v50  ;;  %v3160_v52 = vld [vmem:[#allocation8 + $0x1e8] ss:$16 sps:$4 sm:$0xff]   ;;  %v3165_v54 = vld [vmem:[#allocation8 + $0x1cc] ss:$16 sps:$4 sm:$0xff]  }
  0x4a   :  { %175 = vst [vmem:[#allocation2 + $0x1] sm:$0x1] %v174_v44  ;;  %v180_v47 = vpack.c.bf16 %v179_v42, %v179_v42  ;;  %4375 = vst [vmem:[#allocation30_spill] sm:$0xff] %v3156_v48  ;;  %v3167_v55 = vld [vmem:[#allocation8 + $0x180] ss:$16 sps:$4 sm:$0xff]   ;;  %s2264_s6 = sld [smem:[#allocation3 + $0x1]] }
  0x4b   :  { %4376 = vst [vmem:[#allocation31_spill] sm:$0xff] %v3167_v55  ;;  %v3170_v56 = vld [vmem:[#allocation8 + $0x164] ss:$16 sps:$4 sm:$0xff]   ;;  %v196_v58 = vunpack.c.0.s8 %v195_v51  ;;  %v3176_v59 = vld [vmem:[#allocation8 + $0x1c8] ss:$16 sps:$4 sm:$0xff]   ;;  %s1164_s15 = scalar_lea.vmem [#allocation7], %s2272_s14 }
  0x4c   :  { %562 = vmatpush1.bf16.msra.mxu0 %v3077_v18  ;;  %603 = vmatpush1.bf16.msra.mxu1 %v3109_v28  ;;  %v182_v53 = vsel %vm3139_vm2, %v180_v47, %v181_v45  ;;  %4377 = vst [vmem:[#allocation32_spill] sm:$0xff] %v3170_v56  ;;  %v3178_v60 = vld [vmem:[#allocation8 + $0x1ac] ss:$16 sps:$4 sm:$0xff]   ;;  %v3180_v61 = vld [vmem:[#allocation8 + $0x160] ss:$16 sps:$4 sm:$0xff]   ;;  %s1363_s16 = scalar_lea.vmem [#allocation7], %s2276_s0 }
  0x4d   :  { %563 = vmatprep.subr.bf16.mxu0 %v3080_v19  ;;  %604 = vmatprep.subr.bf16.mxu1 %v3112_v29  ;;  %183 = vst [vmem:[#allocation2] sm:$0x1] %v182_v53  ;;  %4379 = vst [vmem:[#allocation34_spill] sm:$0xff] %v3178_v60  ;;  %v3183_v62 = vld [vmem:[#allocation8 + $0x144] ss:$16 sps:$4 sm:$0xff]   ;;  %v3189_v37 = vsub.s32 %v196_v58, %v3172_v57  ;;  %s1562_s18 = scalar_lea.vmem [#allocation7], %s2280_s17 }
  0x4e   :  { %4380 = vst [vmem:[#allocation35_spill] sm:$0xff] %v3180_v61  ;;  %4381 = vst [vmem:[#allocation36_spill] sm:$0xff] %v3183_v62  ;;  %v3185_v63 = vld [vmem:[#allocation8 + $0x1a8] ss:$16 sps:$4 sm:$0xff]   ;;  %v3191_v39 = vld [vmem:[#allocation8 + $0x18c] ss:$16 sps:$4 sm:$0xff]  }
  0x4f   :  { %4382 = vst [vmem:[#allocation37_spill] sm:$0xff] %v3185_v63  ;;  %4383 = vst [vmem:[#allocation38_spill] sm:$0xff] %v3191_v39  ;;  %v3197_v44 = vld [vmem:[#allocation8 + $0x140] ss:$16 sps:$4 sm:$0xff]   ;;  %v3201_v47 = vld [vmem:[#allocation8 + $0x124] ss:$16 sps:$4 sm:$0xff]  }
  0x50   :  { %564 = vmatpush1.bf16.msra.mxu0 %v3089_v22  ;;  %605 = vmatpush1.bf16.msra.mxu1 %v3121_v32  ;;  %4384 = vst [vmem:[#allocation39_spill] sm:$0xff] %v3197_v44  ;;  %4385 = vst [vmem:[#allocation40_spill] sm:$0xff] %v3201_v47  ;;  %v3204_v49 = vld [vmem:[#allocation8 + $0x188] ss:$16 sps:$4 sm:$0xff]   ;;  %v3207_v50 = vld [vmem:[#allocation8 + $0x16c] ss:$16 sps:$4 sm:$0xff]  }
  0x51   :  { %565 = vmatprep.subr.bf16.mxu0 %v3091_v23  ;;  %606 = vmatprep.subr.bf16.mxu1 %v3124_v33  ;;  %4386 = vst [vmem:[#allocation41_spill] sm:$0xff] %v3204_v49  ;;  %4387 = vst [vmem:[#allocation42_spill] sm:$0xff] %v3207_v50  ;;  %v3210_v51 = vld [vmem:[#allocation8 + $0x120] ss:$16 sps:$4 sm:$0xff]   ;;  %v3213_v53 = vld [vmem:[#allocation8 + $0x104] ss:$16 sps:$4 sm:$0xff]  }
  0x52   :  { %4388 = vst [vmem:[#allocation43_spill] sm:$0xff] %v3210_v51  ;;  %4389 = vst [vmem:[#allocation44_spill] sm:$0xff] %v3213_v53  ;;  %v3216_v58 = vld [vmem:[#allocation8 + $0x168] ss:$16 sps:$4 sm:$0xff]   ;;  %s766_s30 = scalar_lea.vmem [#allocation7], %s2264_s6  ;;  %s2284_s19 = sld [smem:[#allocation3 + $0x6]] }
  0x53   :  { %4390 = vst [vmem:[#allocation45_spill] sm:$0xff] %v3216_v58 }
  0x54   :  { %566 = vmatpush1.bf16.msra.mxu0 %v3103_v26  ;;  %607 = vmatpush1.bf16.msra.mxu1 %v3146_v41  ;;  %v2189_v40 = vld.sshfl [vmem:[#allocation2] sm:$0x11 pattern:$0x75316420] }
  0x55   :  { %567 = vmatprep.subr.bf16.mxu0 %v3106_v27  ;;  %608 = vmatprep.subr.bf16.mxu1 %v3149_v43  ;;  %v193_v42 = vcombine.high %v2189_v40, %v2189_v40 }
  0x57   :  { %v207_v45 = vrot.slane %v193_v42, %v3189_v37  ;;  %v3219_v42 = vld [vmem:[#allocation8 + $0x14c] ss:$16 sps:$4 sm:$0xff]  }
  0x58   :  { %568 = vmatpush2.bf16.msra.mxu0 %v3115_v30  ;;  %609 = vmatpush2.bf16.msra.mxu1 %v3160_v52  ;;  %s1761_s20 = scalar_lea.vmem [#allocation7], %s2284_s19 }
  0x59   :  { %569 = vmatprep.subr.bf16.mxu0 %v3117_v31  ;;  %610 = vmatprep.subr.bf16.mxu1 %v3165_v54 }
  0x5a   :  { %583 = vmatprep.mubr.bf16.mxu0 %v207_v45  ;;  %624 = vmatprep.mubr.bf16.mxu1 %v207_v45  ;;  %v3226_v45 = vld [vmem:[#allocation8 + $0x148] ss:$16 sps:$4 sm:$0xff]  }
  0x5c   :  { %570 = vmatpush2.bf16.msra.mxu0 %v3126_v34  ;;  %611 = vmatpush2.bf16.msra.mxu1 %v3176_v59 }
  0x5d   :  { %571 = vmatprep.subr.bf16.mxu0 %v3128_v35  ;;  %612 = vmatprep.subr.bf16.mxu1 %v3178_v60  ;;  %v3237_v60 = vld [vmem:[#allocation8 + $0x10c] ss:$16 sps:$4 sm:$0xff]  }
  0x60   :  { %572 = vmatpush2.bf16.msra.mxu0 %v3153_v46  ;;  %613 = vmatpush2.bf16.msra.mxu1 %v3185_v63  ;;  %v3229_v63 = vld [vmem:[#allocation8 + $0x12c] ss:$16 sps:$4 sm:$0xff]  }
  0x61   :  { %573 = vmatprep.subr.bf16.mxu0 %v3156_v48  ;;  %614 = vmatprep.subr.bf16.mxu1 %v3191_v39  ;;  %v3222_v39 = vld [vmem:[#allocation8 + $0x100] ss:$16 sps:$4 sm:$0xff]  }
  0x62   :  { %4391 = vst [vmem:[#allocation46_spill] sm:$0xff] %v3222_v39 }
  0x64   :  { %574 = vmatpush2.bf16.msra.mxu0 %v3167_v55  ;;  %615 = vmatpush2.bf16.msra.mxu1 %v3204_v49  ;;  %v200_v49 = vrot.slane %v2189_v40, %v3189_v37  ;;  %v3276_v40 = vld [vmem:[#allocation10 + $0x38] sm:$0xff]  }
  0x65   :  { %575 = vmatprep.subr.bf16.mxu0 %v3170_v56  ;;  %616 = vmatprep.subr.bf16.mxu1 %v3207_v50  ;;  %v3234_v50 = vld [vmem:[#allocation8 + $0x128] ss:$16 sps:$4 sm:$0xff]  }
  0x68   :  { %576 = vmatpush2.bf16.msra.mxu0 %v3180_v61  ;;  %617 = vmatpush2.bf16.msra.mxu1 %v3216_v58  ;;  %v3240_v58 = vld [vmem:[#allocation8 + $0x108] ss:$16 sps:$4 sm:$0xff]  }
  0x69   :  { %577 = vmatprep.subr.bf16.mxu0 %v3183_v62  ;;  %618 = vmatprep.subr.bf16.mxu1 %v3219_v42 }
  0x6c   :  { %578 = vmatpush2.bf16.msra.mxu0 %v3197_v44  ;;  %619 = vmatpush2.bf16.msra.mxu1 %v3226_v45 }
  0x6d   :  { %579 = vmatprep.subr.bf16.mxu0 %v3201_v47  ;;  %620 = vmatprep.subr.bf16.mxu1 %v3229_v63 }
  0x70   :  { %580 = vmatpush2.bf16.msra.mxu0 %v3210_v51  ;;  %621 = vmatpush2.bf16.msra.mxu1 %v3234_v50 }
  0x71   :  { %581 = vmatprep.subr.bf16.mxu0 %v3213_v53  ;;  %622 = vmatprep.subr.bf16.mxu1 %v3237_v60 }
  0x74   :  { %582 = vmatpush2.bf16.msra.mxu0 %v3222_v39  ;;  %623 = vmatpush2.bf16.msra.mxu1 %v3240_v58 }
  0x75   :  { %799 = vmatprep.subr.bf16.mxu1 %v3026_v0 }
  0x77   :  { %584 = vmatmul.mubr.bf16.vlgmr.msra.gmra.mxu0 %v200_v49  ;;  %625 = vmatmul.mubr.bf16.vlgmr.msra.gmra.mxu1 %v200_v49  ;;  %v4262_v49 = vmov 0.0  }
  0x78   :  { %800 = vmatpush1.bf16.msra.mxu1 %v3028_v1  ;;  %2364 = vmatprep.subr.bf16.mxu0 %v4262_v49 }
  0x79   :  { %801 = vmatprep.subr.bf16.mxu1 %v3031_v2  ;;  %2365 = vmatpush3.bf16.msra.mxu0 %v3276_v40 }
  0x7a   :  { %2366 = vmatprep.subr.bf16.mxu0 %v4262_v49  ;;  %2380 = vmatprep.mubr.msk.bf16.mxu0 %vm2967_vm3, %v4262_v49 }
  0x7c   :  { %802 = vmatpush1.bf16.msra.mxu1 %v3034_v3 }
  0x7d   :  { %803 = vmatprep.subr.bf16.mxu1 %v3037_v4 }
  0x80   :  { %804 = vmatpush1.bf16.msra.mxu1 %v3040_v5 }
  0x81   :  { %805 = vmatprep.subr.bf16.mxu1 %v3043_v6 }
  0x84   :  { %806 = vmatpush1.bf16.msra.mxu1 %v3050_v9 }
  0x85   :  { %807 = vmatprep.subr.bf16.mxu1 %v3054_v10 }
  0x88   :  { %808 = vmatpush1.bf16.msra.mxu1 %v3063_v13 }
  0x89   :  { %809 = vmatprep.subr.bf16.mxu1 %v3065_v14 }
  0x8c   :  { %810 = vmatpush1.bf16.msra.mxu1 %v3077_v18 }
  0x8d   :  { %811 = vmatprep.subr.bf16.mxu1 %v3080_v19 }
  0x90   :  { %812 = vmatpush1.bf16.msra.mxu1 %v3089_v22 }
  0x91   :  { %813 = vmatprep.subr.bf16.mxu1 %v3091_v23 }
  0x94   :  { %814 = vmatpush1.bf16.msra.mxu1 %v3103_v26 }
  0x95   :  { %815 = vmatprep.subr.bf16.mxu1 %v3106_v27 }
  0x98   :  { %816 = vmatpush2.bf16.msra.mxu1 %v3115_v30 }
  0x99   :  { %817 = vmatprep.subr.bf16.mxu1 %v3117_v31 }
  0x9c   :  { %818 = vmatpush2.bf16.msra.mxu1 %v3126_v34  ;;  %v3315_v34 = vsub.s32 0, %v3172_v57 }
  0x9d   :  { %819 = vmatprep.subr.bf16.mxu1 %v3128_v35 }
  0x9e   :  { %4392 = vst [vmem:[#allocation47_spill] sm:$0xff] %v3315_v34 }
  0xa0   :  { %820 = vmatpush2.bf16.msra.mxu1 %v3153_v46  ;;  %v770_v46 = vld [vmem:[#allocation2] sm:$0x1] }
  0xa1   :  { %821 = vmatprep.subr.bf16.mxu1 %v3156_v48 }
  0xa4   :  { %822 = vmatpush2.bf16.msra.mxu1 %v3167_v55 }
  0xa5   :  { %823 = vmatprep.subr.bf16.mxu1 %v3170_v56  ;;  %v767_v56 = vld [vmem:[%s766_s30] sm:$0x1] }
  0xa6   :  { %v768_v55 = vmax.f32 %v767_v56, 0.0  ;;  %v537_v56 = vsub.s32 1, %v3172_v57 }
  0xa8   :  { %824 = vmatpush2.bf16.msra.mxu1 %v3180_v61  ;;  %v3307_v61 = vld [vmem:[#allocation10] sm:$0xff]   ;;  %v769_v48 = vpack.c.bf16 %v768_v55, %v768_v55 }
  0xa9   :  { %825 = vmatprep.subr.bf16.mxu1 %v3183_v62  ;;  %v3303_v62 = vld [vmem:[#allocation10 + $0x8] sm:$0xff]  }
  0xaa   :  { %v771_v35 = vsel %vm3139_vm2, %v769_v48, %v770_v46 }
  0xab   :  { %772 = vst [vmem:[#allocation2] sm:$0x1] %v771_v35 }
  0xac   :  { %826 = vmatpush2.bf16.msra.mxu1 %v3197_v44  ;;  %v3282_v44 = vld [vmem:[#allocation10 + $0x30] sm:$0xff]  }
  0xad   :  { %827 = vmatprep.subr.bf16.mxu1 %v3201_v47  ;;  %2367 = vmatpush3.bf16.msra.mxu0 %v3282_v44  ;;  %v3299_v47 = vld [vmem:[#allocation10 + $0x10] sm:$0xff]  }
  0xae   :  { %2368 = vmatprep.subr.bf16.mxu0 %v4262_v49 }
  0xb0   :  { %828 = vmatpush2.bf16.msra.mxu1 %v3210_v51  ;;  %v3293_v51 = vld [vmem:[#allocation10 + $0x18] sm:$0xff]  }
  0xb1   :  { %829 = vmatprep.subr.bf16.mxu1 %v3213_v53  ;;  %v3286_v53 = vld [vmem:[#allocation10 + $0x28] sm:$0xff]  }
  0xb2   :  { %2369 = vmatpush3.bf16.msra.mxu0 %v3286_v53 }
  0xb3   :  { %2370 = vmatprep.subr.bf16.mxu0 %v4262_v49 }
  0xb4   :  { %830 = vmatpush2.bf16.msra.mxu1 %v3222_v39  ;;  %v3290_v39 = vld [vmem:[#allocation10 + $0x20] sm:$0xff]  }
  0xb5   :  { %2384 = vmatprep.subr.bf16.mxu1 %v4262_v49 }
  0xb6   :  { %2371 = vmatpush3.bf16.msra.mxu0 %v3290_v39 }
  0xb7   :  { %2372 = vmatprep.subr.bf16.mxu0 %v4262_v49 }
  0xba   :  { %2373 = vmatpush3.bf16.msra.mxu0 %v3293_v51 }
  0xbb   :  { %2374 = vmatprep.subr.bf16.mxu0 %v4262_v49 }
  0xbe   :  { %2375 = vmatpush3.bf16.msra.mxu0 %v3299_v47 }
  0xbf   :  { %2376 = vmatprep.subr.bf16.mxu0 %v4262_v49 }
  0xc2   :  { %2377 = vmatpush3.bf16.msra.mxu0 %v3303_v62 }
  0xc3   :  { %2378 = vmatprep.subr.bf16.mxu0 %v4262_v49  ;;  %v148_v49 = vld [vmem:[%s4218_s3] sm:$0xf]  ;;  %s2268_s3 = sld [smem:[#allocation3 + $0x2]] }
  0xc4   :  { %v3321_v31 = vrot.slane %v148_v49, %v3315_v34  ;;  %v3325_v23 = vrot.slane %v148_v49, %v537_v56 }
  0xc6   :  { %2379 = vmatpush3.bf16.msra.mxu0 %v3307_v61  ;;  %4393 = vst [vmem:[#allocation48_spill] sm:$0xff] %v3321_v31  ;;  %4394 = vst [vmem:[#allocation49_spill] sm:$0xff] %v3325_v23 }
  0xc7   :  { %840 = vmatprep.subr.bf16.mxu0 %v3045_v7 }
  0xc9   :  { %s965_s11 = scalar_lea.vmem [#allocation7], %s2268_s3 }
 0x137   :  { %v585_v30 = vpop.f32.mrf.mxu0  ;;  %v626_v22 = vpop.f32.mrf.mxu1 }
 0x138   :  { %v586_v55 = vadd.f32 %v585_v30, %v3321_v31  ;;  %v545_v30 = vsub.s32 3, %v3172_v57 }
 0x139   :  { %v587_v27 = vpop.f32.mrf.mxu0  ;;  %v628_v18 = vpop.f32.mrf.mxu1 }
 0x13a   :  { %v2254_v26 = vmul.f32 -1.442695, %v586_v55  ;;  %v588_v48 = vadd.f32 %v587_v27, %v3325_v23  ;;  %v541_v55 = vsub.s32 2, %v3172_v57  ;;  %v3330_v31 = vrot.slane %v148_v49, %v545_v30 }
 0x13b   :  { %v589_v35 = vpop.f32.mrf.mxu0  ;;  %v630_v14 = vpop.f32.mrf.mxu1 }
 0x13c   :  { %2641 = vpow2.f32 %v2254_v26  ;;  %v2255_v19 = vmul.f32 -1.442695, %v588_v48  ;;  %v3332_v35 = vrot.slane %v148_v49, %v541_v55  ;;  %v629_v27 = vadd.f32 %v628_v18, %v3330_v31 }
 0x13d   :  { %v590_v46 = vpop.f32.mrf.mxu0  ;;  %v631_v34 = vpop.f32.mrf.mxu1  ;;  %v4395_v55 = vmov 0.0  }
 0x13e   :  { %2643 = vpow2.f32 %v2255_v19  ;;  %v627_v14 = vadd.f32 %v626_v22, %v3332_v35 }
 0x149   :  { %v2642_v13 = vpop.eup %2641 }
 0x14a   :  { %v636_v10 = vadd.f32 1.0, %v2642_v13 }
 0x14b   :  { %v2644_v56 = vpop.eup %2643 }
 0x14c   :  { %2645 = vrcp.f32 %v636_v10  ;;  %v642_v26 = vadd.f32 1.0, %v2644_v56  ;;  %v653_v56 = vld [vmem:[#allocation2 + $0x1] sm:$0x1] }
 0x14e   :  { %2647 = vrcp.f32 %v642_v26  ;;  %v4396_v26 = vld [vmem:[#allocation34_spill] sm:$0xff] }
 0x159   :  { %v2646_v46 = vpop.eup %2645 }
 0x15a   :  { %v645_v19 = vmul.f32 %v2646_v46, %v629_v27  ;;  %v4397_v27 = vld [vmem:[#allocation37_spill] sm:$0xff]  ;;  %v4398_v46 = vld [vmem:[#allocation38_spill] sm:$0xff] }
 0x15b   :  { %v2648_v10 = vpop.eup %2647 }
 0x15c   :  { %v646_v34 = vadd.f32 %v645_v19, %v627_v14  ;;  %v648_v13 = vsub.f32 1.0, %v2648_v10  ;;  %v650_v57 = vmul.f32 %v2648_v10, %v3133_v36  ;;  %v4399_v14 = vld [vmem:[#allocation41_spill] sm:$0xff]  ;;  %v4400_v19 = vld [vmem:[#allocation42_spill] sm:$0xff] }
 0x15d   :  { %v4403_v10 = vld [vmem:[#allocation17_spill] sm:$0xff] }
 0x15e   :  { %2649 = vtanh.f32 %v646_v34  ;;  %v4401_v34 = vld [vmem:[#allocation45_spill] sm:$0xff] }
 0x16b   :  { %v2650_v48 = vpop.eup %2649 }
 0x16c   :  { %v649_v23 = vmul.f32 %v2650_v48, %v648_v13  ;;  %v4405_v13 = vld [vmem:[#allocation19_spill] sm:$0xff] }
 0x16d   :  { %v4413_v48 = vld [vmem:[#allocation27_spill] sm:$0xff] }
 0x16e   :  { %v3337_v30 = vadd.f32 %v650_v57, %v649_v23 }
 0x170   :  { %v652_v49 = vpack.c.bf16 %v3337_v30, %v3337_v30 }
 0x172   :  { %v654_v18 = vsel %vm3139_vm2, %v652_v49, %v653_v56  ;;  %2381 = vmatmul.mubr.bf16.vlgmr.msra.gmra.mxu0 %v652_v49  ;;  %v4414_v56 = vld [vmem:[#allocation28_spill] sm:$0xff]  ;;  %v4415_v49 = vld [vmem:[#allocation29_spill] sm:$0xff] }
 0x173   :  { %655 = vst [vmem:[#allocation2 + $0x1] sm:$0x1] %v654_v18  ;;  %841 = vmatpush1.bf16.msra.mxu0 %v3047_v8  ;;  %v4416_v18 = vld [vmem:[#allocation30_spill] sm:$0xff] }
 0x174   :  { %842 = vmatprep.subr.bf16.mxu0 %v3057_v11 }
 0x177   :  { %843 = vmatpush1.bf16.msra.mxu0 %v3059_v12 }
 0x178   :  { %844 = vmatprep.subr.bf16.mxu0 %v3067_v15 }
 0x17a   :  { %v2265_v22 = vld.sshfl [vmem:[#allocation2] sm:$0x11 pattern:$0x75316420] }
 0x17b   :  { %845 = vmatpush1.bf16.msra.mxu0 %v3071_v16  ;;  %v782_v23 = vcombine.high %v2265_v22, %v2265_v22  ;;  %v789_v57 = vrot.slane %v2265_v22, %v3189_v37  ;;  %v4417_v22 = vld [vmem:[#allocation31_spill] sm:$0xff] }
 0x17c   :  { %846 = vmatprep.subr.bf16.mxu0 %v3074_v17 }
 0x17d   :  { %v796_v36 = vrot.slane %v782_v23, %v3189_v37  ;;  %v4418_v23 = vld [vmem:[#allocation32_spill] sm:$0xff] }
 0x17f   :  { %847 = vmatpush1.bf16.msra.mxu0 %v3083_v20  ;;  %831 = vmatprep.mubr.bf16.mxu1 %v796_v36 }
 0x180   :  { %872 = vmatprep.mubr.bf16.mxu0 %v796_v36  ;;  %832 = vmatmul.mubr.bf16.vlgmr.msra.gmra.mxu1 %v789_v57  ;;  %v4419_v36 = vld [vmem:[#allocation35_spill] sm:$0xff] }
 0x181   :  { %848 = vmatprep.subr.bf16.mxu0 %v3086_v21  ;;  %2385 = vmatpush3.bf16.msra.mxu1 %v3276_v40 }
 0x182   :  { %2386 = vmatprep.subr.bf16.mxu1 %v4395_v55  ;;  %2400 = vmatprep.mubr.msk.bf16.mxu1 %vm2967_vm3, %v4395_v55 }
 0x183   :  { %849 = vmatpush1.bf16.msra.mxu0 %v3095_v24 }
 0x184   :  { %850 = vmatprep.subr.bf16.mxu0 %v3100_v25 }
 0x185   :  { %2387 = vmatpush3.bf16.msra.mxu1 %v3282_v44 }
 0x186   :  { %2388 = vmatprep.subr.bf16.mxu1 %v4395_v55 }
 0x187   :  { %851 = vmatpush1.bf16.msra.mxu0 %v3109_v28 }
 0x188   :  { %852 = vmatprep.subr.bf16.mxu0 %v3112_v29 }
 0x189   :  { %2389 = vmatpush3.bf16.msra.mxu1 %v3286_v53 }
 0x18a   :  { %2390 = vmatprep.subr.bf16.mxu1 %v4395_v55 }
 0x18b   :  { %853 = vmatpush1.bf16.msra.mxu0 %v3121_v32 }
 0x18c   :  { %854 = vmatprep.subr.bf16.mxu0 %v3124_v33 }
 0x18d   :  { %2391 = vmatpush3.bf16.msra.mxu1 %v3290_v39 }
 0x18e   :  { %2392 = vmatprep.subr.bf16.mxu1 %v4395_v55 }
 0x18f   :  { %855 = vmatpush1.bf16.msra.mxu0 %v3146_v41 }
 0x190   :  { %856 = vmatprep.subr.bf16.mxu0 %v3149_v43 }
 0x191   :  { %2393 = vmatpush3.bf16.msra.mxu1 %v3293_v51 }
 0x192   :  { %2394 = vmatprep.subr.bf16.mxu1 %v4395_v55 }
 0x193   :  { %857 = vmatpush2.bf16.msra.mxu0 %v3160_v52 }
 0x194   :  { %858 = vmatprep.subr.bf16.mxu0 %v3165_v54 }
 0x195   :  { %2395 = vmatpush3.bf16.msra.mxu1 %v3299_v47 }
 0x196   :  { %2396 = vmatprep.subr.bf16.mxu1 %v4395_v55 }
 0x197   :  { %859 = vmatpush2.bf16.msra.mxu0 %v3176_v59 }
 0x198   :  { %860 = vmatprep.subr.bf16.mxu0 %v4396_v26 }
 0x199   :  { %2397 = vmatpush3.bf16.msra.mxu1 %v3303_v62 }
 0x19a   :  { %2398 = vmatprep.subr.bf16.mxu1 %v4395_v55 }
 0x19b   :  { %861 = vmatpush2.bf16.msra.mxu0 %v4397_v27 }
 0x19c   :  { %862 = vmatprep.subr.bf16.mxu0 %v4398_v46 }
 0x19d   :  { %2399 = vmatpush3.bf16.msra.mxu1 %v3307_v61 }
 0x19e   :  { %1039 = vmatprep.subr.bf16.mxu1 %v3045_v7  ;;  %v4402_v7 = vld [vmem:[#allocation16_spill] sm:$0xff] }
 0x19f   :  { %863 = vmatpush2.bf16.msra.mxu0 %v4399_v14 }
 0x1a0   :  { %864 = vmatprep.subr.bf16.mxu0 %v4400_v19 }
 0x1a3   :  { %865 = vmatpush2.bf16.msra.mxu0 %v4401_v34 }
 0x1a4   :  { %866 = vmatprep.subr.bf16.mxu0 %v3219_v42 }
 0x1a7   :  { %867 = vmatpush2.bf16.msra.mxu0 %v3226_v45 }
 0x1a8   :  { %868 = vmatprep.subr.bf16.mxu0 %v3229_v63 }
 0x1ab   :  { %869 = vmatpush2.bf16.msra.mxu0 %v3234_v50 }
 0x1ac   :  { %870 = vmatprep.subr.bf16.mxu0 %v3237_v60 }
 0x1af   :  { %871 = vmatpush2.bf16.msra.mxu0 %v3240_v58 }
 0x1b0   :  { %998 = vmatprep.subr.bf16.mxu0 %v3026_v0  ;;  %v4404_v0 = vld [vmem:[#allocation18_spill] sm:$0xff] }
 0x1b2   :  { %873 = vmatmul.mubr.bf16.vlgmr.msra.gmra.mxu0 %v789_v57  ;;  %v4420_v57 = vld [vmem:[#allocation36_spill] sm:$0xff] }
 0x1b3   :  { %999 = vmatpush1.bf16.msra.mxu0 %v3028_v1  ;;  %v4406_v1 = vld [vmem:[#allocation20_spill] sm:$0xff] }
 0x1b4   :  { %1000 = vmatprep.subr.bf16.mxu0 %v3031_v2  ;;  %v4407_v2 = vld [vmem:[#allocation21_spill] sm:$0xff] }
 0x1b7   :  { %1001 = vmatpush1.bf16.msra.mxu0 %v3034_v3  ;;  %v4408_v3 = vld [vmem:[#allocation22_spill] sm:$0xff] }
 0x1b8   :  { %1002 = vmatprep.subr.bf16.mxu0 %v3037_v4  ;;  %v4409_v4 = vld [vmem:[#allocation23_spill] sm:$0xff] }
 0x1bb   :  { %1003 = vmatpush1.bf16.msra.mxu0 %v3040_v5  ;;  %v4410_v5 = vld [vmem:[#allocation24_spill] sm:$0xff] }
 0x1bc   :  { %1004 = vmatprep.subr.bf16.mxu0 %v3043_v6  ;;  %v4411_v6 = vld [vmem:[#allocation25_spill] sm:$0xff] }
 0x1bf   :  { %1005 = vmatpush1.bf16.msra.mxu0 %v3050_v9  ;;  %v4412_v9 = vld [vmem:[#allocation26_spill] sm:$0xff] }
 0x1c0   :  { %1006 = vmatprep.subr.bf16.mxu0 %v4402_v7  ;;  %v4421_v7 = vld [vmem:[#allocation39_spill] sm:$0xff] }
 0x1c3   :  { %1007 = vmatpush1.bf16.msra.mxu0 %v4403_v10  ;;  %v4422_v10 = vld [vmem:[#allocation40_spill] sm:$0xff] }
 0x1c4   :  { %1008 = vmatprep.subr.bf16.mxu0 %v4404_v0  ;;  %v4423_v0 = vld [vmem:[#allocation43_spill] sm:$0xff] }
 0x1c7   :  { %1009 = vmatpush1.bf16.msra.mxu0 %v4405_v13 }
 0x1c8   :  { %1010 = vmatprep.subr.bf16.mxu0 %v4406_v1 }
 0x1cb   :  { %1011 = vmatpush1.bf16.msra.mxu0 %v4407_v2 }
 0x1cc   :  { %1012 = vmatprep.subr.bf16.mxu0 %v4408_v3 }
 0x1cf   :  { %1013 = vmatpush1.bf16.msra.mxu0 %v4409_v4  ;;  %v4429_v4 = vld [vmem:[#allocation49_spill] sm:$0xff] }
 0x1d0   :  { %1014 = vmatprep.subr.bf16.mxu0 %v4410_v5 }
 0x1d3   :  { %1015 = vmatpush2.bf16.msra.mxu0 %v4411_v6 }
 0x1d4   :  { %1016 = vmatprep.subr.bf16.mxu0 %v4412_v9 }
 0x1d7   :  { %1017 = vmatpush2.bf16.msra.mxu0 %v4413_v48  ;;  %v4424_v48 = vld [vmem:[#allocation44_spill] sm:$0xff] }
 0x1d8   :  { %1018 = vmatprep.subr.bf16.mxu0 %v4414_v56  ;;  %v4425_v56 = vld [vmem:[#allocation46_spill] sm:$0xff] }
 0x1db   :  { %1019 = vmatpush2.bf16.msra.mxu0 %v4415_v49 }
 0x1dc   :  { %1020 = vmatprep.subr.bf16.mxu0 %v4416_v18 }
 0x1df   :  { %1021 = vmatpush2.bf16.msra.mxu0 %v4417_v22  ;;  %v966_v22 = vld [vmem:[%s965_s11] sm:$0x1] }
 0x1e0   :  { %1022 = vmatprep.subr.bf16.mxu0 %v4418_v23  ;;  %v967_v23 = vmax.f32 %v966_v22, 0.0 }
 0x1e2   :  { %v968_v18 = vpack.c.bf16 %v967_v23, %v967_v23 }
 0x1e3   :  { %1023 = vmatpush2.bf16.msra.mxu0 %v4419_v36  ;;  %v969_v36 = vld [vmem:[#allocation2] sm:$0x1] }
 0x1e4   :  { %1024 = vmatprep.subr.bf16.mxu0 %v4420_v57  ;;  %v970_v57 = vsel %vm3139_vm2, %v968_v18, %v969_v36 }
 0x1e5   :  { %971 = vst [vmem:[#allocation2] sm:$0x1] %v970_v57  ;;  %v4428_v57 = vld [vmem:[#allocation48_spill] sm:$0xff] }
 0x1e7   :  { %1025 = vmatpush2.bf16.msra.mxu0 %v4421_v7 }
 0x1e8   :  { %1026 = vmatprep.subr.bf16.mxu0 %v4422_v10 }
 0x1eb   :  { %1027 = vmatpush2.bf16.msra.mxu0 %v4423_v0  ;;  %v3432_v0 = vld [vmem:[%s4220_s5] sm:$0x1] }
 0x1ec   :  { %1028 = vmatprep.subr.bf16.mxu0 %v4424_v48  ;;  %4426 = vst [vmem:[#allocation34_spill] sm:$0xff] %v3432_v0 }
 0x1ef   :  { %1029 = vmatpush2.bf16.msra.mxu0 %v4425_v56 }
 0x1f0   :  { %2404 = vmatprep.subr.bf16.mxu0 %v4395_v55 }
 0x232   :  { %v738_v48 = vpop.f32.mrf.mxu0 }
 0x233   :  { %v3435_v56 = vadd.f32 %v738_v48, %v3432_v0 }
 0x234   :  { %v2382_v10 = vpop.f32.mrf.mxu0 }
 0x235   :  { %4427 = vst [vmem:[#allocation37_spill] sm:$0xff] %v3435_v56  ;;  %v745_v7 = vsel %vm170_vm1, %v3435_v56, -inf }
 0x236   :  { %746 = vmax.xlane.f32.xlu0 %v745_v7  ;;  %v741_v22 = vpop.f32.mrf.mxu0 }
 0x238   :  { %v2383_v23 = vpop.f32.mrf.mxu0 }
 0x240   :  { %v833_v49 = vpop.f32.mrf.mxu1 }
 0x241   :  { %v834_v6 = vadd.f32 %v833_v49, %v4428_v57 }
 0x242   :  { %v835_v9 = vpop.f32.mrf.mxu1 }
 0x243   :  { %v2266_v5 = vmul.f32 -1.442695, %v834_v6  ;;  %v836_v3 = vadd.f32 %v835_v9, %v4429_v4 }
 0x244   :  { %v837_v18 = vpop.f32.mrf.mxu1 }
 0x245   :  { %2651 = vpow2.f32 %v2266_v5  ;;  %v2267_v2 = vmul.f32 -1.442695, %v836_v3 }
 0x246   :  { %v838_v36 = vpop.f32.mrf.mxu1 }
 0x247   :  { %2653 = vpow2.f32 %v2267_v2 }
 0x252   :  { %v2652_v48 = vpop.eup %2651 }
 0x253   :  { %v884_v10 = vadd.f32 1.0, %v2652_v48 }
 0x254   :  { %v2654_v0 = vpop.eup %2653 }
 0x255   :  { %2655 = vrcp.f32 %v884_v10  ;;  %v890_v7 = vadd.f32 1.0, %v2654_v0 }
 0x257   :  { %2657 = vrcp.f32 %v890_v7 }
 0x262   :  { %v2656_v1 = vpop.eup %2655 }
 0x264   :  { %v2658_v3 = vpop.eup %2657 }
 0x265   :  { %v896_v9 = vsub.f32 1.0, %v2658_v3  ;;  %v898_v10 = vmul.f32 %v2658_v3, %v3337_v30  ;;  %v4449_v3 = vld [vmem:[#allocation32_spill] sm:$0xff] }
 0x272   :  { %v874_v56 = vpop.f32.mrf.mxu0 }
 0x273   :  { %v875_v49 = vadd.f32 %v874_v56, %v3332_v35 }
 0x274   :  { %v876_v22 = vpop.f32.mrf.mxu0 }
 0x275   :  { %v877_v23 = vadd.f32 %v876_v22, %v3330_v31  ;;  %v901_v22 = vld [vmem:[#allocation2 + $0x1] sm:$0x1] }
 0x276   :  { %v878_v18 = vpop.f32.mrf.mxu0 }
 0x277   :  { %v893_v6 = vmul.f32 %v2656_v1, %v877_v23  ;;  %v4443_v18 = vld [vmem:[#allocation26_spill] sm:$0xff] }
 0x278   :  { %v879_v5 = vpop.f32.mrf.mxu0 }
 0x279   :  { %v894_v36 = vadd.f32 %v893_v6, %v875_v49  ;;  %v4444_v49 = vld [vmem:[#allocation27_spill] sm:$0xff]  ;;  %v4445_v6 = vld [vmem:[#allocation28_spill] sm:$0xff]  ;;  %v4446_v5 = vld [vmem:[#allocation29_spill] sm:$0xff] }
 0x27b   :  { %2659 = vtanh.f32 %v894_v36  ;;  %v4448_v36 = vld [vmem:[#allocation31_spill] sm:$0xff] }
 0x288   :  { %v2660_v2 = vpop.eup %2659 }
 0x289   :  { %v897_v48 = vmul.f32 %v2660_v2, %v896_v9  ;;  %v4450_v9 = vld [vmem:[#allocation35_spill] sm:$0xff]  ;;  %v4451_v2 = vld [vmem:[#allocation36_spill] sm:$0xff] }
 0x28b   :  { %v3444_v4 = vadd.f32 %v898_v10, %v897_v48  ;;  %v4452_v48 = vld [vmem:[#allocation39_spill] sm:$0xff]  ;;  %v4453_v10 = vld [vmem:[#allocation40_spill] sm:$0xff] }
 0x28d   :  { %v900_v0 = vpack.c.bf16 %v3444_v4, %v3444_v4 }
 0x28f   :  { %v902_v7 = vsel %vm3139_vm2, %v900_v0, %v901_v22  ;;  %2401 = vmatmul.mubr.bf16.vlgmr.msra.gmra.mxu1 %v900_v0  ;;  %v4454_v0 = vld [vmem:[#allocation43_spill] sm:$0xff]  ;;  %v4455_v22 = vld [vmem:[#allocation44_spill] sm:$0xff] }
 0x290   :  { %903 = vst [vmem:[#allocation2 + $0x1] sm:$0x1] %v902_v7  ;;  %1040 = vmatpush1.bf16.msra.mxu1 %v3047_v8  ;;  %v3491_v8 = vld [vmem:[#allocation8 + $0xec] ss:$16 sps:$4 sm:$0xff]  }
 0x291   :  { %1041 = vmatprep.subr.bf16.mxu1 %v3057_v11  ;;  %4430 = vst [vmem:[#allocation38_spill] sm:$0xff] %v3491_v8  ;;  %v3503_v11 = vld [vmem:[#allocation8 + $0xe4] ss:$16 sps:$4 sm:$0xff]   ;;  %v4456_v7 = vld [vmem:[#allocation46_spill] sm:$0xff] }
 0x294   :  { %1042 = vmatpush1.bf16.msra.mxu1 %v3059_v12  ;;  %v3506_v12 = vld [vmem:[#allocation8 + $0xe0] ss:$16 sps:$4 sm:$0xff]  }
 0x295   :  { %1043 = vmatprep.subr.bf16.mxu1 %v3067_v15  ;;  %v3509_v15 = vld [vmem:[#allocation8 + $0xc4] ss:$16 sps:$4 sm:$0xff]  }
 0x297   :  { %v2269_v30 = vld.sshfl [vmem:[#allocation2] sm:$0x11 pattern:$0x75316420] }
 0x298   :  { %1044 = vmatpush1.bf16.msra.mxu1 %v3071_v16  ;;  %v981_v1 = vcombine.high %v2269_v30, %v2269_v30  ;;  %v988_v23 = vrot.slane %v2269_v30, %v3189_v37  ;;  %v3512_v16 = vld [vmem:[#allocation8 + $0xc0] ss:$16 sps:$4 sm:$0xff]   ;;  %v1165_v30 = vld [vmem:[%s1164_s15] sm:$0x1] }
 0x299   :  { %1045 = vmatprep.subr.bf16.mxu1 %v3074_v17  ;;  %v3515_v17 = vld [vmem:[#allocation8 + $0xa4] ss:$16 sps:$4 sm:$0xff]  }
 0x29a   :  { %v995_v56 = vrot.slane %v981_v1, %v3189_v37  ;;  %v1166_v1 = vmax.f32 %v1165_v30, 0.0 }
 0x29c   :  { %1046 = vmatpush1.bf16.msra.mxu1 %v3083_v20  ;;  %1030 = vmatprep.mubr.bf16.mxu0 %v995_v56  ;;  %v3518_v20 = vld [vmem:[#allocation8 + $0xa0] ss:$16 sps:$4 sm:$0xff]  }
 0x29d   :  { %1071 = vmatprep.mubr.bf16.mxu1 %v995_v56  ;;  %1031 = vmatmul.mubr.bf16.vlgmr.msra.gmra.mxu0 %v988_v23  ;;  %4431 = vst [vmem:[#allocation41_spill] sm:$0xff] %v3518_v20  ;;  %v1167_v56 = vpack.c.bf16 %v1166_v1, %v1166_v1 }
 0x29e   :  { %1047 = vmatprep.subr.bf16.mxu1 %v3086_v21  ;;  %2405 = vmatpush3.bf16.msra.mxu0 %v3276_v40  ;;  %v3521_v21 = vld [vmem:[#allocation8 + $0x84] ss:$16 sps:$4 sm:$0xff]  }
 0x29f   :  { %2406 = vmatprep.subr.bf16.mxu0 %v4395_v55  ;;  %2420 = vmatprep.mubr.msk.bf16.mxu0 %vm2967_vm3, %v4395_v55  ;;  %4432 = vst [vmem:[#allocation42_spill] sm:$0xff] %v3521_v21 }
 0x2a0   :  { %1048 = vmatpush1.bf16.msra.mxu1 %v3095_v24  ;;  %v3524_v24 = vld [vmem:[#allocation8 + $0x80] ss:$16 sps:$4 sm:$0xff]  }
 0x2a1   :  { %1049 = vmatprep.subr.bf16.mxu1 %v3100_v25  ;;  %4433 = vst [vmem:[#allocation45_spill] sm:$0xff] %v3524_v24  ;;  %v3527_v25 = vld [vmem:[#allocation8 + $0x64] ss:$16 sps:$4 sm:$0xff]  }
 0x2a2   :  { %2407 = vmatpush3.bf16.msra.mxu0 %v3282_v44  ;;  %4434 = vst [vmem:[#allocation16_spill] sm:$0xff] %v3527_v25 }
 0x2a3   :  { %2408 = vmatprep.subr.bf16.mxu0 %v4395_v55 }
 0x2a4   :  { %1050 = vmatpush1.bf16.msra.mxu1 %v3109_v28  ;;  %v3530_v28 = vld [vmem:[#allocation8 + $0x60] ss:$16 sps:$4 sm:$0xff]  }
 0x2a5   :  { %1051 = vmatprep.subr.bf16.mxu1 %v3112_v29  ;;  %4435 = vst [vmem:[#allocation17_spill] sm:$0xff] %v3530_v28  ;;  %v3533_v29 = vld [vmem:[#allocation8 + $0x44] ss:$16 sps:$4 sm:$0xff]  }
 0x2a6   :  { %2409 = vmatpush3.bf16.msra.mxu0 %v3286_v53  ;;  %4436 = vst [vmem:[#allocation18_spill] sm:$0xff] %v3533_v29 }
 0x2a7   :  { %2410 = vmatprep.subr.bf16.mxu0 %v4395_v55 }
 0x2a8   :  { %1052 = vmatpush1.bf16.msra.mxu1 %v3121_v32  ;;  %v4437_v32 = vld [vmem:[#allocation20_spill] sm:$0xff] }
 0x2a9   :  { %1053 = vmatprep.subr.bf16.mxu1 %v3124_v33  ;;  %v4438_v33 = vld [vmem:[#allocation21_spill] sm:$0xff] }
 0x2aa   :  { %2411 = vmatpush3.bf16.msra.mxu0 %v3290_v39 }
 0x2ab   :  { %2412 = vmatprep.subr.bf16.mxu0 %v4395_v55 }
 0x2ac   :  { %1054 = vmatpush1.bf16.msra.mxu1 %v3146_v41  ;;  %v4439_v41 = vld [vmem:[#allocation22_spill] sm:$0xff] }
 0x2ad   :  { %1055 = vmatprep.subr.bf16.mxu1 %v3149_v43  ;;  %v4440_v43 = vld [vmem:[#allocation23_spill] sm:$0xff] }
 0x2ae   :  { %2413 = vmatpush3.bf16.msra.mxu0 %v3293_v51 }
 0x2af   :  { %2414 = vmatprep.subr.bf16.mxu0 %v4395_v55 }
 0x2b0   :  { %1056 = vmatpush2.bf16.msra.mxu1 %v3160_v52  ;;  %v4441_v52 = vld [vmem:[#allocation24_spill] sm:$0xff] }
 0x2b1   :  { %1057 = vmatprep.subr.bf16.mxu1 %v3165_v54  ;;  %v4442_v54 = vld [vmem:[#allocation25_spill] sm:$0xff] }
 0x2b2   :  { %2415 = vmatpush3.bf16.msra.mxu0 %v3299_v47 }
 0x2b3   :  { %2416 = vmatprep.subr.bf16.mxu0 %v4395_v55 }
 0x2b4   :  { %1058 = vmatpush2.bf16.msra.mxu1 %v3176_v59 }
 0x2b5   :  { %1059 = vmatprep.subr.bf16.mxu1 %v4396_v26 }
 0x2b6   :  { %2417 = vmatpush3.bf16.msra.mxu0 %v3303_v62 }
 0x2b7   :  { %2418 = vmatprep.subr.bf16.mxu0 %v4395_v55 }
 0x2b8   :  { %1060 = vmatpush2.bf16.msra.mxu1 %v4397_v27 }
 0x2b9   :  { %1061 = vmatprep.subr.bf16.mxu1 %v4398_v46 }
 0x2ba   :  { %2419 = vmatpush3.bf16.msra.mxu0 %v3307_v61 }
 0x2bb   :  { %1238 = vmatprep.subr.bf16.mxu0 %v3491_v8 }
 0x2bc   :  { %1062 = vmatpush2.bf16.msra.mxu1 %v4399_v14 }
 0x2bd   :  { %1063 = vmatprep.subr.bf16.mxu1 %v4400_v19 }
 0x2c0   :  { %1064 = vmatpush2.bf16.msra.mxu1 %v4401_v34 }
 0x2c1   :  { %1065 = vmatprep.subr.bf16.mxu1 %v3219_v42 }
 0x2c4   :  { %1066 = vmatpush2.bf16.msra.mxu1 %v3226_v45 }
 0x2c5   :  { %1067 = vmatprep.subr.bf16.mxu1 %v3229_v63 }
 0x2c8   :  { %1068 = vmatpush2.bf16.msra.mxu1 %v3234_v50 }
 0x2c9   :  { %1069 = vmatprep.subr.bf16.mxu1 %v3237_v60 }
 0x2cc   :  { %1070 = vmatpush2.bf16.msra.mxu1 %v3240_v58 }
 0x2cd   :  { %1197 = vmatprep.subr.bf16.mxu1 %v3503_v11 }
 0x2cf   :  { %1072 = vmatmul.mubr.bf16.vlgmr.msra.gmra.mxu1 %v988_v23  ;;  %v1168_v23 = vld [vmem:[#allocation2] sm:$0x1] }
 0x2d0   :  { %1198 = vmatpush1.bf16.msra.mxu1 %v3506_v12 }
 0x2d1   :  { %1199 = vmatprep.subr.bf16.mxu1 %v3509_v15 }
 0x2d4   :  { %1200 = vmatpush1.bf16.msra.mxu1 %v3512_v16 }
 0x2d5   :  { %1201 = vmatprep.subr.bf16.mxu1 %v3515_v17 }
 0x2d8   :  { %1202 = vmatpush1.bf16.msra.mxu1 %v3518_v20 }
 0x2d9   :  { %1203 = vmatprep.subr.bf16.mxu1 %v3521_v21 }
 0x2dc   :  { %1204 = vmatpush1.bf16.msra.mxu1 %v3524_v24 }
 0x2dd   :  { %1205 = vmatprep.subr.bf16.mxu1 %v3527_v25 }
 0x2e0   :  { %1206 = vmatpush1.bf16.msra.mxu1 %v3530_v28 }
 0x2e1   :  { %1207 = vmatprep.subr.bf16.mxu1 %v3533_v29 }
 0x2e4   :  { %1208 = vmatpush1.bf16.msra.mxu1 %v4405_v13  ;;  %v4447_v13 = vld [vmem:[#allocation30_spill] sm:$0xff] }
 0x2e5   :  { %1209 = vmatprep.subr.bf16.mxu1 %v4437_v32  ;;  %v1169_v32 = vsel %vm3139_vm2, %v1167_v56, %v1168_v23 }
 0x2e6   :  { %1170 = vst [vmem:[#allocation2] sm:$0x1] %v1169_v32 }
 0x2e8   :  { %1210 = vmatpush1.bf16.msra.mxu1 %v4438_v33 }
 0x2e9   :  { %1211 = vmatprep.subr.bf16.mxu1 %v4439_v41  ;;  %v4457_v41 = vld [vmem:[#allocation34_spill] sm:$0xff] }
 0x2ec   :  { %1212 = vmatpush1.bf16.msra.mxu1 %v4440_v43 }
 0x2ed   :  { %1213 = vmatprep.subr.bf16.mxu1 %v4441_v52 }
 0x2f0   :  { %1214 = vmatpush2.bf16.msra.mxu1 %v4442_v54 }
 0x2f1   :  { %1215 = vmatprep.subr.bf16.mxu1 %v4443_v18 }
 0x2f4   :  { %1216 = vmatpush2.bf16.msra.mxu1 %v4444_v49 }
 0x2f5   :  { %1217 = vmatprep.subr.bf16.mxu1 %v4445_v6 }
 0x2f8   :  { %1218 = vmatpush2.bf16.msra.mxu1 %v4446_v5 }
 0x2f9   :  { %1219 = vmatprep.subr.bf16.mxu1 %v4447_v13 }
 0x2fc   :  { %1220 = vmatpush2.bf16.msra.mxu1 %v4448_v36 }
 0x2fd   :  { %1221 = vmatprep.subr.bf16.mxu1 %v4449_v3 }
 0x300   :  { %1222 = vmatpush2.bf16.msra.mxu1 %v4450_v9 }
 0x301   :  { %1223 = vmatprep.subr.bf16.mxu1 %v4451_v2  ;;  %v4459_v2 = vld [vmem:[#allocation49_spill] sm:$0xff] }
 0x304   :  { %1224 = vmatpush2.bf16.msra.mxu1 %v4452_v48 }
 0x305   :  { %1225 = vmatprep.subr.bf16.mxu1 %v4453_v10 }
 0x308   :  { %1226 = vmatpush2.bf16.msra.mxu1 %v4454_v0 }
 0x309   :  { %1227 = vmatprep.subr.bf16.mxu1 %v4455_v22 }
 0x30c   :  { %1228 = vmatpush2.bf16.msra.mxu1 %v4456_v7 }
 0x30d   :  { %2424 = vmatprep.subr.bf16.mxu1 %v4395_v55 }
 0x34f   :  { %v938_v33 = vpop.f32.mrf.mxu1 }
 0x350   :  { %v3561_v43 = vadd.f32 %v938_v33, %v4457_v41 }
 0x351   :  { %v2402_v52 = vpop.f32.mrf.mxu1 }
 0x352   :  { %4458 = vst [vmem:[#allocation19_spill] sm:$0xff] %v3561_v43  ;;  %v944_v54 = vsel %vm170_vm1, %v3561_v43, -inf  ;;  %v1367_v43 = vld [vmem:[#allocation2] sm:$0x1] }
 0x353   :  { %945 = vmax.xlane.f32.xlu0 %v944_v54  ;;  %v941_v18 = vpop.f32.mrf.mxu1 }
 0x355   :  { %v2403_v49 = vpop.f32.mrf.mxu1 }
 0x35d   :  { %v1032_v6 = vpop.f32.mrf.mxu0 }
 0x35e   :  { %v1033_v3 = vadd.f32 %v1032_v6, %v4428_v57 }
 0x35f   :  { %v1034_v5 = vpop.f32.mrf.mxu0 }
 0x360   :  { %v2270_v9 = vmul.f32 -1.442695, %v1033_v3  ;;  %v1035_v48 = vadd.f32 %v1034_v5, %v4459_v2 }
 0x361   :  { %v1036_v13 = vpop.f32.mrf.mxu0 }
 0x362   :  { %2661 = vpow2.f32 %v2270_v9  ;;  %v2271_v10 = vmul.f32 -1.442695, %v1035_v48 }
 0x363   :  { %v1037_v36 = vpop.f32.mrf.mxu0 }
 0x364   :  { %2663 = vpow2.f32 %v2271_v10 }
 0x36f   :  { %v2662_v30 = vpop.eup %2661 }
 0x370   :  { %v1083_v1 = vadd.f32 1.0, %v2662_v30 }
 0x371   :  { %v2664_v56 = vpop.eup %2663 }
 0x372   :  { %2665 = vrcp.f32 %v1083_v1  ;;  %v1089_v32 = vadd.f32 1.0, %v2664_v56  ;;  %v1100_v56 = vld [vmem:[#allocation2 + $0x1] sm:$0x1] }
 0x374   :  { %2667 = vrcp.f32 %v1089_v32 }
 0x37f   :  { %v2666_v54 = vpop.eup %2665 }
 0x381   :  { %v2668_v5 = vpop.eup %2667 }
 0x382   :  { %v1095_v3 = vsub.f32 1.0, %v2668_v5  ;;  %v1097_v10 = vmul.f32 %v2668_v5, %v3444_v4  ;;  %v3582_v4 = vld [vmem:[#allocation8 + $0xc8] ss:$16 sps:$4 sm:$0xff]  }
 0x383   :  { %v3596_v5 = vld [vmem:[#allocation8 + $0x88] ss:$16 sps:$4 sm:$0xff]  }
 0x38f   :  { %v1073_v23 = vpop.f32.mrf.mxu1 }
 0x390   :  { %v1074_v49 = vadd.f32 %v1073_v23, %v3332_v35  ;;  %v3576_v23 = vld [vmem:[#allocation8 + $0xe8] ss:$16 sps:$4 sm:$0xff]  }
 0x391   :  { %v1075_v33 = vpop.f32.mrf.mxu1 }
 0x392   :  { %v1076_v52 = vadd.f32 %v1075_v33, %v3330_v31  ;;  %v3579_v33 = vld [vmem:[#allocation8 + $0xcc] ss:$16 sps:$4 sm:$0xff]  }
 0x393   :  { %v1077_v18 = vpop.f32.mrf.mxu1 }
 0x394   :  { %v1092_v6 = vmul.f32 %v2666_v54, %v1076_v52  ;;  %v3585_v52 = vld [vmem:[#allocation8 + $0xac] ss:$16 sps:$4 sm:$0xff]   ;;  %v3588_v18 = vld [vmem:[#allocation8 + $0xa8] ss:$16 sps:$4 sm:$0xff]  }
 0x395   :  { %v1078_v13 = vpop.f32.mrf.mxu1 }
 0x396   :  { %v1093_v36 = vadd.f32 %v1092_v6, %v1074_v49  ;;  %v3591_v6 = vld [vmem:[#allocation8 + $0x8c] ss:$16 sps:$4 sm:$0xff]  }
 0x398   :  { %2669 = vtanh.f32 %v1093_v36 }
 0x3a5   :  { %v2670_v9 = vpop.eup %2669 }
 0x3a6   :  { %v1096_v48 = vmul.f32 %v2670_v9, %v1095_v3  ;;  %v3599_v3 = vld [vmem:[#allocation8 + $0x6c] ss:$16 sps:$4 sm:$0xff]   ;;  %v3606_v9 = vld [vmem:[#allocation8 + $0x68] ss:$16 sps:$4 sm:$0xff]  }
 0x3a8   :  { %v3570_v30 = vadd.f32 %v1097_v10, %v1096_v48  ;;  %v3609_v48 = vld [vmem:[#allocation8 + $0x4c] ss:$16 sps:$4 sm:$0xff]   ;;  %v3614_v10 = vld [vmem:[#allocation8 + $0x48] ss:$16 sps:$4 sm:$0xff]  }
 0x3aa   :  { %v1099_v1 = vpack.c.bf16 %v3570_v30, %v3570_v30 }
 0x3ac   :  { %v1101_v32 = vsel %vm3139_vm2, %v1099_v1, %v1100_v56  ;;  %2421 = vmatmul.mubr.bf16.vlgmr.msra.gmra.mxu0 %v1099_v1  ;;  %v3622_v1 = vld [vmem:[#allocation8 + $0x28] ss:$16 sps:$4 sm:$0xff]   ;;  %v3625_v56 = vld [vmem:[#allocation8 + $0xc] ss:$16 sps:$4 sm:$0xff]  }
 0x3ad   :  { %1102 = vst [vmem:[#allocation2 + $0x1] sm:$0x1] %v1101_v32  ;;  %1239 = vmatpush1.bf16.msra.mxu0 %v3576_v23  ;;  %v3633_v32 = vld [vmem:[#allocation8 + $0x1ec] ss:$16 sps:$4 sm:$0xff]  }
 0x3ae   :  { %1240 = vmatprep.subr.bf16.mxu0 %v3579_v33 }
 0x3b1   :  { %1241 = vmatpush1.bf16.msra.mxu0 %v3582_v4 }
 0x3b2   :  { %1242 = vmatprep.subr.bf16.mxu0 %v3585_v52 }
 0x3b4   :  { %v2273_v54 = vld.sshfl [vmem:[#allocation2] sm:$0x11 pattern:$0x75316420] }
 0x3b5   :  { %1243 = vmatpush1.bf16.msra.mxu0 %v3588_v18  ;;  %v1180_v49 = vcombine.high %v2273_v54, %v2273_v54  ;;  %v1187_v36 = vrot.slane %v2273_v54, %v3189_v37  ;;  %v3641_v54 = vld [vmem:[#allocation8 + $0x1cc] ss:$16 sps:$4 sm:$0xff]  }
 0x3b6   :  { %1244 = vmatprep.subr.bf16.mxu0 %v3591_v6 }
 0x3b7   :  { %v1194_v13 = vrot.slane %v1180_v49, %v3189_v37  ;;  %v1364_v49 = vld [vmem:[%s1363_s16] sm:$0x1] }
 0x3b9   :  { %1245 = vmatpush1.bf16.msra.mxu0 %v3596_v5  ;;  %1229 = vmatprep.mubr.bf16.mxu1 %v1194_v13 }
 0x3ba   :  { %1270 = vmatprep.mubr.bf16.mxu0 %v1194_v13  ;;  %1230 = vmatmul.mubr.bf16.vlgmr.msra.gmra.mxu1 %v1187_v36  ;;  %v1365_v13 = vmax.f32 %v1364_v49, 0.0 }
 0x3bb   :  { %1246 = vmatprep.subr.bf16.mxu0 %v3599_v3  ;;  %2425 = vmatpush3.bf16.msra.mxu1 %v3276_v40  ;;  %v3617_v40 = vld [vmem:[#allocation8 + $0x2c] ss:$16 sps:$4 sm:$0xff]  }
 0x3bc   :  { %2426 = vmatprep.subr.bf16.mxu1 %v4395_v55  ;;  %2440 = vmatprep.mubr.msk.bf16.mxu1 %vm2967_vm3, %v4395_v55 }
 0x3bd   :  { %1247 = vmatpush1.bf16.msra.mxu0 %v3606_v9 }
 0x3be   :  { %1248 = vmatprep.subr.bf16.mxu0 %v3609_v48 }
 0x3bf   :  { %2427 = vmatpush3.bf16.msra.mxu1 %v3282_v44  ;;  %v3630_v44 = vld [vmem:[#allocation8 + $0x8] ss:$16 sps:$4 sm:$0xff]  }
 0x3c0   :  { %2428 = vmatprep.subr.bf16.mxu1 %v4395_v55 }
 0x3c1   :  { %1249 = vmatpush1.bf16.msra.mxu0 %v3614_v10 }
 0x3c2   :  { %1250 = vmatprep.subr.bf16.mxu0 %v3617_v40 }
 0x3c3   :  { %2429 = vmatpush3.bf16.msra.mxu1 %v3286_v53  ;;  %v3638_v53 = vld [vmem:[#allocation8 + $0x1e8] ss:$16 sps:$4 sm:$0xff]  }
 0x3c4   :  { %2430 = vmatprep.subr.bf16.mxu1 %v4395_v55 }
 0x3c5   :  { %1251 = vmatpush1.bf16.msra.mxu0 %v3622_v1 }
 0x3c6   :  { %1252 = vmatprep.subr.bf16.mxu0 %v3625_v56 }
 0x3c7   :  { %2431 = vmatpush3.bf16.msra.mxu1 %v3290_v39  ;;  %v3689_v39 = vld [vmem:[#allocation8 + $0x1e4] ss:$16 sps:$4 sm:$0xff]  }
 0x3c8   :  { %2432 = vmatprep.subr.bf16.mxu1 %v4395_v55  ;;  %4465 = vst [vmem:[#allocation24_spill] sm:$0xff] %v3689_v39 }
 0x3c9   :  { %1253 = vmatpush1.bf16.msra.mxu0 %v3630_v44 }
 0x3ca   :  { %1254 = vmatprep.subr.bf16.mxu0 %v3633_v32 }
 0x3cb   :  { %2433 = vmatpush3.bf16.msra.mxu1 %v3293_v51  ;;  %v3698_v51 = vld [vmem:[#allocation8 + $0x1c0] ss:$16 sps:$4 sm:$0xff]  }
 0x3cc   :  { %2434 = vmatprep.subr.bf16.mxu1 %v4395_v55  ;;  %4468 = vst [vmem:[#allocation27_spill] sm:$0xff] %v3698_v51 }
 0x3cd   :  { %1255 = vmatpush2.bf16.msra.mxu0 %v3638_v53 }
 0x3ce   :  { %1256 = vmatprep.subr.bf16.mxu0 %v3641_v54 }
 0x3cf   :  { %2435 = vmatpush3.bf16.msra.mxu1 %v3299_v47  ;;  %v3692_v47 = vld [vmem:[#allocation8 + $0x1e0] ss:$16 sps:$4 sm:$0xff]  }
 0x3d0   :  { %2436 = vmatprep.subr.bf16.mxu1 %v4395_v55  ;;  %4466 = vst [vmem:[#allocation25_spill] sm:$0xff] %v3692_v47 }
 0x3d1   :  { %1257 = vmatpush2.bf16.msra.mxu0 %v3176_v59  ;;  %v3674_v59 = vld [vmem:[#allocation8 + $0x40] ss:$16 sps:$4 sm:$0xff]  }
 0x3d2   :  { %1258 = vmatprep.subr.bf16.mxu0 %v4396_v26  ;;  %4460 = vst [vmem:[#allocation48_spill] sm:$0xff] %v3674_v59  ;;  %v3710_v26 = vld [vmem:[#allocation8 + $0x180] ss:$16 sps:$4 sm:$0xff]  }
 0x3d3   :  { %2437 = vmatpush3.bf16.msra.mxu1 %v3303_v62  ;;  %v3683_v62 = vld [vmem:[#allocation8 + $0x4] ss:$16 sps:$4 sm:$0xff]   ;;  %4472 = vst [vmem:[#allocation31_spill] sm:$0xff] %v3710_v26 }
 0x3d4   :  { %2438 = vmatprep.subr.bf16.mxu1 %v4395_v55  ;;  %4463 = vst [vmem:[#allocation22_spill] sm:$0xff] %v3683_v62 }
 0x3d5   :  { %1259 = vmatpush2.bf16.msra.mxu0 %v4397_v27  ;;  %v3713_v27 = vld [vmem:[#allocation8 + $0x164] ss:$16 sps:$4 sm:$0xff]  }
 0x3d6   :  { %1260 = vmatprep.subr.bf16.mxu0 %v4398_v46  ;;  %4473 = vst [vmem:[#allocation32_spill] sm:$0xff] %v3713_v27  ;;  %v3716_v46 = vld [vmem:[#allocation8 + $0x160] ss:$16 sps:$4 sm:$0xff]  }
 0x3d7   :  { %2439 = vmatpush3.bf16.msra.mxu1 %v3307_v61  ;;  %v3680_v61 = vld [vmem:[#allocation8 + $0x20] ss:$16 sps:$4 sm:$0xff]   ;;  %4474 = vst [vmem:[#allocation35_spill] sm:$0xff] %v3716_v46 }
 0x3d8   :  { %1437 = vmatprep.subr.bf16.mxu1 %v3491_v8  ;;  %4462 = vst [vmem:[#allocation21_spill] sm:$0xff] %v3680_v61 }
 0x3d9   :  { %1261 = vmatpush2.bf16.msra.mxu0 %v4399_v14  ;;  %v3719_v14 = vld [vmem:[#allocation8 + $0x144] ss:$16 sps:$4 sm:$0xff]  }
 0x3da   :  { %1262 = vmatprep.subr.bf16.mxu0 %v4400_v19  ;;  %4475 = vst [vmem:[#allocation36_spill] sm:$0xff] %v3719_v14  ;;  %v3722_v19 = vld [vmem:[#allocation8 + $0x140] ss:$16 sps:$4 sm:$0xff]  }
 0x3db   :  { %4476 = vst [vmem:[#allocation39_spill] sm:$0xff] %v3722_v19 }
 0x3dd   :  { %1263 = vmatpush2.bf16.msra.mxu0 %v4401_v34  ;;  %v3725_v34 = vld [vmem:[#allocation8 + $0x124] ss:$16 sps:$4 sm:$0xff]  }
 0x3de   :  { %1264 = vmatprep.subr.bf16.mxu0 %v3219_v42  ;;  %v3704_v42 = vld [vmem:[#allocation8 + $0x1a0] ss:$16 sps:$4 sm:$0xff]   ;;  %4477 = vst [vmem:[#allocation40_spill] sm:$0xff] %v3725_v34 }
 0x3df   :  { %4470 = vst [vmem:[#allocation29_spill] sm:$0xff] %v3704_v42 }
 0x3e1   :  { %1265 = vmatpush2.bf16.msra.mxu0 %v3226_v45  ;;  %v3707_v45 = vld [vmem:[#allocation8 + $0x184] ss:$16 sps:$4 sm:$0xff]  }
 0x3e2   :  { %1266 = vmatprep.subr.bf16.mxu0 %v3229_v63  ;;  %v3686_v63 = vld [vmem:[#allocation8] ss:$16 sps:$4 sm:$0xff]   ;;  %4471 = vst [vmem:[#allocation30_spill] sm:$0xff] %v3707_v45 }
 0x3e3   :  { %4464 = vst [vmem:[#allocation23_spill] sm:$0xff] %v3686_v63 }
 0x3e5   :  { %1267 = vmatpush2.bf16.msra.mxu0 %v3234_v50  ;;  %v3695_v50 = vld [vmem:[#allocation8 + $0x1c4] ss:$16 sps:$4 sm:$0xff]  }
 0x3e6   :  { %1268 = vmatprep.subr.bf16.mxu0 %v3237_v60  ;;  %v3677_v60 = vld [vmem:[#allocation8 + $0x24] ss:$16 sps:$4 sm:$0xff]   ;;  %4467 = vst [vmem:[#allocation26_spill] sm:$0xff] %v3695_v50 }
 0x3e7   :  { %4461 = vst [vmem:[#allocation20_spill] sm:$0xff] %v3677_v60 }
 0x3e9   :  { %1269 = vmatpush2.bf16.msra.mxu0 %v3240_v58  ;;  %v3701_v58 = vld [vmem:[#allocation8 + $0x1a4] ss:$16 sps:$4 sm:$0xff]  }
 0x3ea   :  { %1396 = vmatprep.subr.bf16.mxu0 %v3503_v11  ;;  %4469 = vst [vmem:[#allocation28_spill] sm:$0xff] %v3701_v58 }
 0x3ec   :  { %1271 = vmatmul.mubr.bf16.vlgmr.msra.gmra.mxu0 %v1187_v36  ;;  %v1366_v36 = vpack.c.bf16 %v1365_v13, %v1365_v13 }
 0x3ed   :  { %1397 = vmatpush1.bf16.msra.mxu0 %v3506_v12 }
 0x3ee   :  { %1398 = vmatprep.subr.bf16.mxu0 %v3509_v15 }
 0x3f1   :  { %1399 = vmatpush1.bf16.msra.mxu0 %v3512_v16 }
 0x3f2   :  { %1400 = vmatprep.subr.bf16.mxu0 %v3515_v17 }
 0x3f5   :  { %1401 = vmatpush1.bf16.msra.mxu0 %v3518_v20 }
 0x3f6   :  { %1402 = vmatprep.subr.bf16.mxu0 %v3521_v21 }
 0x3f9   :  { %1403 = vmatpush1.bf16.msra.mxu0 %v3524_v24 }
 0x3fa   :  { %1404 = vmatprep.subr.bf16.mxu0 %v3527_v25 }
 0x3fd   :  { %1405 = vmatpush1.bf16.msra.mxu0 %v3530_v28 }
 0x3fe   :  { %1406 = vmatprep.subr.bf16.mxu0 %v3533_v29 }
 0x401   :  { %1407 = vmatpush1.bf16.msra.mxu0 %v3674_v59 }
 0x402   :  { %1408 = vmatprep.subr.bf16.mxu0 %v3677_v60 }
 0x405   :  { %1409 = vmatpush1.bf16.msra.mxu0 %v3680_v61 }
 0x406   :  { %1410 = vmatprep.subr.bf16.mxu0 %v3683_v62 }
 0x409   :  { %1411 = vmatpush1.bf16.msra.mxu0 %v3686_v63 }
 0x40a   :  { %1412 = vmatprep.subr.bf16.mxu0 %v3689_v39 }
 0x40d   :  { %1413 = vmatpush2.bf16.msra.mxu0 %v3692_v47 }
 0x40e   :  { %1414 = vmatprep.subr.bf16.mxu0 %v3695_v50 }
 0x411   :  { %1415 = vmatpush2.bf16.msra.mxu0 %v3698_v51 }
 0x412   :  { %1416 = vmatprep.subr.bf16.mxu0 %v3701_v58 }
 0x415   :  { %1417 = vmatpush2.bf16.msra.mxu0 %v3704_v42 }
 0x416   :  { %1418 = vmatprep.subr.bf16.mxu0 %v3707_v45 }
 0x419   :  { %1419 = vmatpush2.bf16.msra.mxu0 %v3710_v26 }
 0x41a   :  { %1420 = vmatprep.subr.bf16.mxu0 %v3713_v27 }
 0x41d   :  { %1421 = vmatpush2.bf16.msra.mxu0 %v3716_v46 }
 0x41e   :  { %1422 = vmatprep.subr.bf16.mxu0 %v3719_v14 }
 0x421   :  { %1423 = vmatpush2.bf16.msra.mxu0 %v3722_v19  ;;  %v1368_v19 = vsel %vm3139_vm2, %v1366_v36, %v1367_v43 }
 0x422   :  { %1424 = vmatprep.subr.bf16.mxu0 %v3725_v34  ;;  %1369 = vst [vmem:[#allocation2] sm:$0x1] %v1368_v19 }
 0x425   :  { %1425 = vmatpush2.bf16.msra.mxu0 %v4454_v0 }
 0x426   :  { %1426 = vmatprep.subr.bf16.mxu0 %v4455_v22 }
 0x429   :  { %1427 = vmatpush2.bf16.msra.mxu0 %v4456_v7 }
 0x42a   :  { %2444 = vmatprep.subr.bf16.mxu0 %v4395_v55 }
 0x46c   :  { %v1137_v14 = vpop.f32.mrf.mxu0 }
 0x46d   :  { %v3735_v34 = vadd.f32 %v1137_v14, %v4457_v41 }
 0x46e   :  { %v2422_v0 = vpop.f32.mrf.mxu0 }
 0x46f   :  { %4478 = vst [vmem:[#allocation43_spill] sm:$0xff] %v3735_v34  ;;  %v1143_v22 = vsel %vm170_vm1, %v3735_v34, -inf }
 0x470   :  { %1144 = vmax.xlane.f32.xlu1 %v1143_v22  ;;  %v1140_v7 = vpop.f32.mrf.mxu0 }
 0x472   :  { %v2423_v46 = vpop.f32.mrf.mxu0 }
 0x47a   :  { %v1231_v27 = vpop.f32.mrf.mxu1 }
 0x47b   :  { %v1232_v45 = vadd.f32 %v1231_v27, %v4428_v57 }
 0x47c   :  { %v1233_v26 = vpop.f32.mrf.mxu1 }
 0x47d   :  { %v2274_v42 = vmul.f32 -1.442695, %v1232_v45  ;;  %v1234_v43 = vadd.f32 %v1233_v26, %v4459_v2 }
 0x47e   :  { %v1235_v49 = vpop.f32.mrf.mxu1 }
 0x47f   :  { %2671 = vpow2.f32 %v2274_v42  ;;  %v2275_v19 = vmul.f32 -1.442695, %v1234_v43 }
 0x480   :  { %v1236_v13 = vpop.f32.mrf.mxu1 }
 0x481   :  { %2673 = vpow2.f32 %v2275_v19 }
 0x48c   :  { %v2672_v14 = vpop.eup %2671 }
 0x48d   :  { %v1282_v36 = vadd.f32 1.0, %v2672_v14 }
 0x48e   :  { %v2674_v0 = vpop.eup %2673 }
 0x48f   :  { %2675 = vrcp.f32 %v1282_v36  ;;  %v1288_v22 = vadd.f32 1.0, %v2674_v0 }
 0x491   :  { %2677 = vrcp.f32 %v1288_v22 }
 0x49c   :  { %v2676_v41 = vpop.eup %2675 }
 0x49e   :  { %v2678_v26 = vpop.eup %2677 }
 0x49f   :  { %v1294_v43 = vsub.f32 1.0, %v2678_v26  ;;  %v1296_v36 = vmul.f32 %v2678_v26, %v3570_v30  ;;  %v3795_v26 = vld [vmem:[#allocation10 + $0x10] sm:$0xff]  }
 0x4ac   :  { %v1272_v34 = vpop.f32.mrf.mxu0 }
 0x4ad   :  { %v1273_v27 = vadd.f32 %v1272_v34, %v3332_v35 }
 0x4ae   :  { %v1274_v7 = vpop.f32.mrf.mxu0 }
 0x4af   :  { %v1275_v46 = vadd.f32 %v1274_v7, %v3330_v31  ;;  %v1299_v7 = vld [vmem:[#allocation2 + $0x1] sm:$0x1] }
 0x4b0   :  { %v1276_v49 = vpop.f32.mrf.mxu0 }
 0x4b1   :  { %v1291_v45 = vmul.f32 %v2676_v41, %v1275_v46  ;;  %v3763_v49 = vld [vmem:[#allocation10 + $0x38] sm:$0xff]  }
 0x4b2   :  { %v1277_v42 = vpop.f32.mrf.mxu0 }
 0x4b3   :  { %v1292_v13 = vadd.f32 %v1291_v45, %v1273_v27  ;;  %v3771_v27 = vld [vmem:[#allocation10 + $0x30] sm:$0xff]   ;;  %v3777_v45 = vld [vmem:[#allocation10 + $0x28] sm:$0xff]   ;;  %v3783_v42 = vld [vmem:[#allocation10 + $0x20] sm:$0xff]  }
 0x4b5   :  { %2679 = vtanh.f32 %v1292_v13  ;;  %v3789_v13 = vld [vmem:[#allocation10 + $0x18] sm:$0xff]  }
 0x4c2   :  { %v2680_v19 = vpop.eup %2679 }
 0x4c3   :  { %v1295_v14 = vmul.f32 %v2680_v19, %v1294_v43  ;;  %v3799_v43 = vld [vmem:[#allocation8 + $0x1c8] ss:$16 sps:$4 sm:$0xff]   ;;  %v3802_v19 = vld [vmem:[#allocation8 + $0x1ac] ss:$16 sps:$4 sm:$0xff]  }
 0x4c5   :  { %v3744_v2 = vadd.f32 %v1296_v36, %v1295_v14  ;;  %v3805_v14 = vld [vmem:[#allocation10 + $0x8] sm:$0xff]  }
 0x4c6   :  { %v3809_v36 = vld [vmem:[#allocation8 + $0x1a8] ss:$16 sps:$4 sm:$0xff]  }
 0x4c7   :  { %v1298_v0 = vpack.c.bf16 %v3744_v2, %v3744_v2 }
 0x4c9   :  { %v1300_v22 = vsel %vm3139_vm2, %v1298_v0, %v1299_v7  ;;  %2441 = vmatmul.mubr.bf16.vlgmr.msra.gmra.mxu1 %v1298_v0  ;;  %v3812_v0 = vld [vmem:[#allocation8 + $0x18c] ss:$16 sps:$4 sm:$0xff]   ;;  %v3815_v7 = vld [vmem:[#allocation10] sm:$0xff]  }
 0x4ca   :  { %1301 = vst [vmem:[#allocation2 + $0x1] sm:$0x1] %v1300_v22  ;;  %1438 = vmatpush1.bf16.msra.mxu1 %v3576_v23  ;;  %4479 = vst [vmem:[#allocation44_spill] sm:$0xff] %v3812_v0  ;;  %v3819_v22 = vld [vmem:[#allocation8 + $0x188] ss:$16 sps:$4 sm:$0xff]  }
 0x4cb   :  { %1439 = vmatprep.subr.bf16.mxu1 %v3579_v33  ;;  %4480 = vst [vmem:[#allocation46_spill] sm:$0xff] %v3819_v22 }
 0x4ce   :  { %1440 = vmatpush1.bf16.msra.mxu1 %v3582_v4 }
 0x4cf   :  { %1441 = vmatprep.subr.bf16.mxu1 %v3585_v52 }
 0x4d1   :  { %v2277_v41 = vld.sshfl [vmem:[#allocation2] sm:$0x11 pattern:$0x75316420] }
 0x4d2   :  { %1442 = vmatpush1.bf16.msra.mxu1 %v3588_v18  ;;  %v1379_v30 = vcombine.high %v2277_v41, %v2277_v41  ;;  %v3758_v46 = vrot.slane %v2277_v41, %v3189_v37  ;;  %v3822_v41 = vld [vmem:[#allocation8 + $0x16c] ss:$16 sps:$4 sm:$0xff]  }
 0x4d3   :  { %1443 = vmatprep.subr.bf16.mxu1 %v3591_v6  ;;  %4481 = vst [vmem:[#allocation50_spill] sm:$0xff] %v3822_v41 }
 0x4d4   :  { %v1393_v34 = vrot.slane %v1379_v30, %v3189_v37  ;;  %v3825_v30 = vld [vmem:[#allocation8 + $0x168] ss:$16 sps:$4 sm:$0xff]  }
 0x4d5   :  { %4482 = vst [vmem:[#allocation51_spill] sm:$0xff] %v3825_v30 }
 0x4d6   :  { %1444 = vmatpush1.bf16.msra.mxu1 %v3596_v5  ;;  %1428 = vmatprep.mubr.bf16.mxu0 %v1393_v34 }
 0x4d7   :  { %1469 = vmatprep.mubr.bf16.mxu1 %v1393_v34  ;;  %1429 = vmatmul.mubr.bf16.vlgmr.msra.gmra.mxu0 %v3758_v46  ;;  %v3828_v34 = vld [vmem:[#allocation8 + $0x14c] ss:$16 sps:$4 sm:$0xff]  }
 0x4d8   :  { %1445 = vmatprep.subr.bf16.mxu1 %v3599_v3  ;;  %2445 = vmatpush3.bf16.msra.mxu0 %v3763_v49 }
 0x4d9   :  { %2446 = vmatprep.subr.bf16.mxu0 %v4395_v55  ;;  %2460 = vmatprep.mubr.msk.bf16.mxu0 %vm2967_vm3, %v4395_v55 }
 0x4da   :  { %1446 = vmatpush1.bf16.msra.mxu1 %v3606_v9 }
 0x4db   :  { %1447 = vmatprep.subr.bf16.mxu1 %v3609_v48 }
 0x4dc   :  { %2447 = vmatpush3.bf16.msra.mxu0 %v3771_v27 }
 0x4dd   :  { %2448 = vmatprep.subr.bf16.mxu0 %v4395_v55 }
 0x4de   :  { %1448 = vmatpush1.bf16.msra.mxu1 %v3614_v10 }
 0x4df   :  { %1449 = vmatprep.subr.bf16.mxu1 %v3617_v40 }
 0x4e0   :  { %2449 = vmatpush3.bf16.msra.mxu0 %v3777_v45 }
 0x4e1   :  { %2450 = vmatprep.subr.bf16.mxu0 %v4395_v55 }
 0x4e2   :  { %1450 = vmatpush1.bf16.msra.mxu1 %v3622_v1 }
 0x4e3   :  { %1451 = vmatprep.subr.bf16.mxu1 %v3625_v56 }
 0x4e4   :  { %2451 = vmatpush3.bf16.msra.mxu0 %v3783_v42 }
 0x4e5   :  { %2452 = vmatprep.subr.bf16.mxu0 %v4395_v55 }
 0x4e6   :  { %1452 = vmatpush1.bf16.msra.mxu1 %v3630_v44 }
 0x4e7   :  { %1453 = vmatprep.subr.bf16.mxu1 %v3633_v32 }
 0x4e8   :  { %2453 = vmatpush3.bf16.msra.mxu0 %v3789_v13 }
 0x4e9   :  { %2454 = vmatprep.subr.bf16.mxu0 %v4395_v55 }
 0x4ea   :  { %1454 = vmatpush2.bf16.msra.mxu1 %v3638_v53 }
 0x4eb   :  { %1455 = vmatprep.subr.bf16.mxu1 %v3641_v54 }
 0x4ec   :  { %2455 = vmatpush3.bf16.msra.mxu0 %v3795_v26 }
 0x4ed   :  { %2456 = vmatprep.subr.bf16.mxu0 %v4395_v55 }
 0x4ee   :  { %1456 = vmatpush2.bf16.msra.mxu1 %v3799_v43 }
 0x4ef   :  { %1457 = vmatprep.subr.bf16.mxu1 %v3802_v19 }
 0x4f0   :  { %2457 = vmatpush3.bf16.msra.mxu0 %v3805_v14 }
 0x4f1   :  { %2458 = vmatprep.subr.bf16.mxu0 %v4395_v55 }
 0x4f2   :  { %1458 = vmatpush2.bf16.msra.mxu1 %v3809_v36 }
 0x4f3   :  { %1459 = vmatprep.subr.bf16.mxu1 %v3812_v0  ;;  %v3831_v0 = vld [vmem:[#allocation8 + $0x148] ss:$16 sps:$4 sm:$0xff]  }
 0x4f4   :  { %2459 = vmatpush3.bf16.msra.mxu0 %v3815_v7 }
 0x4f5   :  { %1636 = vmatprep.subr.bf16.mxu0 %v3491_v8  ;;  %v3834_v8 = vld [vmem:[#allocation8 + $0x12c] ss:$16 sps:$4 sm:$0xff]  }
 0x4f6   :  { %1460 = vmatpush2.bf16.msra.mxu1 %v3819_v22  ;;  %v3837_v22 = vld [vmem:[#allocation8 + $0x128] ss:$16 sps:$4 sm:$0xff]  }
 0x4f7   :  { %1461 = vmatprep.subr.bf16.mxu1 %v3822_v41  ;;  %v3840_v41 = vld [vmem:[#allocation8 + $0x10c] ss:$16 sps:$4 sm:$0xff]  }
 0x4fa   :  { %1462 = vmatpush2.bf16.msra.mxu1 %v3825_v30  ;;  %v3843_v30 = vld [vmem:[#allocation8 + $0x108] ss:$16 sps:$4 sm:$0xff]  }
 0x4fb   :  { %1463 = vmatprep.subr.bf16.mxu1 %v3828_v34 }
 0x4fe   :  { %1464 = vmatpush2.bf16.msra.mxu1 %v3831_v0 }
 0x4ff   :  { %1465 = vmatprep.subr.bf16.mxu1 %v3834_v8 }
 0x502   :  { %1466 = vmatpush2.bf16.msra.mxu1 %v3837_v22 }
 0x503   :  { %1467 = vmatprep.subr.bf16.mxu1 %v3840_v41 }
 0x506   :  { %1468 = vmatpush2.bf16.msra.mxu1 %v3843_v30 }
 0x507   :  { %1595 = vmatprep.subr.bf16.mxu1 %v3503_v11 }
 0x509   :  { %1470 = vmatmul.mubr.bf16.vlgmr.msra.gmra.mxu1 %v3758_v46  ;;  %v4483_v46 = vld [vmem:[#allocation29_spill] sm:$0xff] }
 0x50a   :  { %1596 = vmatpush1.bf16.msra.mxu1 %v3506_v12 }
 0x50b   :  { %1597 = vmatprep.subr.bf16.mxu1 %v3509_v15 }
 0x50e   :  { %1598 = vmatpush1.bf16.msra.mxu1 %v3512_v16 }
 0x50f   :  { %1599 = vmatprep.subr.bf16.mxu1 %v3515_v17 }
 0x512   :  { %1600 = vmatpush1.bf16.msra.mxu1 %v3518_v20 }
 0x513   :  { %1601 = vmatprep.subr.bf16.mxu1 %v3521_v21 }
 0x516   :  { %1602 = vmatpush1.bf16.msra.mxu1 %v3524_v24 }
 0x517   :  { %1603 = vmatprep.subr.bf16.mxu1 %v3527_v25 }
 0x51a   :  { %1604 = vmatpush1.bf16.msra.mxu1 %v3530_v28 }
 0x51b   :  { %1605 = vmatprep.subr.bf16.mxu1 %v3533_v29 }
 0x51e   :  { %1606 = vmatpush1.bf16.msra.mxu1 %v3674_v59  ;;  %v4484_v59 = vld [vmem:[#allocation30_spill] sm:$0xff] }
 0x51f   :  { %1607 = vmatprep.subr.bf16.mxu1 %v3677_v60  ;;  %v4485_v60 = vld [vmem:[#allocation31_spill] sm:$0xff] }
 0x522   :  { %1608 = vmatpush1.bf16.msra.mxu1 %v3680_v61  ;;  %v4486_v61 = vld [vmem:[#allocation32_spill] sm:$0xff] }
 0x523   :  { %1609 = vmatprep.subr.bf16.mxu1 %v3683_v62  ;;  %v4487_v62 = vld [vmem:[#allocation35_spill] sm:$0xff] }
 0x526   :  { %1610 = vmatpush1.bf16.msra.mxu1 %v3686_v63  ;;  %v4488_v63 = vld [vmem:[#allocation36_spill] sm:$0xff] }
 0x527   :  { %1611 = vmatprep.subr.bf16.mxu1 %v3689_v39  ;;  %v4489_v39 = vld [vmem:[#allocation39_spill] sm:$0xff] }
 0x52a   :  { %1612 = vmatpush2.bf16.msra.mxu1 %v3692_v47  ;;  %v4490_v47 = vld [vmem:[#allocation40_spill] sm:$0xff] }
 0x52b   :  { %1613 = vmatprep.subr.bf16.mxu1 %v3695_v50  ;;  %v3876_v50 = vld [vmem:[#allocation8 + $0x120] ss:$16 sps:$4 sm:$0xff]  }
 0x52c   :  { %4491 = vst [vmem:[#allocation52_spill] sm:$0xff] %v3876_v50 }
 0x52e   :  { %1614 = vmatpush2.bf16.msra.mxu1 %v3698_v51 }
 0x52f   :  { %1615 = vmatprep.subr.bf16.mxu1 %v3701_v58  ;;  %v3879_v58 = vld [vmem:[#allocation8 + $0x104] ss:$16 sps:$4 sm:$0xff]  }
 0x530   :  { %4492 = vst [vmem:[#allocation53_spill] sm:$0xff] %v3879_v58 }
 0x532   :  { %1616 = vmatpush2.bf16.msra.mxu1 %v4483_v46 }
 0x533   :  { %1617 = vmatprep.subr.bf16.mxu1 %v4484_v59  ;;  %v3882_v59 = vld [vmem:[#allocation8 + $0x100] ss:$16 sps:$4 sm:$0xff]  }
 0x534   :  { %4493 = vst [vmem:[#allocation54_spill] sm:$0xff] %v3882_v59 }
 0x536   :  { %1618 = vmatpush2.bf16.msra.mxu1 %v4485_v60  ;;  %v4494_v60 = vld [vmem:[#allocation34_spill] sm:$0xff] }
 0x537   :  { %1619 = vmatprep.subr.bf16.mxu1 %v4486_v61 }
 0x53a   :  { %1620 = vmatpush2.bf16.msra.mxu1 %v4487_v62  ;;  %v1566_v62 = vld [vmem:[#allocation2] sm:$0x1] }
 0x53b   :  { %1621 = vmatprep.subr.bf16.mxu1 %v4488_v63  ;;  %v1563_v63 = vld [vmem:[%s1562_s18] sm:$0x1] }
 0x53e   :  { %1622 = vmatpush2.bf16.msra.mxu1 %v4489_v39  ;;  %v1564_v39 = vmax.f32 %v1563_v63, 0.0 }
 0x53f   :  { %1623 = vmatprep.subr.bf16.mxu1 %v4490_v47 }
 0x540   :  { %v1565_v47 = vpack.c.bf16 %v1564_v39, %v1564_v39 }
 0x542   :  { %1624 = vmatpush2.bf16.msra.mxu1 %v3876_v50  ;;  %v1567_v61 = vsel %vm3139_vm2, %v1565_v47, %v1566_v62 }
 0x543   :  { %1625 = vmatprep.subr.bf16.mxu1 %v3879_v58  ;;  %1568 = vst [vmem:[#allocation2] sm:$0x1] %v1567_v61  ;;  %v4496_v61 = vld [vmem:[#allocation49_spill] sm:$0xff] }
 0x546   :  { %1626 = vmatpush2.bf16.msra.mxu1 %v3882_v59 }
 0x547   :  { %2464 = vmatprep.subr.bf16.mxu1 %v4395_v55 }
 0x589   :  { %v1336_v50 = vpop.f32.mrf.mxu1 }
 0x58a   :  { %v3889_v46 = vadd.f32 %v1336_v50, %v4494_v60 }
 0x58b   :  { %v2442_v58 = vpop.f32.mrf.mxu1 }
 0x58c   :  { %4495 = vst [vmem:[#allocation34_spill] sm:$0xff] %v3889_v46  ;;  %v1342_v59 = vsel %vm170_vm1, %v3889_v46, -inf }
 0x58d   :  { %1343 = vmax.xlane.f32.xlu1 %v1342_v59  ;;  %v1339_v51 = vpop.f32.mrf.mxu1 }
 0x58f   :  { %v2443_v29 = vpop.f32.mrf.mxu1 }
 0x597   :  { %v1430_v28 = vpop.f32.mrf.mxu0 }
 0x598   :  { %v1431_v39 = vadd.f32 %v1430_v28, %v4428_v57 }
 0x599   :  { %v1432_v25 = vpop.f32.mrf.mxu0 }
 0x59a   :  { %v2278_v21 = vmul.f32 -1.442695, %v1431_v39  ;;  %v1433_v62 = vadd.f32 %v1432_v25, %v4496_v61 }
 0x59b   :  { %v1434_v63 = vpop.f32.mrf.mxu0 }
 0x59c   :  { %2681 = vpow2.f32 %v2278_v21  ;;  %v2279_v47 = vmul.f32 -1.442695, %v1433_v62 }
 0x59d   :  { %v1435_v24 = vpop.f32.mrf.mxu0 }
 0x59e   :  { %2683 = vpow2.f32 %v2279_v47 }
 0x5a9   :  { %v2682_v60 = vpop.eup %2681 }
 0x5aa   :  { %v1481_v50 = vadd.f32 1.0, %v2682_v60 }
 0x5ab   :  { %v2684_v58 = vpop.eup %2683 }
 0x5ac   :  { %2685 = vrcp.f32 %v1481_v50  ;;  %v1487_v59 = vadd.f32 1.0, %v2684_v58  ;;  %v1762_v58 = vld [vmem:[%s1761_s20] sm:$0x1] }
 0x5ae   :  { %2687 = vrcp.f32 %v1487_v59 }
 0x5b9   :  { %v2686_v20 = vpop.eup %2685 }
 0x5bb   :  { %v2688_v25 = vpop.eup %2687 }
 0x5bc   :  { %v1493_v62 = vsub.f32 1.0, %v2688_v25  ;;  %v1495_v50 = vmul.f32 %v2688_v25, %v3744_v2  ;;  %v1765_v2 = vld [vmem:[#allocation2] sm:$0x1]  ;;  %v4497_v25 = vld [vmem:[#allocation44_spill] sm:$0xff] }
 0x5c9   :  { %v1471_v46 = vpop.f32.mrf.mxu1 }
 0x5ca   :  { %v1472_v24 = vadd.f32 %v1471_v46, %v3332_v35  ;;  %v1498_v46 = vld [vmem:[#allocation2 + $0x1] sm:$0x1] }
 0x5cb   :  { %v1473_v51 = vpop.f32.mrf.mxu1 }
 0x5cc   :  { %v1474_v29 = vadd.f32 %v1473_v51, %v3330_v31  ;;  %v1763_v51 = vmax.f32 %v1762_v58, 0.0  ;;  %v4502_v58 = vld [vmem:[#allocation41_spill] sm:$0xff] }
 0x5cd   :  { %v1475_v63 = vpop.f32.mrf.mxu1 }
 0x5ce   :  { %v1490_v28 = vmul.f32 %v2686_v20, %v1474_v29  ;;  %v1764_v29 = vpack.c.bf16 %v1763_v51, %v1763_v51  ;;  %v4504_v51 = vld [vmem:[#allocation45_spill] sm:$0xff] }
 0x5cf   :  { %v1476_v21 = vpop.f32.mrf.mxu1 }
 0x5d0   :  { %v1491_v39 = vadd.f32 %v1490_v28, %v1472_v24  ;;  %v1766_v63 = vsel %vm3139_vm2, %v1764_v29, %v1765_v2  ;;  %v4508_v29 = vld [vmem:[#allocation48_spill] sm:$0xff] }
 0x5d1   :  { %v4513_v2 = vld [vmem:[#allocation24_spill] sm:$0xff] }
 0x5d2   :  { %2689 = vtanh.f32 %v1491_v39 }
 0x5df   :  { %v2690_v47 = vpop.eup %2689 }
 0x5e0   :  { %v1494_v60 = vmul.f32 %v2690_v47, %v1493_v62  ;;  %v4498_v62 = vld [vmem:[#allocation38_spill] sm:$0xff] }
 0x5e1   :  { %v4499_v47 = vld [vmem:[#allocation46_spill] sm:$0xff] }
 0x5e2   :  { %v3898_v61 = vadd.f32 %v1495_v50, %v1494_v60  ;;  %v4500_v60 = vld [vmem:[#allocation50_spill] sm:$0xff]  ;;  %v4501_v50 = vld [vmem:[#allocation51_spill] sm:$0xff] }
 0x5e4   :  { %v1497_v59 = vpack.c.bf16 %v3898_v61, %v3898_v61 }
 0x5e6   :  { %v1499_v20 = vsel %vm3139_vm2, %v1497_v59, %v1498_v46  ;;  %2461 = vmatmul.mubr.bf16.vlgmr.msra.gmra.mxu0 %v1497_v59  ;;  %v4503_v59 = vld [vmem:[#allocation42_spill] sm:$0xff]  ;;  %v4505_v46 = vld [vmem:[#allocation16_spill] sm:$0xff] }
 0x5e7   :  { %1500 = vst [vmem:[#allocation2 + $0x1] sm:$0x1] %v1499_v20  ;;  %1637 = vmatpush1.bf16.msra.mxu0 %v3576_v23  ;;  %v4506_v20 = vld [vmem:[#allocation17_spill] sm:$0xff] }
 0x5e8   :  { %1638 = vmatprep.subr.bf16.mxu0 %v3579_v33 }
 0x5eb   :  { %1639 = vmatpush1.bf16.msra.mxu0 %v3582_v4 }
 0x5ec   :  { %1640 = vmatprep.subr.bf16.mxu0 %v3585_v52 }
 0x5ee   :  { %v2281_v24 = vld.sshfl [vmem:[#allocation2] sm:$0x11 pattern:$0x75316420] }
 0x5ef   :  { %1641 = vmatpush1.bf16.msra.mxu0 %v3588_v18  ;;  %v1578_v28 = vcombine.high %v2281_v24, %v2281_v24  ;;  %1767 = vst [vmem:[#allocation2] sm:$0x1] %v1766_v63  ;;  %v1585_v39 = vrot.slane %v2281_v24, %v3189_v37  ;;  %v4514_v63 = vld [vmem:[#allocation25_spill] sm:$0xff]  ;;  %v4515_v24 = vld [vmem:[#allocation26_spill] sm:$0xff] }
 0x5f0   :  { %1642 = vmatprep.subr.bf16.mxu0 %v3591_v6 }
 0x5f1   :  { %v1592_v21 = vrot.slane %v1578_v28, %v3189_v37  ;;  %v4516_v28 = vld [vmem:[#allocation27_spill] sm:$0xff] }
 0x5f3   :  { %1643 = vmatpush1.bf16.msra.mxu0 %v3596_v5  ;;  %1627 = vmatprep.mubr.bf16.mxu1 %v1592_v21 }
 0x5f4   :  { %1668 = vmatprep.mubr.bf16.mxu0 %v1592_v21  ;;  %1628 = vmatmul.mubr.bf16.vlgmr.msra.gmra.mxu1 %v1585_v39  ;;  %v4517_v21 = vld [vmem:[#allocation28_spill] sm:$0xff] }
 0x5f5   :  { %1644 = vmatprep.subr.bf16.mxu0 %v3599_v3  ;;  %2465 = vmatpush3.bf16.msra.mxu1 %v3763_v49 }
 0x5f6   :  { %2466 = vmatprep.subr.bf16.mxu1 %v4395_v55  ;;  %2480 = vmatprep.mubr.msk.bf16.mxu1 %vm2967_vm3, %v4395_v55 }
 0x5f7   :  { %1645 = vmatpush1.bf16.msra.mxu0 %v3606_v9 }
 0x5f8   :  { %1646 = vmatprep.subr.bf16.mxu0 %v3609_v48 }
 0x5f9   :  { %2467 = vmatpush3.bf16.msra.mxu1 %v3771_v27 }
 0x5fa   :  { %2468 = vmatprep.subr.bf16.mxu1 %v4395_v55 }
 0x5fb   :  { %1647 = vmatpush1.bf16.msra.mxu0 %v3614_v10 }
 0x5fc   :  { %1648 = vmatprep.subr.bf16.mxu0 %v3617_v40 }
 0x5fd   :  { %2469 = vmatpush3.bf16.msra.mxu1 %v3777_v45 }
 0x5fe   :  { %2470 = vmatprep.subr.bf16.mxu1 %v4395_v55 }
 0x5ff   :  { %1649 = vmatpush1.bf16.msra.mxu0 %v3622_v1 }
 0x600   :  { %1650 = vmatprep.subr.bf16.mxu0 %v3625_v56 }
 0x601   :  { %2471 = vmatpush3.bf16.msra.mxu1 %v3783_v42 }
 0x602   :  { %2472 = vmatprep.subr.bf16.mxu1 %v4395_v55 }
 0x603   :  { %1651 = vmatpush1.bf16.msra.mxu0 %v3630_v44 }
 0x604   :  { %1652 = vmatprep.subr.bf16.mxu0 %v3633_v32 }
 0x605   :  { %2473 = vmatpush3.bf16.msra.mxu1 %v3789_v13 }
 0x606   :  { %2474 = vmatprep.subr.bf16.mxu1 %v4395_v55 }
 0x607   :  { %1653 = vmatpush2.bf16.msra.mxu0 %v3638_v53 }
 0x608   :  { %1654 = vmatprep.subr.bf16.mxu0 %v3641_v54 }
 0x609   :  { %2475 = vmatpush3.bf16.msra.mxu1 %v3795_v26 }
 0x60a   :  { %2476 = vmatprep.subr.bf16.mxu1 %v4395_v55 }
 0x60b   :  { %1655 = vmatpush2.bf16.msra.mxu0 %v3799_v43 }
 0x60c   :  { %1656 = vmatprep.subr.bf16.mxu0 %v3802_v19 }
 0x60d   :  { %2477 = vmatpush3.bf16.msra.mxu1 %v3805_v14 }
 0x60e   :  { %2478 = vmatprep.subr.bf16.mxu1 %v4395_v55 }
 0x60f   :  { %1657 = vmatpush2.bf16.msra.mxu0 %v3809_v36 }
 0x610   :  { %1658 = vmatprep.subr.bf16.mxu0 %v4497_v25 }
 0x611   :  { %2479 = vmatpush3.bf16.msra.mxu1 %v3815_v7 }
 0x612   :  { %1835 = vmatprep.subr.bf16.mxu1 %v4498_v62  ;;  %v4519_v62 = vld [vmem:[#allocation30_spill] sm:$0xff] }
 0x613   :  { %1659 = vmatpush2.bf16.msra.mxu0 %v4499_v47 }
 0x614   :  { %1660 = vmatprep.subr.bf16.mxu0 %v4500_v60 }
 0x617   :  { %1661 = vmatpush2.bf16.msra.mxu0 %v4501_v50 }
 0x618   :  { %1662 = vmatprep.subr.bf16.mxu0 %v3828_v34 }
 0x61b   :  { %1663 = vmatpush2.bf16.msra.mxu0 %v3831_v0 }
 0x61c   :  { %1664 = vmatprep.subr.bf16.mxu0 %v3834_v8 }
 0x61f   :  { %1665 = vmatpush2.bf16.msra.mxu0 %v3837_v22 }
 0x620   :  { %1666 = vmatprep.subr.bf16.mxu0 %v3840_v41 }
 0x623   :  { %1667 = vmatpush2.bf16.msra.mxu0 %v3843_v30 }
 0x624   :  { %1794 = vmatprep.subr.bf16.mxu0 %v3503_v11  ;;  %v4507_v11 = vld [vmem:[#allocation18_spill] sm:$0xff] }
 0x626   :  { %1669 = vmatmul.mubr.bf16.vlgmr.msra.gmra.mxu0 %v1585_v39  ;;  %v4518_v39 = vld [vmem:[#allocation29_spill] sm:$0xff] }
 0x627   :  { %1795 = vmatpush1.bf16.msra.mxu0 %v3506_v12  ;;  %v4509_v12 = vld [vmem:[#allocation20_spill] sm:$0xff] }
 0x628   :  { %1796 = vmatprep.subr.bf16.mxu0 %v3509_v15  ;;  %v4510_v15 = vld [vmem:[#allocation21_spill] sm:$0xff] }
 0x62b   :  { %1797 = vmatpush1.bf16.msra.mxu0 %v3512_v16  ;;  %v4511_v16 = vld [vmem:[#allocation22_spill] sm:$0xff] }
 0x62c   :  { %1798 = vmatprep.subr.bf16.mxu0 %v3515_v17  ;;  %v4512_v17 = vld [vmem:[#allocation23_spill] sm:$0xff] }
 0x62f   :  { %1799 = vmatpush1.bf16.msra.mxu0 %v4502_v58  ;;  %v4520_v58 = vld [vmem:[#allocation31_spill] sm:$0xff] }
 0x630   :  { %1800 = vmatprep.subr.bf16.mxu0 %v4503_v59  ;;  %v4521_v59 = vld [vmem:[#allocation32_spill] sm:$0xff] }
 0x633   :  { %1801 = vmatpush1.bf16.msra.mxu0 %v4504_v51  ;;  %v4522_v51 = vld [vmem:[#allocation35_spill] sm:$0xff] }
 0x634   :  { %1802 = vmatprep.subr.bf16.mxu0 %v4505_v46  ;;  %v4523_v46 = vld [vmem:[#allocation36_spill] sm:$0xff] }
 0x637   :  { %1803 = vmatpush1.bf16.msra.mxu0 %v4506_v20  ;;  %v4524_v20 = vld [vmem:[#allocation39_spill] sm:$0xff] }
 0x638   :  { %1804 = vmatprep.subr.bf16.mxu0 %v4507_v11  ;;  %v4525_v11 = vld [vmem:[#allocation40_spill] sm:$0xff] }
 0x63b   :  { %1805 = vmatpush1.bf16.msra.mxu0 %v4508_v29 }
 0x63c   :  { %1806 = vmatprep.subr.bf16.mxu0 %v4509_v12 }
 0x63f   :  { %1807 = vmatpush1.bf16.msra.mxu0 %v4510_v15 }
 0x640   :  { %1808 = vmatprep.subr.bf16.mxu0 %v4511_v16 }
 0x643   :  { %1809 = vmatpush1.bf16.msra.mxu0 %v4512_v17  ;;  %v4531_v17 = vld [vmem:[#allocation49_spill] sm:$0xff] }
 0x644   :  { %1810 = vmatprep.subr.bf16.mxu0 %v4513_v2 }
 0x647   :  { %1811 = vmatpush2.bf16.msra.mxu0 %v4514_v63 }
 0x648   :  { %1812 = vmatprep.subr.bf16.mxu0 %v4515_v24  ;;  %v4526_v24 = vld [vmem:[#allocation52_spill] sm:$0xff] }
 0x64b   :  { %1813 = vmatpush2.bf16.msra.mxu0 %v4516_v28  ;;  %v4527_v28 = vld [vmem:[#allocation53_spill] sm:$0xff] }
 0x64c   :  { %1814 = vmatprep.subr.bf16.mxu0 %v4517_v21  ;;  %v4528_v21 = vld [vmem:[#allocation54_spill] sm:$0xff] }
 0x64f   :  { %1815 = vmatpush2.bf16.msra.mxu0 %v4518_v39 }
 0x650   :  { %1816 = vmatprep.subr.bf16.mxu0 %v4519_v62 }
 0x653   :  { %1817 = vmatpush2.bf16.msra.mxu0 %v4520_v58 }
 0x654   :  { %1818 = vmatprep.subr.bf16.mxu0 %v4521_v59  ;;  %v3993_v59 = vld [vmem:[%s4220_s5] sm:$0x1]  ;;  %s2288_s5 = sld [smem:[#allocation3 + $0x7]] }
 0x655   :  { %4529 = vst [vmem:[#allocation44_spill] sm:$0xff] %v3993_v59 }
 0x657   :  { %1819 = vmatpush2.bf16.msra.mxu0 %v4522_v51 }
 0x658   :  { %1820 = vmatprep.subr.bf16.mxu0 %v4523_v46 }
 0x65a   :  { %s1960_s22 = scalar_lea.vmem [#allocation7], %s2288_s5 }
 0x65b   :  { %1821 = vmatpush2.bf16.msra.mxu0 %v4524_v20 }
 0x65c   :  { %1822 = vmatprep.subr.bf16.mxu0 %v4525_v11 }
 0x65f   :  { %1823 = vmatpush2.bf16.msra.mxu0 %v4526_v24 }
 0x660   :  { %1824 = vmatprep.subr.bf16.mxu0 %v4527_v28 }
 0x663   :  { %1825 = vmatpush2.bf16.msra.mxu0 %v4528_v21 }
 0x664   :  { %2484 = vmatprep.subr.bf16.mxu0 %v4395_v55 }
 0x6a6   :  { %v1535_v62 = vpop.f32.mrf.mxu0 }
 0x6a7   :  { %v3996_v46 = vadd.f32 %v3993_v59, %v1535_v62 }
 0x6a8   :  { %v2462_v20 = vpop.f32.mrf.mxu0 }
 0x6a9   :  { %4530 = vst [vmem:[#allocation38_spill] sm:$0xff] %v3996_v46  ;;  %v1541_v11 = vsel %vm170_vm1, %v3996_v46, -inf }
 0x6aa   :  { %1542 = vmax.xlane.f32.xlu0 %v1541_v11  ;;  %v1538_v24 = vpop.f32.mrf.mxu0 }
 0x6ac   :  { %v2463_v28 = vpop.f32.mrf.mxu0 }
 0x6b4   :  { %v1629_v51 = vpop.f32.mrf.mxu1 }
 0x6b5   :  { %v1630_v63 = vadd.f32 %v1629_v51, %v4428_v57 }
 0x6b6   :  { %v1631_v21 = vpop.f32.mrf.mxu1 }
 0x6b7   :  { %v2282_v2 = vmul.f32 -1.442695, %v1630_v63  ;;  %v1632_v16 = vadd.f32 %v1631_v21, %v4531_v17 }
 0x6b8   :  { %v1633_v58 = vpop.f32.mrf.mxu1 }
 0x6b9   :  { %2691 = vpow2.f32 %v2282_v2  ;;  %v2283_v15 = vmul.f32 -1.442695, %v1632_v16 }
 0x6ba   :  { %v1634_v39 = vpop.f32.mrf.mxu1 }
 0x6bb   :  { %2693 = vpow2.f32 %v2283_v15 }
 0x6c6   :  { %v2692_v62 = vpop.eup %2691 }
 0x6c7   :  { %v1680_v20 = vadd.f32 1.0, %v2692_v62 }
 0x6c8   :  { %v2694_v59 = vpop.eup %2693 }
 0x6c9   :  { %2695 = vrcp.f32 %v1680_v20  ;;  %v1686_v11 = vadd.f32 1.0, %v2694_v59  ;;  %v1961_v59 = vld [vmem:[%s1960_s22] sm:$0x1] }
 0x6cb   :  { %2697 = vrcp.f32 %v1686_v11 }
 0x6d6   :  { %v2696_v12 = vpop.eup %2695 }
 0x6d8   :  { %v2698_v16 = vpop.eup %2697 }
 0x6d9   :  { %v1692_v15 = vsub.f32 1.0, %v2698_v16  ;;  %v1694_v20 = vmul.f32 %v2698_v16, %v3898_v61  ;;  %v1964_v61 = vld [vmem:[#allocation2] sm:$0x1]  ;;  %v4538_v16 = vld [vmem:[#allocation26_spill] sm:$0xff] }
 0x6e6   :  { %v1670_v46 = vpop.f32.mrf.mxu0 }
 0x6e7   :  { %v1671_v39 = vadd.f32 %v1670_v46, %v3332_v35  ;;  %v1697_v46 = vld [vmem:[#allocation2 + $0x1] sm:$0x1] }
 0x6e8   :  { %v1672_v24 = vpop.f32.mrf.mxu0 }
 0x6e9   :  { %v1673_v28 = vadd.f32 %v1672_v24, %v3330_v31  ;;  %v1962_v24 = vmax.f32 %v1961_v59, 0.0  ;;  %v4544_v59 = vld [vmem:[#allocation32_spill] sm:$0xff] }
 0x6ea   :  { %v1674_v58 = vpop.f32.mrf.mxu0 }
 0x6eb   :  { %v1689_v63 = vmul.f32 %v2696_v12, %v1673_v28  ;;  %v1963_v28 = vpack.c.bf16 %v1962_v24, %v1962_v24  ;;  %v4545_v24 = vld [vmem:[#allocation35_spill] sm:$0xff] }
 0x6ec   :  { %v1675_v2 = vpop.f32.mrf.mxu0 }
 0x6ed   :  { %v1690_v51 = vadd.f32 %v1689_v63, %v1671_v39  ;;  %v1965_v58 = vsel %vm3139_vm2, %v1963_v28, %v1964_v61  ;;  %v4549_v28 = vld [vmem:[#allocation52_spill] sm:$0xff]  ;;  %v4550_v61 = vld [vmem:[#allocation53_spill] sm:$0xff] }
 0x6ef   :  { %2699 = vtanh.f32 %v1690_v51  ;;  %v4537_v51 = vld [vmem:[#allocation25_spill] sm:$0xff] }
 0x6fc   :  { %v2700_v21 = vpop.eup %2699 }
 0x6fd   :  { %v1693_v62 = vmul.f32 %v2700_v21, %v1692_v15  ;;  %v4539_v15 = vld [vmem:[#allocation27_spill] sm:$0xff]  ;;  %v4540_v21 = vld [vmem:[#allocation28_spill] sm:$0xff] }
 0x6ff   :  { %v4005_v17 = vadd.f32 %v1694_v20, %v1693_v62  ;;  %v4541_v62 = vld [vmem:[#allocation29_spill] sm:$0xff]  ;;  %v4543_v20 = vld [vmem:[#allocation31_spill] sm:$0xff] }
 0x701   :  { %v1696_v11 = vpack.c.bf16 %v4005_v17, %v4005_v17 }
 0x703   :  { %v1698_v12 = vsel %vm3139_vm2, %v1696_v11, %v1697_v46  ;;  %2481 = vmatmul.mubr.bf16.vlgmr.msra.gmra.mxu1 %v1696_v11  ;;  %v4546_v11 = vld [vmem:[#allocation36_spill] sm:$0xff]  ;;  %v4547_v46 = vld [vmem:[#allocation39_spill] sm:$0xff] }
 0x704   :  { %1699 = vst [vmem:[#allocation2 + $0x1] sm:$0x1] %v1698_v12  ;;  %1836 = vmatpush1.bf16.msra.mxu1 %v3576_v23  ;;  %v4548_v12 = vld [vmem:[#allocation40_spill] sm:$0xff] }
 0x705   :  { %1837 = vmatprep.subr.bf16.mxu1 %v3579_v33  ;;  %v2826_v33 = vld [vmem:[#allocation8 + $0xec] ss:$16 sps:$4 sm:$0xff]  }
 0x708   :  { %1838 = vmatpush1.bf16.msra.mxu1 %v3582_v4  ;;  %v2827_v4 = vld [vmem:[#allocation8 + $0xe4] ss:$16 sps:$4 sm:$0xff]  }
 0x709   :  { %1839 = vmatprep.subr.bf16.mxu1 %v3585_v52  ;;  %v2828_v52 = vld [vmem:[#allocation8 + $0xe0] ss:$16 sps:$4 sm:$0xff]  }
 0x70b   :  { %v2285_v39 = vld.sshfl [vmem:[#allocation2] sm:$0x11 pattern:$0x75316420] }
 0x70c   :  { %1840 = vmatpush1.bf16.msra.mxu1 %v3588_v18  ;;  %v1777_v63 = vcombine.high %v2285_v39, %v2285_v39  ;;  %1966 = vst [vmem:[#allocation2] sm:$0x1] %v1965_v58  ;;  %v1784_v2 = vrot.slane %v2285_v39, %v3189_v37  ;;  %v2829_v18 = vld [vmem:[#allocation8 + $0xc4] ss:$16 sps:$4 sm:$0xff]   ;;  %v4551_v58 = vld [vmem:[#allocation54_spill] sm:$0xff] }
 0x70d   :  { %1841 = vmatprep.subr.bf16.mxu1 %v3591_v6  ;;  %v2830_v6 = vld [vmem:[#allocation8 + $0xc0] ss:$16 sps:$4 sm:$0xff]  }
 0x70e   :  { %v1791_v23 = vrot.slane %v1777_v63, %v3189_v37  ;;  %v4552_v63 = vld [vmem:[#allocation44_spill] sm:$0xff] }
 0x710   :  { %1842 = vmatpush1.bf16.msra.mxu1 %v3596_v5  ;;  %1826 = vmatprep.mubr.bf16.mxu0 %v1791_v23  ;;  %v2831_v5 = vld [vmem:[#allocation8 + $0xa4] ss:$16 sps:$4 sm:$0xff]  }
 0x711   :  { %1867 = vmatprep.mubr.bf16.mxu1 %v1791_v23  ;;  %1827 = vmatmul.mubr.bf16.vlgmr.msra.gmra.mxu0 %v1784_v2 }
 0x712   :  { %1843 = vmatprep.subr.bf16.mxu1 %v3599_v3  ;;  %2485 = vmatpush3.bf16.msra.mxu0 %v3763_v49  ;;  %v2832_v3 = vld [vmem:[#allocation8 + $0xa0] ss:$16 sps:$4 sm:$0xff]  }
 0x713   :  { %2486 = vmatprep.subr.bf16.mxu0 %v4395_v55  ;;  %2500 = vmatprep.mubr.msk.bf16.mxu0 %vm2967_vm3, %v4395_v55 }
 0x714   :  { %1844 = vmatpush1.bf16.msra.mxu1 %v3606_v9  ;;  %v2833_v9 = vld [vmem:[#allocation8 + $0x84] ss:$16 sps:$4 sm:$0xff]  }
 0x715   :  { %1845 = vmatprep.subr.bf16.mxu1 %v3609_v48  ;;  %v2834_v48 = vld [vmem:[#allocation8 + $0x80] ss:$16 sps:$4 sm:$0xff]  }
 0x716   :  { %2487 = vmatpush3.bf16.msra.mxu0 %v3771_v27 }
 0x717   :  { %2488 = vmatprep.subr.bf16.mxu0 %v4395_v55 }
 0x718   :  { %1846 = vmatpush1.bf16.msra.mxu1 %v3614_v10  ;;  %v2835_v10 = vld [vmem:[#allocation8 + $0x64] ss:$16 sps:$4 sm:$0xff]  }
 0x719   :  { %1847 = vmatprep.subr.bf16.mxu1 %v3617_v40  ;;  %v2836_v40 = vld [vmem:[#allocation8 + $0x60] ss:$16 sps:$4 sm:$0xff]  }
 0x71a   :  { %2489 = vmatpush3.bf16.msra.mxu0 %v3777_v45 }
 0x71b   :  { %2490 = vmatprep.subr.bf16.mxu0 %v4395_v55 }
 0x71c   :  { %1848 = vmatpush1.bf16.msra.mxu1 %v3622_v1  ;;  %v2837_v1 = vld [vmem:[#allocation8 + $0x44] ss:$16 sps:$4 sm:$0xff]  }
 0x71d   :  { %1849 = vmatprep.subr.bf16.mxu1 %v3625_v56  ;;  %v4532_v56 = vld [vmem:[#allocation20_spill] sm:$0xff] }
 0x71e   :  { %2491 = vmatpush3.bf16.msra.mxu0 %v3783_v42 }
 0x71f   :  { %2492 = vmatprep.subr.bf16.mxu0 %v4395_v55 }
 0x720   :  { %1850 = vmatpush1.bf16.msra.mxu1 %v3630_v44  ;;  %v4533_v44 = vld [vmem:[#allocation21_spill] sm:$0xff] }
 0x721   :  { %1851 = vmatprep.subr.bf16.mxu1 %v3633_v32  ;;  %v4534_v32 = vld [vmem:[#allocation22_spill] sm:$0xff] }
 0x722   :  { %2493 = vmatpush3.bf16.msra.mxu0 %v3789_v13 }
 0x723   :  { %2494 = vmatprep.subr.bf16.mxu0 %v4395_v55 }
 0x724   :  { %1852 = vmatpush2.bf16.msra.mxu1 %v3638_v53  ;;  %v4535_v53 = vld [vmem:[#allocation23_spill] sm:$0xff] }
 0x725   :  { %1853 = vmatprep.subr.bf16.mxu1 %v3641_v54  ;;  %v4536_v54 = vld [vmem:[#allocation24_spill] sm:$0xff] }
 0x726   :  { %2495 = vmatpush3.bf16.msra.mxu0 %v3795_v26 }
 0x727   :  { %2496 = vmatprep.subr.bf16.mxu0 %v4395_v55 }
 0x728   :  { %1854 = vmatpush2.bf16.msra.mxu1 %v3799_v43 }
 0x729   :  { %1855 = vmatprep.subr.bf16.mxu1 %v3802_v19 }
 0x72a   :  { %2497 = vmatpush3.bf16.msra.mxu0 %v3805_v14 }
 0x72b   :  { %2498 = vmatprep.subr.bf16.mxu0 %v4395_v55 }
 0x72c   :  { %1856 = vmatpush2.bf16.msra.mxu1 %v3809_v36 }
 0x72d   :  { %1857 = vmatprep.subr.bf16.mxu1 %v4497_v25 }
 0x72e   :  { %2499 = vmatpush3.bf16.msra.mxu0 %v3815_v7 }
 0x72f   :  { %2034 = vmatprep.subr.bf16.mxu0 %v2826_v33 }
 0x730   :  { %1858 = vmatpush2.bf16.msra.mxu1 %v4499_v47 }
 0x731   :  { %1859 = vmatprep.subr.bf16.mxu1 %v4500_v60 }
 0x734   :  { %1860 = vmatpush2.bf16.msra.mxu1 %v4501_v50 }
 0x735   :  { %1861 = vmatprep.subr.bf16.mxu1 %v3828_v34 }
 0x738   :  { %1862 = vmatpush2.bf16.msra.mxu1 %v3831_v0 }
 0x739   :  { %1863 = vmatprep.subr.bf16.mxu1 %v3834_v8 }
 0x73c   :  { %1864 = vmatpush2.bf16.msra.mxu1 %v3837_v22 }
 0x73d   :  { %1865 = vmatprep.subr.bf16.mxu1 %v3840_v41 }
 0x740   :  { %1866 = vmatpush2.bf16.msra.mxu1 %v3843_v30 }
 0x741   :  { %1993 = vmatprep.subr.bf16.mxu1 %v2827_v4 }
 0x743   :  { %1868 = vmatmul.mubr.bf16.vlgmr.msra.gmra.mxu1 %v1784_v2 }
 0x744   :  { %1994 = vmatpush1.bf16.msra.mxu1 %v2828_v52 }
 0x745   :  { %1995 = vmatprep.subr.bf16.mxu1 %v2829_v18 }
 0x748   :  { %1996 = vmatpush1.bf16.msra.mxu1 %v2830_v6 }
 0x749   :  { %1997 = vmatprep.subr.bf16.mxu1 %v2831_v5 }
 0x74c   :  { %1998 = vmatpush1.bf16.msra.mxu1 %v2832_v3 }
 0x74d   :  { %1999 = vmatprep.subr.bf16.mxu1 %v2833_v9 }
 0x750   :  { %2000 = vmatpush1.bf16.msra.mxu1 %v2834_v48 }
 0x751   :  { %2001 = vmatprep.subr.bf16.mxu1 %v2835_v10  ;;  %v4553_v10 = vld [vmem:[#allocation49_spill] sm:$0xff] }
 0x754   :  { %2002 = vmatpush1.bf16.msra.mxu1 %v2836_v40 }
 0x755   :  { %2003 = vmatprep.subr.bf16.mxu1 %v2837_v1 }
 0x758   :  { %2004 = vmatpush1.bf16.msra.mxu1 %v4508_v29  ;;  %v4542_v29 = vld [vmem:[#allocation30_spill] sm:$0xff] }
 0x759   :  { %2005 = vmatprep.subr.bf16.mxu1 %v4532_v56 }
 0x75c   :  { %2006 = vmatpush1.bf16.msra.mxu1 %v4533_v44 }
 0x75d   :  { %2007 = vmatprep.subr.bf16.mxu1 %v4534_v32 }
 0x760   :  { %2008 = vmatpush1.bf16.msra.mxu1 %v4535_v53 }
 0x761   :  { %2009 = vmatprep.subr.bf16.mxu1 %v4536_v54 }
 0x764   :  { %2010 = vmatpush2.bf16.msra.mxu1 %v4537_v51 }
 0x765   :  { %2011 = vmatprep.subr.bf16.mxu1 %v4538_v16 }
 0x768   :  { %2012 = vmatpush2.bf16.msra.mxu1 %v4539_v15 }
 0x769   :  { %2013 = vmatprep.subr.bf16.mxu1 %v4540_v21 }
 0x76c   :  { %2014 = vmatpush2.bf16.msra.mxu1 %v4541_v62 }
 0x76d   :  { %2015 = vmatprep.subr.bf16.mxu1 %v4542_v29 }
 0x770   :  { %2016 = vmatpush2.bf16.msra.mxu1 %v4543_v20 }
 0x771   :  { %2017 = vmatprep.subr.bf16.mxu1 %v4544_v59 }
 0x774   :  { %2018 = vmatpush2.bf16.msra.mxu1 %v4545_v24 }
 0x775   :  { %2019 = vmatprep.subr.bf16.mxu1 %v4546_v11 }
 0x778   :  { %2020 = vmatpush2.bf16.msra.mxu1 %v4547_v46 }
 0x779   :  { %2021 = vmatprep.subr.bf16.mxu1 %v4548_v12 }
 0x77c   :  { %2022 = vmatpush2.bf16.msra.mxu1 %v4549_v28 }
 0x77d   :  { %2023 = vmatprep.subr.bf16.mxu1 %v4550_v61 }
 0x780   :  { %2024 = vmatpush2.bf16.msra.mxu1 %v4551_v58 }
 0x781   :  { %2504 = vmatprep.subr.bf16.mxu1 %v4395_v55 }
 0x7c3   :  { %v1734_v39 = vpop.f32.mrf.mxu1 }
 0x7c4   :  { %v4086_v23 = vadd.f32 %v4552_v63, %v1734_v39  ;;  %v1896_v39 = vld [vmem:[#allocation2 + $0x1] sm:$0x1] }
 0x7c5   :  { %v2482_v2 = vpop.f32.mrf.mxu1 }
 0x7c6   :  { %v1740_v33 = vsel %vm170_vm1, %v4086_v23, -inf }
 0x7c7   :  { %1741 = vmax.xlane.f32.xlu1 %v1740_v33  ;;  %v1737_v4 = vpop.f32.mrf.mxu1  ;;  %v2838_v33 = vld [vmem:[#allocation8 + $0xe8] ss:$16 sps:$4 sm:$0xff]  }
 0x7c8   :  { %v2839_v4 = vld [vmem:[#allocation8 + $0xcc] ss:$16 sps:$4 sm:$0xff]  }
 0x7c9   :  { %v2483_v52 = vpop.f32.mrf.mxu1 }
 0x7ca   :  { %v2840_v52 = vld [vmem:[#allocation8 + $0xc8] ss:$16 sps:$4 sm:$0xff]  }
 0x7d1   :  { %v1828_v18 = vpop.f32.mrf.mxu0 }
 0x7d2   :  { %v1829_v9 = vadd.f32 %v1828_v18, %v4428_v57  ;;  %v2841_v18 = vld [vmem:[#allocation8 + $0xac] ss:$16 sps:$4 sm:$0xff]  }
 0x7d3   :  { %v1830_v6 = vpop.f32.mrf.mxu0 }
 0x7d4   :  { %v2286_v48 = vmul.f32 -1.442695, %v1829_v9  ;;  %v1831_v40 = vadd.f32 %v1830_v6, %v4553_v10  ;;  %v2842_v6 = vld [vmem:[#allocation8 + $0xa8] ss:$16 sps:$4 sm:$0xff]  }
 0x7d5   :  { %v1832_v5 = vpop.f32.mrf.mxu0 }
 0x7d6   :  { %2701 = vpow2.f32 %v2286_v48  ;;  %v2287_v1 = vmul.f32 -1.442695, %v1831_v40  ;;  %v2844_v40 = vld [vmem:[#allocation8 + $0x88] ss:$16 sps:$4 sm:$0xff]  }
 0x7d7   :  { %v1833_v3 = vpop.f32.mrf.mxu0 }
 0x7d8   :  { %2703 = vpow2.f32 %v2287_v1  ;;  %v2843_v3 = vld [vmem:[#allocation8 + $0x8c] ss:$16 sps:$4 sm:$0xff]  }
 0x7d9   :  { %v2845_v1 = vld [vmem:[#allocation8 + $0x6c] ss:$16 sps:$4 sm:$0xff]  }
 0x7e3   :  { %v2702_v56 = vpop.eup %2701 }
 0x7e4   :  { %v1879_v44 = vadd.f32 1.0, %v2702_v56  ;;  %v2846_v56 = vld [vmem:[#allocation8 + $0x68] ss:$16 sps:$4 sm:$0xff]  }
 0x7e5   :  { %v2704_v32 = vpop.eup %2703 }
 0x7e6   :  { %2705 = vrcp.f32 %v1879_v44  ;;  %v1885_v54 = vadd.f32 1.0, %v2704_v32  ;;  %v2847_v44 = vld [vmem:[#allocation8 + $0x4c] ss:$16 sps:$4 sm:$0xff]  }
 0x7e7   :  { %v2849_v32 = vld [vmem:[#allocation8 + $0x2c] ss:$16 sps:$4 sm:$0xff]  }
 0x7e8   :  { %2707 = vrcp.f32 %v1885_v54  ;;  %v2852_v54 = vld [vmem:[#allocation8 + $0x8] ss:$16 sps:$4 sm:$0xff]  }
 0x7f3   :  { %v2706_v15 = vpop.eup %2705 }
 0x7f5   :  { %v2708_v24 = vpop.eup %2707 }
 0x7f6   :  { %v1891_v11 = vsub.f32 1.0, %v2708_v24  ;;  %v1893_v28 = vmul.f32 %v2708_v24, %v4005_v17 }
 0x803   :  { %v1869_v53 = vpop.f32.mrf.mxu1 }
 0x804   :  { %v1870_v62 = vadd.f32 %v1869_v53, %v3332_v35  ;;  %v2851_v53 = vld [vmem:[#allocation8 + $0xc] ss:$16 sps:$4 sm:$0xff]  }
 0x805   :  { %v1871_v51 = vpop.f32.mrf.mxu1 }
 0x806   :  { %v1872_v16 = vadd.f32 %v1871_v51, %v3330_v31  ;;  %v2854_v51 = vld [vmem:[#allocation8 + $0x1e8] ss:$16 sps:$4 sm:$0xff]  }
 0x807   :  { %v1873_v21 = vpop.f32.mrf.mxu1 }
 0x808   :  { %v1888_v29 = vmul.f32 %v2706_v15, %v1872_v16 }
 0x809   :  { %v1874_v20 = vpop.f32.mrf.mxu1 }
 0x80a   :  { %v1889_v59 = vadd.f32 %v1888_v29, %v1870_v62 }
 0x80c   :  { %2709 = vtanh.f32 %v1889_v59 }
 0x819   :  { %v2710_v46 = vpop.eup %2709 }
 0x81a   :  { %v1892_v12 = vmul.f32 %v2710_v46, %v1891_v11 }
 0x81c   :  { %v4095_v61 = vadd.f32 %v1893_v28, %v1892_v12 }
 0x81e   :  { %v1895_v58 = vpack.c.bf16 %v4095_v61, %v4095_v61 }
 0x820   :  { %v1897_v2 = vsel %vm3139_vm2, %v1895_v58, %v1896_v39  ;;  %2501 = vmatmul.mubr.bf16.vlgmr.msra.gmra.mxu0 %v1895_v58 }
 0x821   :  { %1898 = vst [vmem:[#allocation2 + $0x1] sm:$0x1] %v1897_v2  ;;  %2035 = vmatpush1.bf16.msra.mxu0 %v2838_v33 }
 0x822   :  { %2036 = vmatprep.subr.bf16.mxu0 %v2839_v4 }
 0x825   :  { %2037 = vmatpush1.bf16.msra.mxu0 %v2840_v52 }
 0x826   :  { %2038 = vmatprep.subr.bf16.mxu0 %v2841_v18 }
 0x828   :  { %v2289_v17 = vld.sshfl [vmem:[#allocation2] sm:$0x11 pattern:$0x75316420] }
 0x829   :  { %2039 = vmatpush1.bf16.msra.mxu0 %v2842_v6  ;;  %v1976_v5 = vcombine.high %v2289_v17, %v2289_v17  ;;  %v1983_v48 = vrot.slane %v2289_v17, %v3189_v37 }
 0x82a   :  { %2040 = vmatprep.subr.bf16.mxu0 %v2843_v3 }
 0x82b   :  { %v1990_v9 = vrot.slane %v1976_v5, %v3189_v37  ;;  %v2848_v37 = vld [vmem:[#allocation8 + $0x48] ss:$16 sps:$4 sm:$0xff]  }
 0x82d   :  { %2041 = vmatpush1.bf16.msra.mxu0 %v2844_v40  ;;  %2025 = vmatprep.mubr.bf16.mxu1 %v1990_v9 }
 0x82e   :  { %2066 = vmatprep.mubr.bf16.mxu0 %v1990_v9  ;;  %2026 = vmatmul.mubr.bf16.vlgmr.msra.gmra.mxu1 %v1983_v48 }
 0x82f   :  { %2042 = vmatprep.subr.bf16.mxu0 %v2845_v1  ;;  %2505 = vmatpush3.bf16.msra.mxu1 %v3763_v49  ;;  %v2850_v49 = vld [vmem:[#allocation8 + $0x28] ss:$16 sps:$4 sm:$0xff]  }
 0x830   :  { %2506 = vmatprep.subr.bf16.mxu1 %v4395_v55  ;;  %2520 = vmatprep.mubr.msk.bf16.mxu1 %vm2967_vm3, %v4395_v55 }
 0x831   :  { %2043 = vmatpush1.bf16.msra.mxu0 %v2846_v56 }
 0x832   :  { %2044 = vmatprep.subr.bf16.mxu0 %v2847_v44 }
 0x833   :  { %2507 = vmatpush3.bf16.msra.mxu1 %v3771_v27  ;;  %v2853_v27 = vld [vmem:[#allocation8 + $0x1ec] ss:$16 sps:$4 sm:$0xff]  }
 0x834   :  { %2508 = vmatprep.subr.bf16.mxu1 %v4395_v55 }
 0x835   :  { %2045 = vmatpush1.bf16.msra.mxu0 %v2848_v37 }
 0x836   :  { %2046 = vmatprep.subr.bf16.mxu0 %v2849_v32 }
 0x837   :  { %2509 = vmatpush3.bf16.msra.mxu1 %v3777_v45  ;;  %v2855_v45 = vld [vmem:[#allocation8 + $0x1cc] ss:$16 sps:$4 sm:$0xff]  }
 0x838   :  { %2510 = vmatprep.subr.bf16.mxu1 %v4395_v55 }
 0x839   :  { %2047 = vmatpush1.bf16.msra.mxu0 %v2850_v49 }
 0x83a   :  { %2048 = vmatprep.subr.bf16.mxu0 %v2851_v53 }
 0x83b   :  { %2511 = vmatpush3.bf16.msra.mxu1 %v3783_v42  ;;  %v4554_v42 = vld [vmem:[#allocation37_spill] sm:$0xff] }
 0x83c   :  { %2512 = vmatprep.subr.bf16.mxu1 %v4395_v55 }
 0x83d   :  { %2049 = vmatpush1.bf16.msra.mxu0 %v2852_v54 }
 0x83e   :  { %2050 = vmatprep.subr.bf16.mxu0 %v2853_v27 }
 0x83f   :  { %2513 = vmatpush3.bf16.msra.mxu1 %v3789_v13 }
 0x840   :  { %2514 = vmatprep.subr.bf16.mxu1 %v4395_v55 }
 0x841   :  { %2051 = vmatpush2.bf16.msra.mxu0 %v2854_v51 }
 0x842   :  { %2052 = vmatprep.subr.bf16.mxu0 %v2855_v45  ;;  %v4557_v45 = vld [vmem:[#allocation19_spill] sm:$0xff] }
 0x843   :  { %2515 = vmatpush3.bf16.msra.mxu1 %v3795_v26 }
 0x844   :  { %2516 = vmatprep.subr.bf16.mxu1 %v4395_v55 }
 0x845   :  { %2053 = vmatpush2.bf16.msra.mxu0 %v3799_v43  ;;  %v1145_v43 = vpop.xlane.xlu1 %1144 }
 0x846   :  { %2054 = vmatprep.subr.bf16.mxu0 %v3802_v19 }
 0x847   :  { %2517 = vmatpush3.bf16.msra.mxu1 %v3805_v14  ;;  %v4555_v14 = vld [vmem:[#allocation43_spill] sm:$0xff] }
 0x848   :  { %2518 = vmatprep.subr.bf16.mxu1 %v4395_v55  ;;  %v747_v55 = vpop.xlane.xlu0 %746 }
 0x849   :  { %2055 = vmatpush2.bf16.msra.mxu0 %v3809_v36  ;;  %v4134_v13 = vsub.f32 %v4554_v42, %v747_v55  ;;  %v4140_v36 = vsub.f32 %v4555_v14, %v1145_v43  ;;  %v1344_v42 = vpop.xlane.xlu1 %1343  ;;  %v4558_v43 = vld [vmem:[#allocation34_spill] sm:$0xff] }
 0x84a   :  { %2056 = vmatprep.subr.bf16.mxu0 %v4497_v25 }
 0x84b   :  { %2519 = vmatpush3.bf16.msra.mxu1 %v3815_v7  ;;  %v749_v19 = vmul.f32 1.442695, %v4134_v13  ;;  %v4556_v7 = vld [vmem:[#allocation38_spill] sm:$0xff] }
 0x84c   :  { %v4136_v26 = vpop.xlane.xlu0 %945 }
 0x84d   :  { %2057 = vmatpush2.bf16.msra.mxu0 %v4499_v47  ;;  %2711 = vpow2.f32 %v749_v19  ;;  %v4168_v55 = vsub.f32 %v4557_v45, %v4136_v26  ;;  %v4172_v19 = vsub.f32 %v4558_v43, %v1344_v42 }
 0x84e   :  { %2058 = vmatprep.subr.bf16.mxu0 %v4500_v60 }
 0x84f   :  { %v948_v38 = vmul.f32 1.442695, %v4168_v55 }
 0x850   :  { %v1742_v14 = vpop.xlane.xlu1 %1741 }
 0x851   :  { %2059 = vmatpush2.bf16.msra.mxu0 %v4501_v50 }
 0x852   :  { %2060 = vmatprep.subr.bf16.mxu0 %v3828_v34 }
 0x855   :  { %2061 = vmatpush2.bf16.msra.mxu0 %v3831_v0  ;;  %v1147_v0 = vmul.f32 1.442695, %v4140_v36 }
 0x856   :  { %2062 = vmatprep.subr.bf16.mxu0 %v3834_v8  ;;  %v1543_v8 = vpop.xlane.xlu0 %1542 }
 0x857   :  { %2713 = vpow2.f32 %v1147_v0  ;;  %v4176_v0 = vsub.f32 %v4086_v23, %v1742_v14 }
 0x859   :  { %2063 = vmatpush2.bf16.msra.mxu0 %v3837_v22  ;;  %v4144_v22 = vsub.f32 %v4556_v7, %v1543_v8  ;;  %v1346_v8 = vmul.f32 1.442695, %v4172_v19  ;;  %v1744_v7 = vmul.f32 1.442695, %v4176_v0 }
 0x85a   :  { %2064 = vmatprep.subr.bf16.mxu0 %v3840_v41  ;;  %v2712_v60 = vpop.eup %2711 }
 0x85b   :  { %v1545_v41 = vmul.f32 1.442695, %v4144_v22  ;;  %v751_v15 = vsel %vm170_vm1, %v2712_v60, 0.0 }
 0x85d   :  { %2065 = vmatpush2.bf16.msra.mxu0 %v3843_v30  ;;  %2715 = vpow2.f32 %v1545_v41 }
 0x860   :  { %2067 = vmatmul.mubr.bf16.vlgmr.msra.gmra.mxu0 %v1983_v48 }
 0x864   :  { %v2714_v21 = vpop.eup %2713 }
 0x865   :  { %v1149_v62 = vsel %vm170_vm1, %v2714_v21, 0.0 }
 0x86a   :  { %v2716_v29 = vpop.eup %2715 }
 0x86b   :  { %v1547_v59 = vsel %vm170_vm1, %v2716_v29, 0.0 }
 0x8e0   :  { %v1933_v30 = vpop.f32.mrf.mxu0 }
 0x8e1   :  { %v1934_v34 = vadd.f32 %v4552_v63, %v1933_v30 }
 0x8e2   :  { %v2502_v25 = vpop.f32.mrf.mxu0 }
 0x8e3   :  { %v1939_v47 = vsel %vm170_vm1, %v1934_v34, -inf }
 0x8e4   :  { %1940 = vmax.xlane.f32.xlu0 %v1939_v47  ;;  %v1936_v50 = vpop.f32.mrf.mxu0 }
 0x8e6   :  { %v2503_v16 = vpop.f32.mrf.mxu0 }
 0x8e8   :  { %752 = vadd.xlane.f32.xlu0 %v751_v15 }
 0x8ec   :  { %1150 = vadd.xlane.f32.xlu0 %v1149_v62 }
 0x8ee   :  { %v2027_v20 = vpop.f32.mrf.mxu1 }
 0x8ef   :  { %v2028_v12 = vadd.f32 %v2027_v20, %v4428_v57 }
 0x8f0   :  { %1548 = vadd.xlane.f32.xlu0 %v1547_v59  ;;  %v2029_v24 = vpop.f32.mrf.mxu1 }
 0x8f1   :  { %v2290_v28 = vmul.f32 -1.442695, %v2028_v12  ;;  %v2030_v58 = vadd.f32 %v2029_v24, %v4553_v10 }
 0x8f2   :  { %v2031_v11 = vpop.f32.mrf.mxu1 }
 0x8f3   :  { %2717 = vpow2.f32 %v2290_v28  ;;  %v2291_v39 = vmul.f32 -1.442695, %v2030_v58 }
 0x8f4   :  { %v2032_v46 = vpop.f32.mrf.mxu1 }
 0x8f5   :  { %2719 = vpow2.f32 %v2291_v39 }
 0x900   :  { %v2718_v2 = vpop.eup %2717 }
 0x901   :  { %v2078_v33 = vadd.f32 1.0, %v2718_v2 }
 0x902   :  { %v2720_v4 = vpop.eup %2719 }
 0x903   :  { %2721 = vrcp.f32 %v2078_v33  ;;  %v2084_v18 = vadd.f32 1.0, %v2720_v4 }
 0x905   :  { %2723 = vrcp.f32 %v2084_v18 }
 0x910   :  { %v2722_v5 = vpop.eup %2721 }
 0x912   :  { %v2724_v10 = vpop.eup %2723 }
 0x913   :  { %v2090_v1 = vsub.f32 1.0, %v2724_v10  ;;  %v2092_v37 = vmul.f32 %v2724_v10, %v4095_v61  ;;  %v4559_v10 = vld [vmem:[#allocation47_spill] sm:$0xff] }
 0x920   :  { %v2068_v52 = vpop.f32.mrf.mxu0 }
 0x921   :  { %v2069_v57 = vadd.f32 %v2068_v52, %v3332_v35 }
 0x922   :  { %v2070_v17 = vpop.f32.mrf.mxu0 }
 0x923   :  { %v2071_v6 = vadd.f32 %v2070_v17, %v3330_v31  ;;  %v2095_v31 = vld [vmem:[#allocation2 + $0x1] sm:$0x1] }
 0x924   :  { %v2072_v3 = vpop.f32.mrf.mxu0 }
 0x925   :  { %v2087_v9 = vmul.f32 %v2722_v5, %v2071_v6 }
 0x926   :  { %v2073_v48 = vpop.f32.mrf.mxu0 }
 0x927   :  { %v2088_v40 = vadd.f32 %v2087_v9, %v2069_v57 }
 0x929   :  { %2725 = vtanh.f32 %v2088_v40 }
 0x936   :  { %v2726_v56 = vpop.eup %2725 }
 0x937   :  { %v2091_v44 = vmul.f32 %v2726_v56, %v2090_v1  ;;  %v4560_v56 = vld [vmem:[#allocation33_spill] sm:$0xff] }
 0x938   :  { %vm756_vm4 = vcmp.eq.s32.totalorder %v4560_v56, 0  ;;  %vm955_vm5 = vcmp.eq.s32.totalorder %v4560_v56, 1  ;;  %vm1154_vm6 = vcmp.eq.s32.totalorder %v4560_v56, 2  ;;  %vm1353_vm7 = vcmp.eq.s32.totalorder %v4560_v56, 3 }
 0x939   :  { %v2093_v32 = vadd.f32 %v2092_v37, %v2091_v44  ;;  %vm1552_vm8 = vcmp.eq.s32.totalorder %v4560_v56, 4  ;;  %vm1751_vm9 = vcmp.eq.s32.totalorder %v4560_v56, 5  ;;  %vm1950_vm10 = vcmp.eq.s32.totalorder %v4560_v56, 6 }
 0x93a   :  { %vm2149_vm11 = vcmp.eq.s32.totalorder %v4560_v56, 7 }
 0x93b   :  { %v2094_v49 = vpack.c.bf16 %v2093_v32, %v2093_v32  ;;  %2159 = vst [vmem:[%s4223_s8] sm:$0x1] %v2093_v32  ;;  %s2968_s8 = smov [#allocation11]  }
 0x93c   :  { %s2166_s25 = sshll.u32 %s2968_s8, 4  ;;  %s2167_s25 = int_to_ptr.vmem [resolvable:$true] %s2166_s25 }
 0x93d   :  { %v2096_v35 = vsel %vm3139_vm2, %v2094_v49, %v2095_v31  ;;  %2521 = vmatmul.mubr.bf16.vlgmr.msra.gmra.mxu1 %v2094_v49  ;;  %s2928_s26 = scalar_lea.vmem %s2167_s25, 128  ;;  %p2933_p7 = scmp.lt.s32.totalorder %s2167_s25, %s2167_s25 }
 0x93e   :  { %2097 = vst [vmem:[#allocation2 + $0x1] sm:$0x1] %v2096_v35  ;;  %p2929_p6 = scmp.ne.s32.totalorder %s2167_s25, %s2928_s26  ;;  %p2934_p8 = scmp.lt.s32.totalorder %s2928_s26, %s2928_s26 }
 0x940   :  { %p2935_p9 = por %p2934_p8, %p2933_p7 }
 0x942   :  { %p2936_p10 = pnand %p2935_p9, %p2929_p6 }
 0x96d   :  { %v1941_v53 = vpop.xlane.xlu0 %1940 }
 0x96e   :  { %v4162_v54 = vsub.f32 %v1934_v34, %v1941_v53 }
 0x970   :  { %v1943_v27 = vmul.f32 1.442695, %v4162_v54 }
 0x971   :  { %v753_v11 = vpop.xlane.xlu0 %752 }
 0x972   :  { %2727 = vpow2.f32 %v1943_v27 }
 0x973   :  { %2729 = vpow2.f32 %v948_v38 }
 0x974   :  { %2731 = vpow2.f32 %v1346_v8 }
 0x975   :  { %2733 = vpow2.f32 %v1744_v7  ;;  %v1151_v12 = vpop.xlane.xlu0 %1150 }
 0x979   :  { %v1549_v58 = vpop.xlane.xlu0 %1548 }
 0x97f   :  { %v2728_v51 = vpop.eup %2727 }
 0x980   :  { %v1945_v61 = vsel %vm170_vm1, %v2728_v51, 0.0  ;;  %v2730_v25 = vpop.eup %2729 }
 0x981   :  { %1946 = vadd.xlane.f32.xlu0 %v1945_v61  ;;  %v950_v50 = vsel %vm170_vm1, %v2730_v25, 0.0  ;;  %v2732_v16 = vpop.eup %2731 }
 0x982   :  { %v1348_v23 = vsel %vm170_vm1, %v2732_v16, 0.0  ;;  %v2734_v15 = vpop.eup %2733 }
 0x983   :  { %v1746_v21 = vsel %vm170_vm1, %v2734_v15, 0.0 }
 0x9fd   :  { %v2132_v41 = vpop.f32.mrf.mxu1 }
 0x9fe   :  { %v2133_v26 = vadd.f32 %v4552_v63, %v2132_v41 }
 0x9ff   :  { %v2522_v30 = vpop.f32.mrf.mxu1 }
 0xa00   :  { %v2138_v34 = vsel %vm170_vm1, %v2133_v26, -inf }
 0xa01   :  { %2139 = vmax.xlane.f32.xlu1 %v2138_v34  ;;  %v2135_v47 = vpop.f32.mrf.mxu1 }
 0xa03   :  { %v2523_v60 = vpop.f32.mrf.mxu1 }
 0xa05   :  { %951 = vadd.xlane.f32.xlu1 %v950_v50 }
 0xa09   :  { %1349 = vadd.xlane.f32.xlu1 %v1348_v23 }
 0xa0a   :  { %v1947_v39 = vpop.xlane.xlu0 %1946 }
 0xa0d   :  { %1747 = vadd.xlane.f32.xlu1 %v1746_v21 }
 0xa8a   :  { %v2140_v62 = vpop.xlane.xlu1 %2139 }
 0xa8b   :  { %v4184_v63 = vsub.f32 %v2133_v26, %v2140_v62 }
 0xa8d   :  { %v2142_v29 = vmul.f32 1.442695, %v4184_v63 }
 0xa8e   :  { %v952_v24 = vpop.xlane.xlu1 %951 }
 0xa8f   :  { %2735 = vpow2.f32 %v2142_v29 }
 0xa90   :  { %2737 = vlog2.f32 %v753_v11 }
 0xa91   :  { %2739 = vlog2.f32 %v952_v24 }
 0xa92   :  { %v1350_v46 = vpop.xlane.xlu1 %1349 }
 0xa93   :  { %2741 = vlog2.f32 %v1350_v46 }
 0xa94   :  { %2743 = vlog2.f32 %v1151_v12 }
 0xa96   :  { %v1748_v28 = vpop.xlane.xlu1 %1747 }
 0xa97   :  { %2745 = vlog2.f32 %v1748_v28 }
 0xa98   :  { %2747 = vlog2.f32 %v1549_v58 }
 0xa99   :  { %2749 = vlog2.f32 %v1947_v39 }
 0xa9c   :  { %v2736_v20 = vpop.eup %2735 }
 0xa9d   :  { %v2144_v59 = vsel %vm170_vm1, %v2736_v20, 0.0  ;;  %v2738_v2 = vpop.eup %2737 }
 0xa9e   :  { %2145 = vadd.xlane.f32.xlu1 %v2144_v59  ;;  %v2740_v33 = vpop.eup %2739  ;;  %v755_v4 = vmul.f32 0.6931472, %v2738_v2 }
 0xa9f   :  { %v954_v52 = vmul.f32 0.6931472, %v2740_v33 }
 0xaa0   :  { %v2742_v18 = vpop.eup %2741  ;;  %v757_v6 = vsub.f32 %v4134_v13, %v755_v4 }
 0xaa1   :  { %v2744_v17 = vpop.eup %2743  ;;  %v956_v3 = vsub.f32 %v4168_v55, %v954_v52  ;;  %v1352_v57 = vmul.f32 0.6931472, %v2742_v18 }
 0xaa2   :  { %v1153_v48 = vmul.f32 0.6931472, %v2744_v17  ;;  %v763_v1 = vrot.slane %v757_v6, %v4559_v10 }
 0xaa3   :  { %v962_v44 = vrot.slane %v956_v3, %v4559_v10  ;;  %v1354_v37 = vsub.f32 %v4172_v19, %v1352_v57 }
 0xaa4   :  { %v2746_v9 = vpop.eup %2745  ;;  %v1155_v49 = vsub.f32 %v4140_v36, %v1153_v48  ;;  %v764_v35 = vsel %vm756_vm4, %v763_v1, 0.0 }
 0xaa5   :  { %v2748_v40 = vpop.eup %2747  ;;  %v1750_v32 = vmul.f32 0.6931472, %v2746_v9  ;;  %v963_v53 = vsel %vm955_vm5, %v962_v44, %v764_v35  ;;  %v1360_v27 = vrot.slane %v1354_v37, %v4559_v10 }
 0xaa6   :  { %v1551_v13 = vmul.f32 0.6931472, %v2748_v40  ;;  %v2750_v31 = vpop.eup %2749  ;;  %v1161_v61 = vrot.slane %v1155_v49, %v4559_v10 }
 0xaa7   :  { %v1752_v51 = vsub.f32 %v4176_v0, %v1750_v32  ;;  %v1949_v55 = vmul.f32 0.6931472, %v2750_v31 }
 0xaa8   :  { %v1553_v45 = vsub.f32 %v4144_v22, %v1551_v13  ;;  %v1162_v36 = vsel %vm1154_vm6, %v1161_v61, %v963_v53 }
 0xaa9   :  { %v1758_v42 = vrot.slane %v1752_v51, %v4559_v10  ;;  %v1361_v38 = vsel %vm1353_vm7, %v1360_v27, %v1162_v36  ;;  %v1951_v14 = vsub.f32 %v4162_v54, %v1949_v55 }
 0xaaa   :  { %v1559_v19 = vrot.slane %v1553_v45, %v4559_v10 }
 0xaab   :  { %v1957_v41 = vrot.slane %v1951_v14, %v4559_v10 }
 0xaac   :  { %v1560_v0 = vsel %vm1552_vm8, %v1559_v19, %v1361_v38 }
 0xaad   :  { %v1759_v7 = vsel %vm1751_vm9, %v1758_v42, %v1560_v0 }
 0xaae   :  { %v1958_v30 = vsel %vm1950_vm10, %v1957_v41, %v1759_v7 }
 0xb27   :  { %v2146_v5 = vpop.xlane.xlu1 %2145 }
 0xb28   :  { %2751 = vlog2.f32 %v2146_v5 }
 0xb35   :  { %v2752_v43 = vpop.eup %2751 }
 0xb36   :  { %v2148_v8 = vmul.f32 0.6931472, %v2752_v43 }
 0xb38   :  { %v2150_v22 = vsub.f32 %v4184_v63, %v2148_v8 }
 0xb3a   :  { %v2156_v26 = vrot.slane %v2150_v22, %v4559_v10 }
 0xb3c   :  { %v2157_v54 = vsel %vm2149_vm11, %v2156_v26, %v1958_v30 }
 0xb3d   :  { %2158 = vst [vmem:[#allocation11] sm:$0xff] %v2157_v54 }
 0xb3e   :  { %2939 = shalt.err (!%p2936_p10)
}
 0xb3f   :  { %2169 = dma.vmem_to_hbm [thread:$0]  %s2167_s25, 128, %s4222_s7, [#allocation5]  }
 0xb40   :  { %2954 = dma.done.wait [#allocation5], 128  }
 0xb41   :  { %2955 = vsyncadd [#allocation5], 4294967168 }
 0xb42   :  { %2177 = vsyncpa [#allocation4], 1 }
 0xb43   :  { %2178 = vsyncpa [#allocation9], 1 }
 0xb44   :  { %2179 = vsyncpa [#allocation5], 1 }
 0xb45   :  { %2180 = vsyncpa [#allocation6], 1 }

</bundles_post_ra>
